<compile_context>
chip_gen: v7x
topology: tpu7x:2x2x1
jax: 0.10.0
libtpu: 0.0.40
codegen_flags: <defaults>
</compile_context>

<pallas_src>
import functools

import jax
import jax.numpy as jnp
from jax import lax
from jax.experimental import pallas as pl
from jax.experimental.pallas import tpu as pltpu

_HIGHEST = lax.Precision.HIGHEST
_DEFAULT = lax.Precision.DEFAULT


def _round_up(n, m):
    return ((n + m - 1) // m) * m


def _dueling_kernel(precision, x_ref, w1_ref, b1_ref, wav_ref, bav_ref,
                    wh_ref, bh_ref, o_ref):
    f32 = jnp.float32
    cdt = w1_ref.dtype  # compute dtype for MXU inputs (f32 or bf16)

    # feature: Linear(num_inputs, 128) + ReLU           (f32 accumulate)
    h = jnp.dot(x_ref[...], w1_ref[...], precision=precision,
                preferred_element_type=f32) + b1_ref[...]
    h = jnp.maximum(h, 0.0).astype(cdt)

    # fused hidden layers of both branches: [tb,128] @ [128,512], shared LHS h
    y = jnp.dot(h, wav_ref[...], precision=precision,
                preferred_element_type=f32) + bav_ref[...]
    y = jnp.maximum(y, 0.0).astype(cdt)  # = concat(relu(adv hidden), relu(val hidden))

    # fused head with the dueling combine folded into the weights:
    #   cols [0:N) already equal  v + a_j - mean(a);  padded cols are zero.
    o_ref[...] = (jnp.dot(y, wh_ref[...], precision=precision,
                          preferred_element_type=f32) + bh_ref[...]).astype(o_ref.dtype)


def pack_params(params, compute_dtype=jnp.float32):
    """Pack torch-layout params ([in,out] weights, [1,out] biases) for the fused kernel.

    Weights are cast to `compute_dtype` (f32 or bf16); biases stay f32 (added to the
    f32 MXU accumulator). The dueling combine (mean-subtraction + value add) is folded
    into the head weights/bias, exactly.
    """
    w1, b1, wa1, ba1, wa2, ba2, wv1, bv1, wv2, bv2 = params
    num_inputs = w1.shape[0]
    num_actions = wa2.shape[1]

    # Feature layer, K padded to a 128-lane multiple (zero rows -> exact).
    kp = _round_up(num_inputs, 128)
    w1p = jnp.zeros((kp, 128), jnp.float32).at[:num_inputs, :].set(w1)

    # Fused hidden layer of both branches: [128, 512] and [1, 512].
    w_av = jnp.concatenate([wa1, wv1], axis=1)
    b_av = jnp.concatenate([ba1, bv1], axis=1)

    # Fused head with the dueling combine folded in, padded to 128 output lanes.
    hp = _round_up(num_actions, 128)
    wa2_centered = wa2 - jnp.mean(wa2, axis=1, keepdims=True)       # [256, N]
    w_head = jnp.zeros((512, hp), jnp.float32)
    w_head = w_head.at[0:256, 0:num_actions].set(wa2_centered)      # advantage - mean
    w_head = w_head.at[256:512, 0:num_actions].set(
        jnp.tile(wv2, (1, num_actions)))                            # + value (replicated)
    b_head = jnp.zeros((1, hp), jnp.float32)
    b_head = b_head.at[0, 0:num_actions].set(
        ba2[0] - jnp.mean(ba2) + bv2[0, 0])

    cdt = jnp.dtype(compute_dtype)
    return (w1p.astype(cdt), b1, w_av.astype(cdt), b_av, w_head.astype(cdt), b_head)


@functools.partial(jax.jit, static_argnames=("num_actions", "tile_b"))
def dueling_forward(x, w1, b1, w_av, b_av, w_head, b_head, *,
                    num_actions, tile_b=512):
    B, num_inputs = x.shape
    kp = w1.shape[0]
    hp = w_head.shape[1]

    # f32 weights -> HIGHEST (matches torch reference exactly);
    # bf16 weights -> single-pass MXU, precision flag irrelevant.
    precision = _HIGHEST if w1.dtype == jnp.float32 else _DEFAULT

    # Batch tile: multiple of 8 (sublane), capped at tile_b.
    b8 = _round_up(B, 8)
    tb = min(tile_b, b8)
    # If the whole batch fits in one step and can be split, use >=2 grid steps so
    # dimension_semantics=("parallel",) shards across v7x's 2 TensorCores
    # (costs one extra ~0.35us step on single-TC chips; negligible).
    if b8 > 8 and b8 <= tb:
        tb = _round_up((b8 + 1) // 2, 8)
    b_pad = _round_up(b8, tb)

    if b_pad != B or kp != num_inputs:
        x = jnp.pad(x, ((0, b_pad - B), (0, kp - num_inputs)))
    x = x.astype(w1.dtype)  # lane-dense, compute-dtype x DMA

    grid = (b_pad // tb,)

    def resident(shape):
        return pl.BlockSpec(shape, lambda i: (0, 0))

    cdt_size = jnp.dtype(w1.dtype).itemsize
    flops = 2 * b_pad * (kp * 128 + 128 * 512 + 512 * hp)
    bytes_accessed = (cdt_size * (b_pad * kp + kp * 128 + 128 * 512 + 512 * hp)
                      + 4 * (b_pad * hp + 128 + 512 + hp))

    out = pl.pallas_call(
        functools.partial(_dueling_kernel, precision),
        grid=grid,
        in_specs=[
            pl.BlockSpec((tb, kp), lambda i: (i, 0)),        # x: batch-tiled, lane-dense
            resident(w1.shape), resident(b1.shape),          # weights stay VMEM-resident
            resident(w_av.shape), resident(b_av.shape),
            resident(w_head.shape), resident(b_head.shape),
        ],
        out_specs=pl.BlockSpec((tb, hp), lambda i: (i, 0)),  # lane-dense output tile
        out_shape=jax.ShapeDtypeStruct((b_pad, hp), jnp.float32),
        compiler_params=pltpu.CompilerParams(
            dimension_semantics=("parallel",)),
        cost_estimate=pl.CostEstimate(flops=flops, transcendentals=0,
                                      bytes_accessed=bytes_accessed),
    )(x, w1, b1, w_av, b_av, w_head, b_head)
    return out[:B, :num_actions]


def init_params(key, num_inputs, num_actions):
    """PyTorch-style uniform(-1/sqrt(fan_in), 1/sqrt(fan_in)) init, deterministic."""
    def linear(key, fan_in, fan_out):
        kw, kb = jax.random.split(key)
        bound = 1.0 / jnp.sqrt(jnp.float32(fan_in))
        # stored pre-transposed: [in, out]
        w = jax.random.uniform(kw, (fan_in, fan_out), jnp.float32, -bound, bound)
        b = jax.random.uniform(kb, (1, fan_out), jnp.float32, -bound, bound)
        return w, b

    k1, k2, k3, k4, k5 = jax.random.split(key, 5)
    w1, b1 = linear(k1, num_inputs, 128)
    wa1, ba1 = linear(k2, 128, 256)
    wa2, ba2 = linear(k3, 256, num_actions)
    wv1, bv1 = linear(k4, 128, 256)
    wv2, bv2 = linear(k5, 256, 1)
    return (w1, b1, wa1, ba1, wa2, ba2, wv1, bv1, wv2, bv2)


def reference_forward(x, params):
    (w1, b1, wa1, ba1, wa2, ba2, wv1, bv1, wv2, bv2) = params
    dot = lambda a, b: jnp.dot(a, b, precision=_HIGHEST)
    h = jnp.maximum(dot(x, w1) + b1, 0.0)
    adv = dot(jnp.maximum(dot(h, wa1) + ba1, 0.0), wa2) + ba2
    val = dot(jnp.maximum(dot(h, wv1) + bv1, 0.0), wv2) + bv2
    return val + adv - jnp.mean(adv, axis=-1, keepdims=True)


if __name__ == "__main__":
    num_inputs = 32
    num_actions = 8
    batch = 8

    key = jax.random.PRNGKey(0)
    kx, kp = jax.random.split(key)
    x = jax.random.normal(kx, (batch, num_inputs), jnp.float32)
    params = init_params(kp, num_inputs, num_actions)
    ref = reference_forward(x, params)

    # Exact (f32, HIGHEST) path: matches the torch-semantics reference to 1e-4.
    packed_f32 = pack_params(params, jnp.float32)
    out = dueling_forward(x, *packed_f32, num_actions=num_actions)
    out = jax.block_until_ready(out)
    assert out.shape == (batch, num_actions)
    assert jnp.allclose(out, ref, atol=1e-4, rtol=1e-4), "f32 path mismatch vs reference"

    # Fast path for v6e/v7x: bf16 weights/activations, f32 accumulate (looser tolerance).
    packed_bf16 = pack_params(params, jnp.bfloat16)
    out_bf16 = dueling_forward(x, *packed_bf16, num_actions=num_actions)
    out_bf16 = jax.block_until_ready(out_bf16)
    assert out_bf16.shape == (batch, num_actions)
    assert jnp.allclose(out_bf16, ref, atol=5e-2, rtol=5e-2), "bf16 path mismatch vs reference"

    print("KERNEL_OK")
</pallas_src>

<mosaic_0001>
module attributes {stable_mosaic.version = 11 : i64} {
  func.func @_dueling_kernel(%arg0: i32, %arg1: memref<8x128xf32, #tpu.memory_space<vmem>>, %arg2: memref<128x128xf32, #tpu.memory_space<vmem>>, %arg3: memref<1x128xf32, #tpu.memory_space<vmem>>, %arg4: memref<128x512xf32, #tpu.memory_space<vmem>>, %arg5: memref<1x512xf32, #tpu.memory_space<vmem>>, %arg6: memref<512x128xf32, #tpu.memory_space<vmem>>, %arg7: memref<1x128xf32, #tpu.memory_space<vmem>>, %arg8: memref<8x128xf32, #tpu.memory_space<vmem>>) attributes {dimension_semantics = [#tpu.dimension_semantics<parallel>], iteration_bounds = array<i64: 1>, scalar_prefetch = 0 : i64, scratch_operands = 0 : i64, tpu.core_type = #tpu.core_type<tc>, window_params = [{transform_indices = @transform_0, window_bounds = array<i64: 8, 128>}, {pipeline_mode = #tpu.pipeline_mode<synchronous>, transform_indices = @transform_1, window_bounds = array<i64: 128, 128>}, {pipeline_mode = #tpu.pipeline_mode<synchronous>, transform_indices = @transform_2, window_bounds = array<i64: 1, 128>}, {pipeline_mode = #tpu.pipeline_mode<synchronous>, transform_indices = @transform_3, window_bounds = array<i64: 128, 512>}, {pipeline_mode = #tpu.pipeline_mode<synchronous>, transform_indices = @transform_4, window_bounds = array<i64: 1, 512>}, {pipeline_mode = #tpu.pipeline_mode<synchronous>, transform_indices = @transform_5, window_bounds = array<i64: 512, 128>}, {pipeline_mode = #tpu.pipeline_mode<synchronous>, transform_indices = @transform_6, window_bounds = array<i64: 1, 128>}, {transform_indices = @transform_7, window_bounds = array<i64: 8, 128>}]} {
    %c0 = arith.constant 0 : index
    %c0_0 = arith.constant 0 : index
    %0 = vector.load %arg1[%c0, %c0_0] : memref<8x128xf32, #tpu.memory_space<vmem>>, vector<8x128xf32>
    %c0_1 = arith.constant 0 : index
    %c0_2 = arith.constant 0 : index
    %1 = vector.load %arg2[%c0_1, %c0_2] : memref<128x128xf32, #tpu.memory_space<vmem>>, vector<128x128xf32>
    %cst = arith.constant dense<0.000000e+00> : vector<8x128xf32>
    %2 = tpu.matmul %0, %1, %cst {dimension_numbers = #tpu.dot_dimension_numbers<[1], [0], [0], [1], [0, 0, 1, 1], [], []>, precision = #tpu.contract_precision<fp32>} : vector<8x128xf32>, vector<128x128xf32>, vector<8x128xf32> -> vector<8x128xf32>
    %c0_3 = arith.constant 0 : index
    %c0_4 = arith.constant 0 : index
    %3 = vector.load %arg3[%c0_3, %c0_4] : memref<1x128xf32, #tpu.memory_space<vmem>>, vector<1x128xf32>
    %4 = vector.broadcast %3 : vector<1x128xf32> to vector<8x128xf32>
    %5 = arith.addf %2, %4 : vector<8x128xf32>
    %cst_5 = arith.constant 0.000000e+00 : f32
    %6 = vector.broadcast %cst_5 : f32 to vector<8x128xf32>
    %7 = arith.maximumf %5, %6 : vector<8x128xf32>
    %c0_6 = arith.constant 0 : index
    %c0_7 = arith.constant 0 : index
    %8 = vector.load %arg4[%c0_6, %c0_7] : memref<128x512xf32, #tpu.memory_space<vmem>>, vector<128x512xf32>
    %cst_8 = arith.constant dense<0.000000e+00> : vector<8x512xf32>
    %9 = tpu.matmul %7, %8, %cst_8 {dimension_numbers = #tpu.dot_dimension_numbers<[1], [0], [0], [1], [0, 0, 1, 1], [], []>, precision = #tpu.contract_precision<fp32>} : vector<8x128xf32>, vector<128x512xf32>, vector<8x512xf32> -> vector<8x512xf32>
    %c0_9 = arith.constant 0 : index
    %c0_10 = arith.constant 0 : index
    %10 = vector.load %arg5[%c0_9, %c0_10] : memref<1x512xf32, #tpu.memory_space<vmem>>, vector<1x512xf32>
    %11 = vector.broadcast %10 : vector<1x512xf32> to vector<8x512xf32>
    %12 = arith.addf %9, %11 : vector<8x512xf32>
    %cst_11 = arith.constant 0.000000e+00 : f32
    %13 = vector.broadcast %cst_11 : f32 to vector<8x512xf32>
    %14 = arith.maximumf %12, %13 : vector<8x512xf32>
    %c0_12 = arith.constant 0 : index
    %c0_13 = arith.constant 0 : index
    %15 = vector.load %arg6[%c0_12, %c0_13] : memref<512x128xf32, #tpu.memory_space<vmem>>, vector<512x128xf32>
    %cst_14 = arith.constant dense<0.000000e+00> : vector<8x128xf32>
    %16 = tpu.matmul %14, %15, %cst_14 {dimension_numbers = #tpu.dot_dimension_numbers<[1], [0], [0], [1], [0, 0, 1, 1], [], []>, precision = #tpu.contract_precision<fp32>} : vector<8x512xf32>, vector<512x128xf32>, vector<8x128xf32> -> vector<8x128xf32>
    %c0_15 = arith.constant 0 : index
    %c0_16 = arith.constant 0 : index
    %17 = vector.load %arg7[%c0_15, %c0_16] : memref<1x128xf32, #tpu.memory_space<vmem>>, vector<1x128xf32>
    %18 = vector.broadcast %17 : vector<1x128xf32> to vector<8x128xf32>
    %19 = arith.addf %16, %18 : vector<8x128xf32>
    %c0_17 = arith.constant 0 : index
    %c0_18 = arith.constant 0 : index
    %20 = vector.load %arg8[%c0_17, %c0_18] : memref<8x128xf32, #tpu.memory_space<vmem>>, vector<8x128xf32>
    tpu.vector_store %arg8[%c0_17, %c0_18], %19 {strides = array<i32>} : memref<8x128xf32, #tpu.memory_space<vmem>>, vector<8x128xf32>,
    return
  }
  func.func @transform_0(%arg0: i32) -> (i32, i32) {
    %c0_i32 = arith.constant 0 : i32
    %c0_i32_0 = arith.constant 0 : i32
    return %arg0, %c0_i32 : i32, i32
  }
  func.func @transform_1(%arg0: i32) -> (i32, i32) {
    %c0_i32 = arith.constant 0 : i32
    %c0_i32_0 = arith.constant 0 : i32
    %c0_i32_1 = arith.constant 0 : i32
    return %c0_i32, %c0_i32_0 : i32, i32
  }
  func.func @transform_2(%arg0: i32) -> (i32, i32) {
    %c0_i32 = arith.constant 0 : i32
    %c0_i32_0 = arith.constant 0 : i32
    %c0_i32_1 = arith.constant 0 : i32
    return %c0_i32, %c0_i32_0 : i32, i32
  }
  func.func @transform_3(%arg0: i32) -> (i32, i32) {
    %c0_i32 = arith.constant 0 : i32
    %c0_i32_0 = arith.constant 0 : i32
    %c0_i32_1 = arith.constant 0 : i32
    return %c0_i32, %c0_i32_0 : i32, i32
  }
  func.func @transform_4(%arg0: i32) -> (i32, i32) {
    %c0_i32 = arith.constant 0 : i32
    %c0_i32_0 = arith.constant 0 : i32
    %c0_i32_1 = arith.constant 0 : i32
    return %c0_i32, %c0_i32_0 : i32, i32
  }
  func.func @transform_5(%arg0: i32) -> (i32, i32) {
    %c0_i32 = arith.constant 0 : i32
    %c0_i32_0 = arith.constant 0 : i32
    %c0_i32_1 = arith.constant 0 : i32
    return %c0_i32, %c0_i32_0 : i32, i32
  }
  func.func @transform_6(%arg0: i32) -> (i32, i32) {
    %c0_i32 = arith.constant 0 : i32
    %c0_i32_0 = arith.constant 0 : i32
    %c0_i32_1 = arith.constant 0 : i32
    return %c0_i32, %c0_i32_0 : i32, i32
  }
  func.func @transform_7(%arg0: i32) -> (i32, i32) {
    %c0_i32 = arith.constant 0 : i32
    %c0_i32_0 = arith.constant 0 : i32
    return %arg0, %c0_i32 : i32, i32
  }
}

</mosaic_0001>

<bundles_post_ra>
// kernel: dueling_forward.1
= control target key start
LH: loop header
LB: loop body
LE: loop exit
PB: predicated region body
PF: predicated region fallthrough
CT: control target
= control target key end

     0   :  { %12 = vsyncpa [#allocation3], 0  ;;  %s8861_s0 = inlined_call_operand.vmem [shape: f32[8,128], index: 0, kind: input, shape index: {}]   ;;  %s8862_s1 = inlined_call_operand.hbm [shape: f32[128,128], index: 1, kind: input, shape index: {}]   ;;  %s8863_s2 = inlined_call_operand.vmem [shape: f32[1,128], index: 2, kind: input, shape index: {}]   ;;  %s8864_s3 = inlined_call_operand.hbm [shape: f32[128,512], index: 3, kind: input, shape index: {}]   ;;  %s8865_s4 = inlined_call_operand.vmem [shape: f32[1,512], index: 4, kind: input, shape index: {}]   ;;  %s8866_s5 = inlined_call_operand.hbm [shape: f32[512,128], index: 5, kind: input, shape index: {}]   ;;  %s8867_s6 = inlined_call_operand.vmem [shape: f32[1,128], index: 6, kind: input, shape index: {}]   ;;  %s8868_s7 = inlined_call_operand.hbm [shape: f32[8,128], index: 7, kind: output, shape index: {}]  }
   0x1   :  { %13 = vsyncpa [#allocation6], 0 }
   0x2   :  { %14 = vsyncpa [#allocation4], 0  ;;  %s6132_s24 = smov [#allocation5]   ;;  %s6038_s28 = scalar_lea.hbm %s8864_s3, 8192 }
   0x3   :  { %s36_s25 = sshll.u32 %s6132_s24, 4  ;;  %p6039_p0 = scmp.ne.s32.totalorder %s8864_s3, %s6038_s28  ;;  %s37_s25 = int_to_ptr.vmem [resolvable:$true] %s36_s25 }
   0x4   :  { %p6042_p1 = scmp.lt.u32.totalorder %s6038_s28, %s8864_s3 }
   0x6   :  { %p6044_p2 = pnand %p6042_p1, %p6039_p0 }
   0x8   :  { %6047 = shalt.err (!%p6044_p2)
}
   0x9   :  { %s6048_s10 = scalar_lea.vmem %s37_s25, 8192  ;;  %p6053_p4 = scmp.lt.s32.totalorder %s37_s25, %s37_s25 }
   0xa   :  { %p6049_p3 = scmp.ne.s32.totalorder %s37_s25, %s6048_s10  ;;  %p6054_p5 = scmp.lt.s32.totalorder %s6048_s10, %s6048_s10 }
   0xc   :  { %p6055_p6 = por %p6054_p5, %p6053_p4 }
   0xe   :  { %p6056_p7 = pnand %p6055_p6, %p6049_p3 }
  0x10   :  { %6059 = shalt.err (!%p6056_p7)
}
  0x11   :  { %s6133_s11 = smov 512   ;;  %s6134_s12 = smov 32  }
  0x12   :  { %42 = dma.hbm_to_vmem [thread:$0]  %s8864_s3, 8192, %s37_s25, [#allocation6], %s6133_s11, %s6133_s11, %s6134_s12  }
  0x13   :  { %s6135_s15 = smov [#allocation2]   ;;  %s6060_s19 = scalar_lea.hbm %s8862_s1, 2048 }
  0x14   :  { %s22_s16 = sshll.u32 %s6135_s15, 4  ;;  %p6061_p8 = scmp.ne.s32.totalorder %s8862_s1, %s6060_s19  ;;  %s23_s16 = int_to_ptr.vmem [resolvable:$true] %s22_s16 }
  0x15   :  { %p6064_p9 = scmp.lt.u32.totalorder %s6060_s19, %s8862_s1 }
  0x17   :  { %p6066_p10 = pnand %p6064_p9, %p6061_p8 }
  0x19   :  { %6069 = shalt.err (!%p6066_p10)
}
  0x1a   :  { %s6070_s24 = scalar_lea.vmem %s23_s16, 2048  ;;  %p6075_p12 = scmp.lt.s32.totalorder %s23_s16, %s23_s16 }
  0x1b   :  { %p6071_p11 = scmp.ne.s32.totalorder %s23_s16, %s6070_s24  ;;  %p6076_p13 = scmp.lt.s32.totalorder %s6070_s24, %s6070_s24 }
  0x1d   :  { %p6077_p0 = por %p6076_p13, %p6075_p12 }
  0x1f   :  { %p6078_p1 = pnand %p6077_p0, %p6071_p11 }
  0x21   :  { %6081 = shalt.err (!%p6078_p1)
}
  0x22   :  { %s6136_s3 = smov 128   ;;  %s6137_s25 = smov 8  }
  0x23   :  { %28 = dma.hbm_to_vmem [thread:$0]  %s8862_s1, 2048, %s23_s16, [#allocation3], %s6136_s3, %s6136_s3, %s6137_s25  }
  0x24   :  { %s6138_s28 = smov [#allocation7]   ;;  %s6082_s9 = scalar_lea.hbm %s8866_s5, 8192 }
  0x25   :  { %s50_s29 = sshll.u32 %s6138_s28, 4  ;;  %p6083_p2 = scmp.ne.s32.totalorder %s8866_s5, %s6082_s9  ;;  %s51_s29 = int_to_ptr.vmem [resolvable:$true] %s50_s29 }
  0x26   :  { %p6086_p3 = scmp.lt.u32.totalorder %s6082_s9, %s8866_s5 }
  0x28   :  { %p6088_p4 = pnand %p6086_p3, %p6083_p2 }
  0x2a   :  { %6091 = shalt.err (!%p6088_p4)
}
  0x2b   :  { %s6092_s14 = scalar_lea.vmem %s51_s29, 8192  ;;  %p6097_p6 = scmp.lt.s32.totalorder %s51_s29, %s51_s29 }
  0x2c   :  { %p6093_p5 = scmp.ne.s32.totalorder %s51_s29, %s6092_s14  ;;  %p6098_p7 = scmp.lt.s32.totalorder %s6092_s14, %s6092_s14 }
  0x2e   :  { %p6099_p8 = por %p6098_p7, %p6097_p6 }
  0x30   :  { %p6100_p9 = pnand %p6099_p8, %p6093_p5 }
  0x32   :  { %6103 = shalt.err (!%p6100_p9)
}
  0x33   :  { %56 = dma.hbm_to_vmem [thread:$0]  %s8866_s5, 8192, %s51_s29, [#allocation6], %s6136_s3, %s6136_s3, %s6137_s25  }
  0x34   :  { %6126 = dma.done.wait [#allocation3], 2048  }
  0x35   :  { %6127 = vsyncadd [#allocation3], 4294965248 }
  0x36   :  { %6128 = dma.done.wait [#allocation6], 16384  }
  0x37   :  { %6129 = vsyncadd [#allocation6], 4294950912  ;;  %v8874_v0 = vmov 0.0|0.0   ;;  %vm6140_vm0 = vmmov 0   ;;  %v8872_v1 = vmov 0.0   ;;  %v69_v2 = vld [vmem:[#allocation2] sm:$0xff] }
  0x38   :  { %5080 = vmatprep.subr.bf16.mxu0 %v8874_v0  ;;  %4902 = vmatprep.mubr.msk.f32.mxu0 %vm6140_vm0, %v8872_v1  ;;  %v70_v3 = vld [vmem:[#allocation2 + $0x8] sm:$0xff]  ;;  %v71_v4 = vld [vmem:[#allocation2 + $0x10] sm:$0xff]  ;;  %v93_v5 = vand.u32 4294901760, %v69_v2  ;;  %v72_v7 = vld [vmem:[#allocation2 + $0x18] sm:$0xff] }
  0x39   :  { %916 = vmatprep.mubr.f32.mxu1 %v8872_v1  ;;  %v96_v6 = vand.u32 4294901760, %v70_v3  ;;  %v99_v8 = vand.u32 4294901760, %v71_v4  ;;  %v102_v9 = vand.u32 4294901760, %v72_v7  ;;  %v73_v10 = vld [vmem:[#allocation2 + $0x20] sm:$0xff]  ;;  %v74_v11 = vld [vmem:[#allocation2 + $0x28] sm:$0xff]  ;;  %v75_v16 = vld [vmem:[#allocation2 + $0x30] sm:$0xff] }
  0x3a   :  { %v105_v14 = vand.u32 4294901760, %v73_v10  ;;  %v108_v15 = vand.u32 4294901760, %v74_v11  ;;  %v76_v17 = vld [vmem:[#allocation2 + $0x38] sm:$0xff]  ;;  %v111_v19 = vand.u32 4294901760, %v75_v16  ;;  %v77_v21 = vld [vmem:[#allocation2 + $0x40] sm:$0xff]  ;;  %v78_v22 = vld [vmem:[#allocation2 + $0x48] sm:$0xff]  ;;  %v6236_v24 = vsub.f32 %v69_v2, %v93_v5 }
  0x3b   :  { %v6223_v12 = vpack.c.bf16 %v96_v6, %v93_v5  ;;  %v6226_v13 = vpack.c.bf16 %v102_v9, %v99_v8  ;;  %v114_v20 = vand.u32 4294901760, %v76_v17  ;;  %v68_v23 = vld [vmem:[%s8861_s0] sm:$0xff]  ;;  %v6238_v25 = vsub.f32 %v70_v3, %v96_v6  ;;  %v79_v29 = vld [vmem:[#allocation2 + $0x50] sm:$0xff]  ;;  %v80_v30 = vld [vmem:[#allocation2 + $0x58] sm:$0xff] }
  0x3c   :  { %v6230_v18 = vpack.c.bf16 %v108_v15, %v105_v14  ;;  %v117_v27 = vand.u32 4294901760, %v77_v21  ;;  %v120_v28 = vand.u32 4294901760, %v78_v22  ;;  %v6244_v31 = vand.u32 4294901760, %v68_v23  ;;  %v81_v32 = vld [vmem:[#allocation2 + $0x60] sm:$0xff]  ;;  %v82_v35 = vld [vmem:[#allocation2 + $0x68] sm:$0xff]  ;;  %v83_v36 = vld [vmem:[#allocation2 + $0x70] sm:$0xff] }
  0x3d   :  { %5082 = vmatpush3.bf16.msra.mxu0 %v6223_v12  ;;  %v6241_v26 = vpack.c.bf16 %v114_v20, %v111_v19  ;;  %v6246_v33 = vsub.f32 %v71_v4, %v99_v8  ;;  %v123_v34 = vand.u32 4294901760, %v79_v29  ;;  %v84_v37 = vld [vmem:[#allocation2 + $0x78] sm:$0xff]  ;;  %v126_v39 = vand.u32 4294901760, %v80_v30 }
  0x3e   :  { %5083 = vmatprep.subr.bf16.mxu0 %v8874_v0  ;;  %v6249_v38 = vpack.c.bf16 %v120_v28, %v117_v27  ;;  %v186_v40 = vand.u32 4294901760, %v6236_v24  ;;  %v193_v41 = vand.u32 4294901760, %v6238_v25  ;;  %v6253_v42 = vsub.f32 %v72_v7, %v102_v9 }
  0x3f   :  { %v6255_v43 = vsub.f32 %v73_v10, %v105_v14  ;;  %v6257_v44 = vsub.f32 %v74_v11, %v108_v15  ;;  %v6261_v45 = vsub.f32 %v68_v23, %v6244_v31  ;;  %v129_v46 = vand.u32 4294901760, %v81_v32 }
  0x40   :  { %v132_v47 = vand.u32 4294901760, %v82_v35  ;;  %v135_v48 = vand.u32 4294901760, %v83_v36  ;;  %v138_v49 = vand.u32 4294901760, %v84_v37  ;;  %v6263_v50 = vsub.f32 %v75_v16, %v111_v19 }
  0x41   :  { %5085 = vmatpush3.bf16.msra.mxu0 %v6226_v13  ;;  %v6265_v51 = vsub.f32 %v76_v17, %v114_v20  ;;  %v6267_v52 = vsub.f32 %v77_v21, %v117_v27  ;;  %v200_v53 = vand.u32 4294901760, %v6246_v33  ;;  %v6271_v54 = vsub.f32 %v78_v22, %v120_v28 }
  0x42   :  { %5086 = vmatprep.subr.bf16.mxu0 %v8874_v0  ;;  %v6273_v55 = vpack.c.bf16 %v126_v39, %v123_v34  ;;  %v187_v56 = vsub.f32 %v6236_v24, %v186_v40  ;;  %v194_v57 = vsub.f32 %v6238_v25, %v193_v41  ;;  %v6278_v58 = vsub.f32 %v79_v29, %v123_v34 }
  0x43   :  { %v6280_v59 = vsub.f32 %v80_v30, %v126_v39  ;;  %v6282_v60 = vsub.f32 %v81_v32, %v129_v46  ;;  %v8871_v61 = vand.u32 4294901760, %v6261_v45  ;;  %v6285_v62 = vpack.c.bf16 %v132_v47, %v129_v46 }
  0x44   :  { %v6287_v63 = vsub.f32 %v82_v35, %v132_v47  ;;  %v6289_v2 = vpack.c.bf16 %v138_v49, %v135_v48  ;;  %v6291_v3 = vsub.f32 %v83_v36, %v135_v48  ;;  %v6293_v4 = vsub.f32 %v84_v37, %v138_v49 }
  0x45   :  { %5088 = vmatpush3.bf16.msra.mxu0 %v6230_v18  ;;  %v201_v5 = vsub.f32 %v6246_v33, %v200_v53  ;;  %v207_v6 = vand.u32 4294901760, %v6253_v42  ;;  %v214_v7 = vand.u32 4294901760, %v6255_v43  ;;  %v188_v8 = vand.u32 4294901760, %v187_v56 }
  0x46   :  { %5089 = vmatprep.subr.bf16.mxu0 %v8874_v0  ;;  %v195_v9 = vand.u32 4294901760, %v194_v57  ;;  %v221_v10 = vand.u32 4294901760, %v6257_v44  ;;  %v228_v11 = vand.u32 4294901760, %v6263_v50  ;;  %v176_v14 = vsub.f32 %v6261_v45, %v8871_v61 }
  0x47   :  { %v235_v15 = vand.u32 4294901760, %v6265_v51  ;;  %v242_v16 = vand.u32 4294901760, %v6267_v52  ;;  %v249_v17 = vand.u32 4294901760, %v6271_v54  ;;  %v256_v19 = vand.u32 4294901760, %v6278_v58 }
  0x48   :  { %v263_v20 = vand.u32 4294901760, %v6280_v59  ;;  %v270_v21 = vand.u32 4294901760, %v6282_v60  ;;  %v277_v22 = vand.u32 4294901760, %v6287_v63  ;;  %v284_v23 = vand.u32 4294901760, %v6291_v3 }
  0x49   :  { %5091 = vmatpush3.bf16.msra.mxu0 %v6241_v26  ;;  %v291_v27 = vand.u32 4294901760, %v6293_v4  ;;  %v6314_v28 = vpack.c.bf16 %v193_v41, %v186_v40  ;;  %v6316_v29 = vpack.c.bf16 %v207_v6, %v200_v53  ;;  %v208_v30 = vsub.f32 %v6253_v42, %v207_v6 }
  0x4a   :  { %5092 = vmatprep.subr.bf16.mxu0 %v8874_v0  ;;  %v6320_v32 = vpack.c.bf16 %v221_v10, %v214_v7  ;;  %v6322_v34 = vpack.c.bf16 %v235_v15, %v228_v11  ;;  %v6324_v35 = vpack.c.bf16 %v249_v17, %v242_v16  ;;  %v6327_v36 = vpack.c.bf16 %v263_v20, %v256_v19 }
  0x4b   :  { %v6329_v37 = vpack.c.bf16 %v277_v22, %v270_v21  ;;  %v6331_v39 = vpack.c.bf16 %v291_v27, %v284_v23  ;;  %v177_v40 = vand.u32 4294901760, %v176_v14  ;;  %v202_v41 = vand.u32 4294901760, %v201_v5 }
  0x4c   :  { %v5105_v46 = vpack.c.bf16 %v195_v9, %v188_v8  ;;  %v209_v47 = vand.u32 4294901760, %v208_v30  ;;  %v215_v48 = vsub.f32 %v6255_v43, %v214_v7  ;;  %v222_v49 = vsub.f32 %v6257_v44, %v221_v10 }
  0x4d   :  { %5094 = vmatpush3.bf16.msra.mxu0 %v6249_v38  ;;  %v229_v53 = vsub.f32 %v6263_v50, %v228_v11  ;;  %v236_v14 = vsub.f32 %v6265_v51, %v235_v15  ;;  %v243_v5 = vsub.f32 %v6267_v52, %v242_v16  ;;  %v250_v10 = vsub.f32 %v6271_v54, %v249_v17 }
  0x4e   :  { %5095 = vmatprep.subr.bf16.mxu0 %v8874_v0  ;;  %v5108_v56 = vpack.c.bf16 %v209_v47, %v202_v41  ;;  %v216_v57 = vand.u32 4294901760, %v215_v48  ;;  %v223_v6 = vand.u32 4294901760, %v222_v49  ;;  %v257_v15 = vsub.f32 %v6278_v58, %v256_v19 }
  0x4f   :  { %v230_v8 = vand.u32 4294901760, %v229_v53  ;;  %v237_v9 = vand.u32 4294901760, %v236_v14  ;;  %v244_v11 = vand.u32 4294901760, %v243_v5  ;;  %v264_v41 = vsub.f32 %v6280_v59, %v263_v20  ;;  %v6360_v5 = vld [vmem:[#allocation5 + $0x18] sm:$0xff] }
  0x50   :  { %v5111_v7 = vpack.c.bf16 %v223_v6, %v216_v57  ;;  %v271_v16 = vsub.f32 %v6282_v60, %v270_v21  ;;  %v258_v47 = vand.u32 4294901760, %v257_v15  ;;  %v278_v17 = vsub.f32 %v6287_v63, %v277_v22 }
  0x51   :  { %5097 = vmatpush3.bf16.msra.mxu0 %v6273_v55  ;;  %v5114_v30 = vpack.c.bf16 %v237_v9, %v230_v8  ;;  %v265_v48 = vand.u32 4294901760, %v264_v41  ;;  %v285_v19 = vsub.f32 %v6291_v3, %v284_v23  ;;  %v292_v20 = vsub.f32 %v6293_v4, %v291_v27  ;;  %v735_v23 = vld [vmem:[#allocation5 + $0x8] sm:$0xff]  ;;  %v6371_v41 = vld [vmem:[#allocation5 + $0x10] sm:$0xff] }
  0x52   :  { %5098 = vmatprep.subr.bf16.mxu0 %v8874_v0  ;;  %v272_v49 = vand.u32 4294901760, %v271_v16  ;;  %v5129_v14 = vpack.c.bf16 %v6238_v25, %v6236_v24  ;;  %v739_v27 = vld [vmem:[#allocation5 + $0x28] sm:$0xff]  ;;  %v820_v8 = vand.u32 4294901760, %v735_v23  ;;  %v8870_v24 = vand.u32 4294901760, %v6360_v5  ;;  %v734_v25 = vld [vmem:[#allocation5] sm:$0xff] }
  0x53   :  { %v5120_v53 = vpack.c.bf16 %v265_v48, %v258_v47  ;;  %v286_v57 = vand.u32 4294901760, %v285_v19  ;;  %v293_v6 = vand.u32 4294901760, %v292_v20  ;;  %v824_v9 = vand.u32 4294901760, %v739_v27 }
  0x54   :  { %v6384_v48 = vsub.f32 %v6360_v5, %v8870_v24  ;;  %v755_v24 = vld [vmem:[#allocation5 + $0xa8] sm:$0xff]  ;;  %v5138_v61 = vpack.c.bf16 %v6265_v51, %v6263_v50  ;;  %v6447_v51 = vld [vmem:[#allocation5 + $0xb8] sm:$0xff] }
  0x55   :  { %5100 = vmatpush3.bf16.msra.mxu0 %v6285_v62  ;;  %v5126_v22 = vpack.c.bf16 %v293_v6, %v286_v57  ;;  %v6375_v16 = vpack.c.bf16 %v824_v9, %v820_v8  ;;  %v6379_v47 = vsub.f32 %v739_v27, %v824_v9  ;;  %v742_v57 = vld [vmem:[#allocation5 + $0x40] sm:$0xff] }
  0x56   :  { %5101 = vmatprep.subr.bf16.mxu0 %v8874_v0  ;;  %9402 = vst [vmem:[#allocation15_spill] sm:$0xff] %v6384_v48 }
  0x57   :  { %9399 = vst [vmem:[#allocation12_spill] sm:$0xff] %v6375_v16  ;;  %9401 = vst [vmem:[#allocation14_spill] sm:$0xff] %v6379_v47  ;;  %5225 = vmatprep.subr.bf16.mxu1 %v6375_v16 }
  0x59   :  { %5103 = vmatpush3.bf16.msra.mxu0 %v6289_v2 }
  0x5a   :  { %5104 = vmatprep.subr.bf16.mxu0 %v8874_v0 }
  0x5c   :  { %4903 = vmatmul.mubr.f32.vlgmr.msra.gmra.mrb[0].mxu0 %v177_v40  ;;  %v251_v40 = vand.u32 4294901760, %v250_v10  ;;  %v6366_v10 = vld [vmem:[#allocation5 + $0x38] sm:$0xff] }
  0x5d   :  { %5106 = vmatpush3.bf16.msra.mxu0 %v5105_v46  ;;  %4937 = vmatprep.mubr.msk.f32.mxu0 %vm6140_vm0, %v8872_v1 }
  0x5e   :  { %5107 = vmatprep.subr.bf16.mxu0 %v8874_v0  ;;  %v5117_v46 = vpack.c.bf16 %v251_v40, %v244_v11  ;;  %v738_v11 = vld [vmem:[#allocation5 + $0x20] sm:$0xff]  ;;  %v822_v40 = vand.u32 4294901760, %v734_v25 }
  0x5f   :  { %v826_v15 = vand.u32 4294901760, %v738_v11 }
  0x61   :  { %5109 = vmatpush3.bf16.msra.mxu0 %v5108_v56  ;;  %v279_v56 = vand.u32 4294901760, %v278_v17  ;;  %v747_v17 = vld [vmem:[#allocation5 + $0x68] sm:$0xff]  ;;  %v6397_v20 = vpack.c.bf16 %v826_v15, %v822_v40  ;;  %v6402_v6 = vsub.f32 %v738_v11, %v826_v15  ;;  %v6424_v15 = vld [vmem:[#allocation5 + $0x70] sm:$0xff] }
  0x62   :  { %5110 = vmatprep.subr.bf16.mxu0 %v8874_v0 }
  0x63   :  { %v5123_v21 = vpack.c.bf16 %v279_v56, %v272_v49  ;;  %v6386_v49 = vld [vmem:[#allocation5 + $0x58] sm:$0xff]  ;;  %v5135_v56 = vpack.c.bf16 %v6257_v44, %v6255_v43  ;;  %9404 = vst [vmem:[#allocation17_spill] sm:$0xff] %v6397_v20  ;;  %9406 = vst [vmem:[#allocation19_spill] sm:$0xff] %v6402_v6  ;;  %5227 = vmatpush1.bf16.msra.mxu1 %v6397_v20  ;;  %v832_v44 = vand.u32 4294901760, %v747_v17 }
  0x65   :  { %5112 = vmatpush3.bf16.msra.mxu0 %v5111_v7  ;;  %v5132_v7 = vpack.c.bf16 %v6253_v42, %v6246_v33  ;;  %v6373_v33 = vld [vmem:[#allocation5 + $0x30] sm:$0xff]  ;;  %v743_v42 = vld [vmem:[#allocation5 + $0x48] sm:$0xff] }
  0x66   :  { %5113 = vmatprep.subr.bf16.mxu0 %v8874_v0  ;;  %v828_v43 = vand.u32 4294901760, %v743_v42 }
  0x68   :  { %v6422_v11 = vsub.f32 %v743_v42, %v828_v43 }
  0x69   :  { %5115 = vmatpush3.bf16.msra.mxu0 %v5114_v30  ;;  %v8869_v30 = vand.u32 4294901760, %v6366_v10 }
  0x6a   :  { %5116 = vmatprep.subr.bf16.mxu0 %v8874_v0  ;;  %9409 = vst [vmem:[#allocation22_spill] sm:$0xff] %v6422_v11 }
  0x6b   :  { %v6395_v19 = vsub.f32 %v6366_v10, %v8869_v30  ;;  %v751_v30 = vld [vmem:[#allocation5 + $0x88] sm:$0xff] }
  0x6d   :  { %5118 = vmatpush3.bf16.msra.mxu0 %v5117_v46  ;;  %v6377_v46 = vsub.f32 %v735_v23, %v820_v8  ;;  %9403 = vst [vmem:[#allocation16_spill] sm:$0xff] %v6395_v19  ;;  %v8882_v23 = vand.u32 4294901760, %v6386_v49  ;;  %v746_v8 = vld [vmem:[#allocation5 + $0x60] sm:$0xff] }
  0x6e   :  { %5119 = vmatprep.subr.bf16.mxu0 %v8874_v0  ;;  %v834_v20 = vand.u32 4294901760, %v746_v8 }
  0x6f   :  { %9400 = vst [vmem:[#allocation13_spill] sm:$0xff] %v6377_v46 }
  0x71   :  { %5121 = vmatpush3.bf16.msra.mxu0 %v5120_v53  ;;  %v6388_v53 = vld [vmem:[#allocation5 + $0x78] sm:$0xff] }
  0x72   :  { %5122 = vmatprep.subr.bf16.mxu0 %v8874_v0  ;;  %v8884_v27 = vand.u32 4294901760, %v6388_v53 }
  0x74   :  { %v6442_v42 = vsub.f32 %v6388_v53, %v8884_v27  ;;  %v6454_v27 = vsub.f32 %v746_v8, %v834_v20  ;;  %v6474_v8 = vld [vmem:[#allocation5 + $0xb0] sm:$0xff] }
  0x75   :  { %5124 = vmatpush3.bf16.msra.mxu0 %v5123_v21  ;;  %v6399_v21 = vsub.f32 %v734_v25, %v822_v40  ;;  %v830_v40 = vand.u32 4294901760, %v742_v57 }
  0x76   :  { %5125 = vmatprep.subr.bf16.mxu0 %v8874_v0  ;;  %9413 = vst [vmem:[#allocation26_spill] sm:$0xff] %v6442_v42  ;;  %9417 = vst [vmem:[#allocation29_spill] sm:$0xff] %v6454_v27  ;;  %v754_v42 = vld [vmem:[#allocation5 + $0xa0] sm:$0xff] }
  0x77   :  { %9405 = vst [vmem:[#allocation18_spill] sm:$0xff] %v6399_v21  ;;  %v6444_v16 = vsub.f32 %v742_v57, %v830_v40 }
  0x79   :  { %5127 = vmatpush3.bf16.msra.mxu0 %v5126_v22  ;;  %v8876_v22 = vand.u32 4294901760, %v6371_v41  ;;  %9414 = vst [vmem:[#allocation27_spill] sm:$0xff] %v6444_v16  ;;  %v5141_v16 = vpack.c.bf16 %v6271_v54, %v6267_v52  ;;  %v842_v54 = vand.u32 4294901760, %v754_v42 }
  0x7a   :  { %5128 = vmatprep.subr.bf16.mxu0 %v8874_v0 }
  0x7b   :  { %v6415_v9 = vsub.f32 %v6371_v41, %v8876_v22  ;;  %v6435_v22 = vsub.f32 %v6386_v49, %v8882_v23  ;;  %v750_v23 = vld [vmem:[#allocation5 + $0x80] sm:$0xff] }
  0x7c   :  { %4938 = vmatmul.mubr.f32.vlgmr.msra.gmra.mrb[0].mxu0 %v6244_v31 }
  0x7d   :  { %5130 = vmatpush3.bf16.msra.mxu0 %v5129_v14  ;;  %4972 = vmatprep.mubr.msk.f32.mxu0 %vm6140_vm0, %v8872_v1  ;;  %v8877_v14 = vand.u32 4294901760, %v6373_v33  ;;  %9407 = vst [vmem:[#allocation20_spill] sm:$0xff] %v6415_v9  ;;  %v6428_v1 = vpack.c.bf16 %v832_v44, %v828_v43  ;;  %9412 = vst [vmem:[#allocation25_spill] sm:$0xff] %v6435_v22  ;;  %v8894_v43 = vand.u32 4294901760, %v6424_v15  ;;  %v9430_v9 = vand.u32 4294901760, %v6474_v8 }
  0x7e   :  { %5131 = vmatprep.subr.bf16.mxu0 %v8874_v0  ;;  %v6452_v22 = vpack.c.bf16 %v834_v20, %v830_v40  ;;  %v8904_v20 = vand.u32 4294901760, %v6447_v51 }
  0x7f   :  { %v6420_v25 = vsub.f32 %v6373_v33, %v8877_v14  ;;  %9410 = vst [vmem:[#allocation23_spill] sm:$0xff] %v6428_v1  ;;  %v6437_v14 = vld [vmem:[#allocation5 + $0x98] sm:$0xff]  ;;  %5229 = vmatprep.subr.bf16.mxu1 %v6428_v1  ;;  %v6467_v1 = vsub.f32 %v6424_v15, %v8894_v43  ;;  %v6520_v6 = vsub.f32 %v6474_v8, %v9430_v9 }
  0x80   :  { %9416 = vst [vmem:[#allocation28_spill] sm:$0xff] %v6452_v22  ;;  %5231 = vmatpush1.bf16.msra.mxu1 %v6452_v22  ;;  %v9423_v43 = vand.u32 4294901760, %v6437_v14  ;;  %v6495_v52 = vsub.f32 %v6447_v51, %v8904_v20  ;;  %v767_v22 = vld [vmem:[#allocation5 + $0x108] sm:$0xff] }
  0x81   :  { %5133 = vmatpush3.bf16.msra.mxu0 %v5132_v7  ;;  %v6410_v7 = vld [vmem:[#allocation5 + $0x50] sm:$0xff]  ;;  %9408 = vst [vmem:[#allocation21_spill] sm:$0xff] %v6420_v25  ;;  %9419 = vst [vmem:[#allocation31_spill] sm:$0xff] %v6467_v1  ;;  %v6507_v25 = vsub.f32 %v754_v42, %v842_v54 }
  0x82   :  { %5134 = vmatprep.subr.bf16.mxu0 %v8874_v0  ;;  %v6430_v0 = vsub.f32 %v747_v17, %v832_v44  ;;  %v8891_v50 = vand.u32 4294901760, %v6410_v7  ;;  %v9415_v17 = vmov 0.0|0.0   ;;  %v836_v44 = vand.u32 4294901760, %v751_v30  ;;  %9425 = vst [vmem:[#allocation36_spill] sm:$0xff] %v6495_v52  ;;  %v771_v52 = vld [vmem:[#allocation5 + $0x128] sm:$0xff]  ;;  %9431 = vst [vmem:[#allocation41_spill] sm:$0xff] %v6520_v6 }
  0x83   :  { %v6484_v1 = vsub.f32 %v6437_v14, %v9423_v43  ;;  %v6498_v43 = vld [vmem:[#allocation5 + $0xf8] sm:$0xff]  ;;  %9428 = vst [vmem:[#allocation39_spill] sm:$0xff] %v6507_v25  ;;  %v770_v6 = vld [vmem:[#allocation5 + $0x120] sm:$0xff] }
  0x84   :  { %9411 = vst [vmem:[#allocation24_spill] sm:$0xff] %v6430_v0  ;;  %v6459_v57 = vsub.f32 %v6410_v7, %v8891_v50  ;;  %v6462_v0 = vld [vmem:[#allocation5 + $0x90] sm:$0xff]  ;;  %v6471_v40 = vsub.f32 %v751_v30, %v836_v44  ;;  %v759_v50 = vld [vmem:[#allocation5 + $0xc8] sm:$0xff]  ;;  %v838_v30 = vand.u32 4294901760, %v750_v23 }
  0x85   :  { %5136 = vmatpush3.bf16.msra.mxu0 %v5135_v56  ;;  %v840_v56 = vand.u32 4294901760, %v755_v24  ;;  %9424 = vst [vmem:[#allocation35_spill] sm:$0xff] %v6484_v1  ;;  %v844_v1 = vand.u32 4294901760, %v759_v50 }
  0x86   :  { %5137 = vmatprep.subr.bf16.mxu0 %v9415_v17  ;;  %9418 = vst [vmem:[#allocation30_spill] sm:$0xff] %v6459_v57  ;;  %9421 = vst [vmem:[#allocation33_spill] sm:$0xff] %v6471_v40  ;;  %v763_v57 = vld [vmem:[#allocation5 + $0xe8] sm:$0xff]  ;;  %v758_v40 = vld [vmem:[#allocation5 + $0xc0] sm:$0xff] }
  0x87   :  { %v6469_v11 = vpack.c.bf16 %v840_v56, %v836_v44  ;;  %v6479_v27 = vsub.f32 %v755_v24, %v840_v56  ;;  %v6486_v44 = vld [vmem:[#allocation5 + $0xd8] sm:$0xff]  ;;  %v8909_v24 = vand.u32 4294901760, %v6462_v0  ;;  %v6500_v56 = vsub.f32 %v750_v23, %v838_v30 }
  0x88   :  { %v8915_v23 = vand.u32 4294901760, %v6486_v44  ;;  %v6524_v42 = vsub.f32 %v759_v50, %v844_v1  ;;  %v852_v50 = vand.u32 4294901760, %v767_v22 }
  0x89   :  { %9420 = vst [vmem:[#allocation32_spill] sm:$0xff] %v6469_v11  ;;  %5139 = vmatpush3.bf16.msra.mxu0 %v5138_v61  ;;  %9422 = vst [vmem:[#allocation34_spill] sm:$0xff] %v6479_v27  ;;  %v5144_v61 = vpack.c.bf16 %v6280_v59, %v6278_v58  ;;  %5233 = vmatprep.subr.bf16.mxu1 %v6469_v11  ;;  %v848_v27 = vand.u32 4294901760, %v763_v57  ;;  %v762_v58 = vld [vmem:[#allocation5 + $0xe0] sm:$0xff]  ;;  %v6503_v59 = vld [vmem:[#allocation5 + $0xd0] sm:$0xff]  ;;  %v6505_v11 = vpack.c.bf16 %v842_v54, %v838_v30 }
  0x8a   :  { %5140 = vmatprep.subr.bf16.mxu0 %v9415_v17  ;;  %9426 = vst [vmem:[#allocation37_spill] sm:$0xff] %v6500_v56  ;;  %v6512_v20 = vsub.f32 %v6462_v0, %v8909_v24  ;;  %v6515_v56 = vld [vmem:[#allocation5 + $0xf0] sm:$0xff]  ;;  %9433 = vst [vmem:[#allocation43_spill] sm:$0xff] %v6524_v42  ;;  %v8922_v24 = vand.u32 4294901760, %v6498_v43  ;;  %v850_v9 = vand.u32 4294901760, %v762_v58  ;;  %v9439_v25 = vand.u32 4294901760, %v6503_v59 }
  0x8b   :  { %9427 = vst [vmem:[#allocation38_spill] sm:$0xff] %v6505_v11  ;;  %v6522_v30 = vpack.c.bf16 %v848_v27, %v844_v1  ;;  %v6526_v54 = vsub.f32 %v763_v57, %v848_v27  ;;  %5235 = vmatpush1.bf16.msra.mxu1 %v6505_v11  ;;  %v856_v57 = vand.u32 4294901760, %v771_v52  ;;  %v5147_v27 = vpack.c.bf16 %v6287_v63, %v6282_v60 }
  0x8c   :  { %9429 = vst [vmem:[#allocation40_spill] sm:$0xff] %v6512_v20  ;;  %v846_v20 = vand.u32 4294901760, %v758_v40  ;;  %v6544_v11 = vsub.f32 %v6498_v43, %v8922_v24  ;;  %v6554_v1 = vsub.f32 %v762_v58, %v850_v9  ;;  %v6559_v21 = vsub.f32 %v6503_v59, %v9439_v25 }
  0x8d   :  { %5142 = vmatpush3.bf16.msra.mxu0 %v5141_v16  ;;  %9432 = vst [vmem:[#allocation42_spill] sm:$0xff] %v6522_v30  ;;  %9434 = vst [vmem:[#allocation44_spill] sm:$0xff] %v6526_v54  ;;  %v6534_v16 = vsub.f32 %v6486_v44, %v8915_v23  ;;  %5237 = vmatprep.subr.bf16.mxu1 %v6522_v30  ;;  %v6539_v54 = vld [vmem:[#allocation5 + $0x118] sm:$0xff]  ;;  %v766_v30 = vld [vmem:[#allocation5 + $0x100] sm:$0xff]  ;;  %v9441_v24 = vand.u32 4294901760, %v6515_v56  ;;  %v6572_v60 = vpack.c.bf16 %v856_v57, %v852_v50 }
  0x8e   :  { %5143 = vmatprep.subr.bf16.mxu0 %v9415_v17  ;;  %9436 = vst [vmem:[#allocation46_spill] sm:$0xff] %v6544_v11  ;;  %v6546_v42 = vpack.c.bf16 %v850_v9, %v846_v20  ;;  %v6548_v23 = vsub.f32 %v758_v40, %v846_v20  ;;  %9440 = vst [vmem:[#allocation49_spill] sm:$0xff] %v6559_v21  ;;  %v6566_v20 = vld [vmem:[#allocation5 + $0x110] sm:$0xff]  ;;  %v6574_v63 = vsub.f32 %v767_v22, %v852_v50 }
  0x8f   :  { %9435 = vst [vmem:[#allocation45_spill] sm:$0xff] %v6534_v16  ;;  %v6550_v16 = vld [vmem:[#allocation5 + $0x138] sm:$0xff]  ;;  %v6564_v40 = vsub.f32 %v6515_v56, %v9441_v24  ;;  %9443 = vst [vmem:[#allocation51_spill] sm:$0xff] %v6572_v60  ;;  %v8929_v25 = vand.u32 4294901760, %v6539_v54  ;;  %v854_v24 = vand.u32 4294901760, %v766_v30  ;;  %v858_v9 = vand.u32 4294901760, %v770_v6 }
  0x90   :  { %9437 = vst [vmem:[#allocation47_spill] sm:$0xff] %v6546_v42  ;;  %9438 = vst [vmem:[#allocation48_spill] sm:$0xff] %v6548_v23  ;;  %v6568_v23 = vld [vmem:[#allocation5 + $0x130] sm:$0xff]  ;;  %5239 = vmatpush1.bf16.msra.mxu1 %v6546_v42  ;;  %v1711_v58 = vand.u32 4294901760, %v6550_v16  ;;  %v1709_v42 = vand.u32 4294901760, %v6566_v20 }
  0x91   :  { %5145 = vmatpush3.bf16.msra.mxu0 %v5144_v61  ;;  %9442 = vst [vmem:[#allocation50_spill] sm:$0xff] %v6564_v40  ;;  %v6576_v61 = vsub.f32 %v771_v52, %v856_v57  ;;  %5241 = vmatprep.subr.bf16.mxu1 %v6572_v60  ;;  %v6584_v40 = vsub.f32 %v6539_v54, %v8929_v25  ;;  %v1713_v22 = vand.u32 4294901760, %v6568_v23 }
  0x92   :  { %5146 = vmatprep.subr.bf16.mxu0 %v9415_v17  ;;  %v5150_v52 = vpack.c.bf16 %v6293_v4, %v6291_v3  ;;  %v6593_v50 = vsub.f32 %v6550_v16, %v1711_v58  ;;  %v6595_v57 = vpack.c.bf16 %v858_v9, %v854_v24  ;;  %v6597_v60 = vsub.f32 %v766_v30, %v854_v24  ;;  %v778_v30 = vld [vmem:[#allocation5 + $0x160] sm:$0xff] }
  0x93   :  { %v6600_v25 = vsub.f32 %v770_v6, %v858_v9  ;;  %v6610_v3 = vsub.f32 %v6568_v23, %v1713_v22  ;;  %v9445_v4 = vmov 0.0   ;;  %v9446_v6 = vand.u32 4294901760, %v6261_v45  ;;  %v780_v23 = vld [vmem:[#allocation5 + $0x170] sm:$0xff] }
  0x94   :  { %9444 = vst [vmem:[#allocation52_spill] sm:$0xff] %v6595_v57  ;;  %5243 = vmatpush1.bf16.msra.mxu1 %v6595_v57  ;;  %v1721_v9 = vand.u32 4294901760, %v780_v23  ;;  %v791_v57 = vld [vmem:[#allocation5 + $0x1c8] sm:$0xff] }
  0x95   :  { %5148 = vmatpush3.bf16.msra.mxu0 %v5147_v27  ;;  %v6605_v27 = vsub.f32 %v6566_v20, %v1709_v42  ;;  %v866_v20 = vand.u32 4294901760, %v778_v30 }
  0x96   :  { %5149 = vmatprep.subr.bf16.mxu0 %v9415_v17 }
  0x99   :  { %5151 = vmatpush3.bf16.msra.mxu0 %v5150_v52 }
  0x9a   :  { %5152 = vmatprep.subr.bf16.mxu0 %v9415_v17 }
  0x9c   :  { %4973 = vmatmul.mubr.f32.vlgmr.msra.gmra.mrb[0].mxu0 %v6261_v45 }
  0x9d   :  { %5154 = vmatpush3.bf16.msra.mxu0 %v6223_v12  ;;  %5007 = vmatprep.mubr.msk.f32.mxu0 %vm6140_vm0, %v9445_v4 }
  0x9e   :  { %5155 = vmatprep.subr.bf16.mxu0 %v9415_v17 }
  0xa1   :  { %5157 = vmatpush3.bf16.msra.mxu0 %v6226_v13 }
  0xa2   :  { %5158 = vmatprep.subr.bf16.mxu0 %v9415_v17 }
  0xa5   :  { %5160 = vmatpush3.bf16.msra.mxu0 %v6230_v18 }
  0xa6   :  { %5161 = vmatprep.subr.bf16.mxu0 %v9415_v17 }
  0xa9   :  { %5163 = vmatpush3.bf16.msra.mxu0 %v6241_v26 }
  0xaa   :  { %5164 = vmatprep.subr.bf16.mxu0 %v9415_v17 }
  0xad   :  { %5166 = vmatpush3.bf16.msra.mxu0 %v6249_v38 }
  0xae   :  { %5167 = vmatprep.subr.bf16.mxu0 %v9415_v17 }
  0xb1   :  { %5169 = vmatpush3.bf16.msra.mxu0 %v6273_v55 }
  0xb2   :  { %5170 = vmatprep.subr.bf16.mxu0 %v9415_v17 }
  0xb5   :  { %5172 = vmatpush3.bf16.msra.mxu0 %v6285_v62 }
  0xb6   :  { %5173 = vmatprep.subr.bf16.mxu0 %v9415_v17 }
  0xb9   :  { %5175 = vmatpush3.bf16.msra.mxu0 %v6289_v2 }
  0xba   :  { %5176 = vmatprep.subr.bf16.mxu0 %v9415_v17 }
  0xbc   :  { %5008 = vmatmul.mubr.f32.vlgmr.msra.gmra.mrb[0].mxu0 %v9446_v6  ;;  %v783_v6 = vld [vmem:[#allocation5 + $0x188] sm:$0xff] }
  0xbd   :  { %5178 = vmatpush3.bf16.msra.mxu0 %v6314_v28  ;;  %5042 = vmatprep.mubr.msk.f32.mxu0 %vm6140_vm0, %v9445_v4 }
  0xbe   :  { %5179 = vmatprep.subr.bf16.mxu0 %v9415_v17 }
  0xc1   :  { %5181 = vmatpush3.bf16.msra.mxu0 %v6316_v29  ;;  %v9457_v29 = vand.u32 4294901760, %v6424_v15  ;;  %v775_v15 = vld [vmem:[#allocation5 + $0x148] sm:$0xff] }
  0xc2   :  { %5182 = vmatprep.subr.bf16.mxu0 %v9415_v17 }
  0xc5   :  { %5184 = vmatpush3.bf16.msra.mxu0 %v6320_v32 }
  0xc6   :  { %5185 = vmatprep.subr.bf16.mxu0 %v9415_v17 }
  0xc9   :  { %5187 = vmatpush3.bf16.msra.mxu0 %v6322_v34  ;;  %v9459_v34 = vand.u32 4294901760, %v6437_v14 }
  0xca   :  { %5188 = vmatprep.subr.bf16.mxu0 %v9415_v17 }
  0xcd   :  { %5190 = vmatpush3.bf16.msra.mxu0 %v6324_v35  ;;  %v9460_v35 = vand.u32 4294901760, %v6447_v51  ;;  %v779_v51 = vld [vmem:[#allocation5 + $0x168] sm:$0xff] }
  0xce   :  { %5191 = vmatprep.subr.bf16.mxu0 %v9415_v17 }
  0xd1   :  { %5193 = vmatpush3.bf16.msra.mxu0 %v6327_v36  ;;  %v6704_v36 = vpack.c.bf16 %v9460_v35, %v9459_v34  ;;  %v786_v34 = vld [vmem:[#allocation5 + $0x1a0] sm:$0xff] }
  0xd2   :  { %5194 = vmatprep.subr.bf16.mxu0 %v9415_v17 }
  0xd3   :  { %9461 = vst [vmem:[#allocation57_spill] sm:$0xff] %v6704_v36 }
  0xd5   :  { %5196 = vmatpush3.bf16.msra.mxu0 %v6329_v37  ;;  %v9463_v37 = vand.u32 4294901760, %v6474_v8  ;;  %v860_v8 = vand.u32 4294901760, %v775_v15 }
  0xd6   :  { %5197 = vmatprep.subr.bf16.mxu0 %v9415_v17 }
  0xd9   :  { %5199 = vmatpush3.bf16.msra.mxu0 %v6331_v39 }
  0xda   :  { %5200 = vmatprep.subr.bf16.mxu0 %v9415_v17 }
  0xdc   :  { %5043 = vmatmul.mubr.f32.vlgmr.msra.gmra.mrb[0].mxu0 %v6244_v31 }
  0xdd   :  { %5202 = vmatpush3.bf16.msra.mxu0 %v6223_v12  ;;  %5077 = vmatprep.mubr.msk.f32.mxu0 %vm6140_vm0, %v9445_v4  ;;  %v9447_v12 = vand.u32 4294901760, %v6360_v5  ;;  %v9465_v5 = vand.u32 4294901760, %v6486_v44  ;;  %v864_v44 = vand.u32 4294901760, %v779_v51 }
  0xde   :  { %5203 = vmatprep.subr.bf16.mxu0 %v9415_v17 }
  0xe1   :  { %5205 = vmatpush3.bf16.msra.mxu0 %v6226_v13  ;;  %v9448_v13 = vand.u32 4294901760, %v6366_v10  ;;  %v9466_v10 = vand.u32 4294901760, %v6498_v43  ;;  %v781_v43 = vld [vmem:[#allocation5 + $0x178] sm:$0xff] }
  0xe2   :  { %5206 = vmatprep.subr.bf16.mxu0 %v9415_v17 }
  0xe5   :  { %5208 = vmatpush3.bf16.msra.mxu0 %v6230_v18  ;;  %v6674_v18 = vpack.c.bf16 %v9448_v13, %v9447_v12  ;;  %v787_v12 = vld [vmem:[#allocation5 + $0x1a8] sm:$0xff]  ;;  %v785_v13 = vld [vmem:[#allocation5 + $0x198] sm:$0xff] }
  0xe6   :  { %5209 = vmatprep.subr.bf16.mxu0 %v9415_v17 }
  0xe7   :  { %9449 = vst [vmem:[#allocation53_spill] sm:$0xff] %v6674_v18 }
  0xe9   :  { %5211 = vmatpush3.bf16.msra.mxu0 %v6241_v26  ;;  %v9450_v26 = vand.u32 4294901760, %v6371_v41  ;;  %v6718_v41 = vpack.c.bf16 %v9466_v10, %v9465_v5  ;;  %v784_v5 = vld [vmem:[#allocation5 + $0x190] sm:$0xff] }
  0xea   :  { %5212 = vmatprep.subr.bf16.mxu0 %v9415_v17  ;;  %v788_v10 = vld [vmem:[#allocation5 + $0x1b0] sm:$0xff] }
  0xeb   :  { %9467 = vst [vmem:[#allocation59_spill] sm:$0xff] %v6718_v41 }
  0xed   :  { %5214 = vmatpush3.bf16.msra.mxu0 %v6249_v38  ;;  %v9451_v38 = vand.u32 4294901760, %v6373_v33  ;;  %v9468_v33 = vand.u32 4294901760, %v6503_v59  ;;  %v774_v59 = vld [vmem:[#allocation5 + $0x140] sm:$0xff] }
  0xee   :  { %5215 = vmatprep.subr.bf16.mxu0 %v9415_v17  ;;  %v862_v16 = vand.u32 4294901760, %v774_v59 }
  0xef   :  { %v6681_v45 = vpack.c.bf16 %v9451_v38, %v9450_v26  ;;  %v868_v38 = vand.u32 4294901760, %v783_v6 }
  0xf0   :  { %v6747_v52 = vpack.c.bf16 %v866_v20, %v862_v16 }
  0xf1   :  { %5217 = vmatpush3.bf16.msra.mxu0 %v6273_v55  ;;  %9452 = vst [vmem:[#allocation54_spill] sm:$0xff] %v6681_v45  ;;  %v9453_v55 = vand.u32 4294901760, %v6386_v49  ;;  %v9469_v49 = vand.u32 4294901760, %v6515_v56 }
  0xf2   :  { %5218 = vmatprep.subr.bf16.mxu0 %v9415_v17  ;;  %9476 = vst [vmem:[#allocation65_spill] sm:$0xff] %v6747_v52 }
  0xf5   :  { %5220 = vmatpush3.bf16.msra.mxu0 %v6285_v62  ;;  %v9454_v62 = vand.u32 4294901760, %v6388_v53  ;;  %v6725_v53 = vpack.c.bf16 %v9469_v49, %v9468_v33  ;;  %v1725_v49 = vand.u32 4294901760, %v784_v5 }
  0xf6   :  { %5221 = vmatprep.subr.bf16.mxu0 %v9415_v17  ;;  %v777_v17 = vld [vmem:[#allocation5 + $0x158] sm:$0xff] }
  0xf7   :  { %v6688_v28 = vpack.c.bf16 %v9454_v62, %v9453_v55  ;;  %9470 = vst [vmem:[#allocation60_spill] sm:$0xff] %v6725_v53  ;;  %v1715_v56 = vand.u32 4294901760, %v777_v17  ;;  %v872_v55 = vand.u32 4294901760, %v787_v12  ;;  %v789_v62 = vld [vmem:[#allocation5 + $0x1b8] sm:$0xff] }
  0xf8   :  { %v1727_v35 = vand.u32 4294901760, %v789_v62 }
  0xf9   :  { %5223 = vmatpush3.bf16.msra.mxu0 %v6289_v2  ;;  %9455 = vst [vmem:[#allocation55_spill] sm:$0xff] %v6688_v28  ;;  %v9456_v2 = vand.u32 4294901760, %v6410_v7  ;;  %v6739_v7 = vpack.c.bf16 %v1713_v22, %v1709_v42  ;;  %v6743_v42 = vpack.c.bf16 %v864_v44, %v860_v8  ;;  %v6755_v33 = vpack.c.bf16 %v872_v55, %v868_v38 }
  0xfa   :  { %5417 = vmatprep.subr.bf16.mxu0 %v6674_v18  ;;  %v6775_v18 = vsub.f32 %v778_v30, %v866_v20 }
  0xfb   :  { %v6696_v32 = vpack.c.bf16 %v9457_v29, %v9456_v2  ;;  %9473 = vst [vmem:[#allocation62_spill] sm:$0xff] %v6739_v7  ;;  %9474 = vst [vmem:[#allocation63_spill] sm:$0xff] %v6743_v42  ;;  %5245 = vmatprep.subr.bf16.mxu1 %v6743_v42  ;;  %v1723_v2 = vand.u32 4294901760, %v785_v13  ;;  %v782_v29 = vld [vmem:[#allocation5 + $0x180] sm:$0xff] }
  0xfc   :  { %5078 = vmatmul.mubr.f32.vlgmr.msra.gmra.mrb[0].mxu0 %v6244_v31  ;;  %v9462_v31 = vand.u32 4294901760, %v6462_v0  ;;  %v9471_v0 = vand.u32 4294901760, %v6539_v54  ;;  %v1719_v54 = vand.u32 4294901760, %v781_v43  ;;  %5247 = vmatpush1.bf16.msra.mxu1 %v6747_v52  ;;  %9478 = vst [vmem:[#allocation67_spill] sm:$0xff] %v6755_v33 }
  0xfd   :  { %5419 = vmatpush1.bf16.msra.mxu0 %v6681_v45  ;;  %9458 = vst [vmem:[#allocation56_spill] sm:$0xff] %v6696_v32  ;;  %1771 = vmatprep.mubr.f32.mxu0 %v9445_v4  ;;  %v6757_v42 = vpack.c.bf16 %v1727_v35, %v1723_v2  ;;  %v6773_v45 = vsub.f32 %v774_v59, %v862_v16  ;;  %v792_v59 = vld [vmem:[#allocation5 + $0x1d0] sm:$0xff] }
  0xfe   :  { %5421 = vmatprep.subr.bf16.mxu0 %v6688_v28  ;;  %v6711_v39 = vpack.c.bf16 %v9463_v37, %v9462_v31  ;;  %v6732_v14 = vpack.c.bf16 %v1711_v58, %v9471_v0  ;;  %v776_v58 = vld [vmem:[#allocation5 + $0x150] sm:$0xff]  ;;  %v6745_v22 = vpack.c.bf16 %v1719_v54, %v1715_v56  ;;  %v870_v31 = vand.u32 4294901760, %v782_v29  ;;  %5249 = vmatprep.subr.bf16.mxu1 %v6755_v33 }
  0xff   :  { %v1717_v24 = vand.u32 4294901760, %v776_v58  ;;  %v874_v37 = vand.u32 4294901760, %v786_v34  ;;  %v1729_v0 = vand.u32 4294901760, %v788_v10  ;;  %9479 = vst [vmem:[#allocation68_spill] sm:$0xff] %v6757_v42  ;;  %v6770_v28 = vsub.f32 %v781_v43, %v1719_v54  ;;  %v790_v43 = vld [vmem:[#allocation5 + $0x1c0] sm:$0xff] }
 0x100   :  { %9464 = vst [vmem:[#allocation58_spill] sm:$0xff] %v6711_v39  ;;  %9472 = vst [vmem:[#allocation61_spill] sm:$0xff] %v6732_v14  ;;  %v6779_v4 = vsub.f32 %v780_v23, %v1721_v9  ;;  %v6791_v30 = vsub.f32 %v782_v29, %v870_v31  ;;  %v6795_v16 = vsub.f32 %v784_v5, %v1725_v49  ;;  %v8970_v5 = vand.u32 4294901760, %v6395_v19 }
 0x101   :  { %5423 = vmatpush1.bf16.msra.mxu0 %v6696_v32  ;;  %9475 = vst [vmem:[#allocation64_spill] sm:$0xff] %v6745_v22  ;;  %v6750_v26 = vpack.c.bf16 %v1721_v9, %v1717_v24  ;;  %v6762_v52 = vpack.c.bf16 %v1729_v0, %v1725_v49  ;;  %v6768_v32 = vsub.f32 %v777_v17, %v1715_v56  ;;  %v794_v56 = vld [vmem:[#allocation5 + $0x1e0] sm:$0xff] }
 0x102   :  { %5425 = vmatprep.subr.bf16.mxu0 %v6704_v36  ;;  %v6764_v36 = vsub.f32 %v775_v15, %v860_v8  ;;  %v6777_v33 = vsub.f32 %v776_v58, %v1717_v24  ;;  %v797_v15 = vld [vmem:[#allocation5 + $0x1f8] sm:$0xff]  ;;  %v6782_v8 = vsub.f32 %v783_v6, %v868_v38  ;;  %v6786_v17 = vsub.f32 %v785_v13, %v1723_v2  ;;  %v796_v58 = vld [vmem:[#allocation5 + $0x1f0] sm:$0xff] }
 0x103   :  { %9477 = vst [vmem:[#allocation66_spill] sm:$0xff] %v6750_v26  ;;  %9481 = vst [vmem:[#allocation70_spill] sm:$0xff] %v6762_v52  ;;  %v6793_v54 = vsub.f32 %v786_v34, %v874_v37  ;;  %v6797_v20 = vsub.f32 %v788_v10, %v1729_v0  ;;  %v1735_v6 = vand.u32 4294901760, %v797_v15  ;;  %v878_v13 = vand.u32 4294901760, %v790_v43  ;;  %v9500_v10 = vld [vmem:[#allocation18_spill] sm:$0xff]  ;;  %v9501_v0 = vld [vmem:[#allocation19_spill] sm:$0xff] }
 0x104   :  { %9482 = vst [vmem:[#allocation71_spill] sm:$0xff] %v6777_v33  ;;  %9483 = vst [vmem:[#allocation72_spill] sm:$0xff] %v6782_v8  ;;  %v882_v38 = vand.u32 4294901760, %v794_v56  ;;  %v1737_v29 = vand.u32 4294901760, %v796_v58  ;;  %v8964_v34 = vand.u32 4294901760, %v6377_v46  ;;  %v8977_v49 = vand.u32 4294901760, %v9500_v10 }
 0x105   :  { %5427 = vmatpush1.bf16.msra.mxu0 %v6711_v39  ;;  %9484 = vst [vmem:[#allocation73_spill] sm:$0xff] %v6791_v30  ;;  %9485 = vst [vmem:[#allocation74_spill] sm:$0xff] %v6793_v54  ;;  %v6810_v2 = vsub.f32 %v797_v15, %v1735_v6  ;;  %v8982_v15 = vand.u32 4294901760, %v9501_v0 }
 0x106   :  { %5429 = vmatprep.subr.bf16.mxu0 %v6718_v41  ;;  %9486 = vst [vmem:[#allocation75_spill] sm:$0xff] %v6795_v16  ;;  %9487 = vst [vmem:[#allocation76_spill] sm:$0xff] %v6797_v20 }
 0x107   :  { %9493 = vst [vmem:[#allocation82_spill] sm:$0xff] %v6810_v2 }
 0x109   :  { %5431 = vmatpush1.bf16.msra.mxu0 %v6725_v53  ;;  %v876_v53 = vand.u32 4294901760, %v791_v57 }
 0x10a   :  { %5433 = vmatprep.subr.bf16.mxu0 %v6732_v14  ;;  %v795_v14 = vld [vmem:[#allocation5 + $0x1e8] sm:$0xff] }
 0x10b   :  { %v880_v41 = vand.u32 4294901760, %v795_v14  ;;  %v6801_v24 = vsub.f32 %v791_v57, %v876_v53  ;;  %v6815_v57 = vsub.f32 %v790_v43, %v878_v13 }
 0x10d   :  { %5435 = vmatpush1.bf16.msra.mxu0 %v6739_v7  ;;  %v6759_v7 = vpack.c.bf16 %v874_v37, %v870_v31  ;;  %v6799_v23 = vpack.c.bf16 %v880_v41, %v876_v53  ;;  %9489 = vst [vmem:[#allocation78_spill] sm:$0xff] %v6801_v24  ;;  %v6803_v9 = vsub.f32 %v795_v14, %v880_v41  ;;  %9495 = vst [vmem:[#allocation84_spill] sm:$0xff] %v6815_v57 }
 0x10e   :  { %5437 = vmatprep.subr.bf16.mxu0 %v6745_v22  ;;  %v793_v22 = vld [vmem:[#allocation5 + $0x1d8] sm:$0xff]  ;;  %v6817_v41 = vsub.f32 %v794_v56, %v882_v38  ;;  %v8963_v31 = vand.u32 4294901760, %v6379_v47  ;;  %v8965_v37 = vand.u32 4294901760, %v6384_v48 }
 0x10f   :  { %9480 = vst [vmem:[#allocation69_spill] sm:$0xff] %v6759_v7  ;;  %v1731_v39 = vand.u32 4294901760, %v793_v22  ;;  %5251 = vmatpush1.bf16.msra.mxu1 %v6759_v7  ;;  %9488 = vst [vmem:[#allocation77_spill] sm:$0xff] %v6799_v23 }
 0x110   :  { %9490 = vst [vmem:[#allocation79_spill] sm:$0xff] %v6803_v9  ;;  %5253 = vmatprep.subr.bf16.mxu1 %v6799_v23  ;;  %9496 = vst [vmem:[#allocation85_spill] sm:$0xff] %v6817_v41  ;;  %v943_v56 = vsub.f32 %v6379_v47, %v8963_v31  ;;  %v9565_v47 = vld [vmem:[#allocation35_spill] sm:$0xff] }
 0x111   :  { %5439 = vmatpush1.bf16.msra.mxu0 %v6750_v26  ;;  %v6766_v26 = vsub.f32 %v779_v51, %v864_v44  ;;  %v6784_v51 = vsub.f32 %v787_v12, %v872_v55  ;;  %v6788_v44 = vsub.f32 %v789_v62, %v1727_v35  ;;  %v6805_v12 = vsub.f32 %v793_v22, %v1731_v39 }
 0x112   :  { %5441 = vmatprep.subr.bf16.mxu0 %v6757_v42  ;;  %v1733_v55 = vand.u32 4294901760, %v792_v59  ;;  %v6808_v62 = vpack.c.bf16 %v1735_v6, %v1731_v39  ;;  %v6813_v35 = vpack.c.bf16 %v882_v38, %v878_v13  ;;  %v6824_v22 = vsub.f32 %v796_v58, %v1737_v29  ;;  %v9503_v6 = vld [vmem:[#allocation21_spill] sm:$0xff] }
 0x113   :  { %9491 = vst [vmem:[#allocation80_spill] sm:$0xff] %v6805_v12  ;;  %v931_v39 = vsub.f32 %v6377_v46, %v8964_v34  ;;  %v8987_v13 = vand.u32 4294901760, %v9503_v6  ;;  %v1786_v38 = vsub.f32 %v6384_v48, %v8965_v37  ;;  %v944_v31 = vand.u32 4294901760, %v943_v56  ;;  %v9563_v48 = vld [vmem:[#allocation31_spill] sm:$0xff] }
 0x114   :  { %9492 = vst [vmem:[#allocation81_spill] sm:$0xff] %v6808_v62  ;;  %9494 = vst [vmem:[#allocation83_spill] sm:$0xff] %v6813_v35  ;;  %v6819_v53 = vsub.f32 %v792_v59, %v1733_v55  ;;  %v6822_v14 = vpack.c.bf16 %v1737_v29, %v1733_v55  ;;  %5255 = vmatpush1.bf16.msra.mxu1 %v6813_v35  ;;  %v9502_v59 = vld [vmem:[#allocation20_spill] sm:$0xff]  ;;  %v1798_v55 = vsub.f32 %v6395_v19, %v8970_v5 }
 0x115   :  { %5443 = vmatpush1.bf16.msra.mxu0 %v6762_v52  ;;  %9499 = vst [vmem:[#allocation88_spill] sm:$0xff] %v6824_v22  ;;  %v932_v43 = vand.u32 4294901760, %v931_v39  ;;  %v8984_v58 = vand.u32 4294901760, %v9502_v59  ;;  %v937_v29 = vsub.f32 %v9500_v10, %v8977_v49  ;;  %v949_v39 = vsub.f32 %v9501_v0, %v8982_v15  ;;  %v9507_v10 = vld [vmem:[#allocation25_spill] sm:$0xff] }
 0x116   :  { %9497 = vst [vmem:[#allocation86_spill] sm:$0xff] %v6819_v53  ;;  %5445 = vmatprep.subr.bf16.mxu0 %v6808_v62  ;;  %9498 = vst [vmem:[#allocation87_spill] sm:$0xff] %v6822_v14  ;;  %v1804_v37 = vsub.f32 %v9503_v6, %v8987_v13  ;;  %v1787_v5 = vand.u32 4294901760, %v1786_v38  ;;  %v1799_v62 = vand.u32 4294901760, %v1798_v55  ;;  %v8991_v13 = vand.u32 4294901760, %v9507_v10  ;;  %v9509_v55 = vld [vmem:[#allocation26_spill] sm:$0xff] }
 0x117   :  { %v1792_v34 = vsub.f32 %v9502_v59, %v8984_v58  ;;  %v938_v23 = vand.u32 4294901760, %v937_v29  ;;  %v950_v52 = vand.u32 4294901760, %v949_v39  ;;  %v5256_v49 = vpack.c.bf16 %v944_v31, %v932_v43  ;;  %v9506_v58 = vld [vmem:[#allocation24_spill] sm:$0xff]  ;;  %v9510_v31 = vld [vmem:[#allocation27_spill] sm:$0xff]  ;;  %v9514_v39 = vld [vmem:[#allocation33_spill] sm:$0xff] }
 0x118   :  { %v1805_v42 = vand.u32 4294901760, %v1804_v37  ;;  %v5448_v15 = vpack.c.bf16 %v1799_v62, %v1787_v5  ;;  %v8989_v59 = vand.u32 4294901760, %v9506_v58  ;;  %v8992_v29 = vand.u32 4294901760, %v9509_v55  ;;  %v9512_v5 = vld [vmem:[#allocation30_spill] sm:$0xff] }
 0x119   :  { %5447 = vmatpush1.bf16.msra.mxu0 %v6822_v14  ;;  %v9504_v14 = vld [vmem:[#allocation22_spill] sm:$0xff]  ;;  %v1793_v7 = vand.u32 4294901760, %v1792_v34  ;;  %v6863_v0 = vpack.c.bf16 %v950_v52, %v938_v23  ;;  %5257 = vmatprep.subr.bf16.mxu1 %v5256_v49  ;;  %v8993_v34 = vand.u32 4294901760, %v9510_v31  ;;  %v1810_v52 = vsub.f32 %v9507_v10, %v8991_v13  ;;  %v9511_v23 = vld [vmem:[#allocation29_spill] sm:$0xff] }
 0x11a   :  { %v8990_v35 = vand.u32 4294901760, %v9504_v14  ;;  %5449 = vmatprep.subr.bf16.mxu0 %v5448_v15  ;;  %v967_v37 = vsub.f32 %v9506_v58, %v8989_v59  ;;  %v8997_v62 = vand.u32 4294901760, %v9511_v23  ;;  %v9000_v49 = vand.u32 4294901760, %v9512_v5  ;;  %v9513_v15 = vld [vmem:[#allocation31_spill] sm:$0xff]  ;;  %v9516_v10 = vld [vmem:[#allocation34_spill] sm:$0xff] }
 0x11b   :  { %9505 = vst [vmem:[#allocation89_spill] sm:$0xff] %v6863_v0  ;;  %v6867_v6 = vpack.c.bf16 %v1805_v42, %v1793_v7  ;;  %v1822_v7 = vsub.f32 %v9509_v55, %v8992_v29  ;;  %v961_v42 = vsub.f32 %v9510_v31, %v8993_v34  ;;  %v9002_v43 = vand.u32 4294901760, %v9513_v15 }
 0x11c   :  { %v955_v56 = vsub.f32 %v9504_v14, %v8990_v35  ;;  %v968_v59 = vand.u32 4294901760, %v967_v37  ;;  %v1811_v35 = vand.u32 4294901760, %v1810_v52  ;;  %v973_v13 = vsub.f32 %v9511_v23, %v8997_v62  ;;  %v9569_v14 = vld [vmem:[#allocation40_spill] sm:$0xff] }
 0x11d   :  { %9508 = vst [vmem:[#allocation90_spill] sm:$0xff] %v6867_v6  ;;  %v1816_v6 = vsub.f32 %v9512_v5, %v9000_v49  ;;  %v1823_v0 = vand.u32 4294901760, %v1822_v7  ;;  %v962_v29 = vand.u32 4294901760, %v961_v42  ;;  %v1828_v34 = vsub.f32 %v9513_v15, %v9002_v43  ;;  %v9518_v7 = vld [vmem:[#allocation35_spill] sm:$0xff]  ;;  %v9520_v15 = vld [vmem:[#allocation36_spill] sm:$0xff] }
 0x11e   :  { %v956_v38 = vand.u32 4294901760, %v955_v56  ;;  %v9004_v56 = vand.u32 4294901760, %v9514_v39  ;;  %v974_v52 = vand.u32 4294901760, %v973_v13  ;;  %v9005_v62 = vand.u32 4294901760, %v9516_v10 }
 0x11f   :  { %v1817_v55 = vand.u32 4294901760, %v1816_v6  ;;  %v6902_v23 = vpack.c.bf16 %v1823_v0, %v1811_v35  ;;  %v1829_v58 = vand.u32 4294901760, %v1828_v34  ;;  %v9006_v42 = vand.u32 4294901760, %v9518_v7  ;;  %v9523_v0 = vld [vmem:[#allocation39_spill] sm:$0xff] }
 0x120   :  { %v979_v31 = vsub.f32 %v9514_v39, %v9004_v56  ;;  %v6899_v37 = vpack.c.bf16 %v968_v59, %v956_v38  ;;  %v6905_v5 = vpack.c.bf16 %v974_v52, %v962_v29  ;;  %v991_v43 = vsub.f32 %v9516_v10, %v9005_v62  ;;  %v9521_v59 = vld [vmem:[#allocation37_spill] sm:$0xff] }
 0x121   :  { %9517 = vst [vmem:[#allocation91_spill] sm:$0xff] %v6902_v23  ;;  %v9007_v56 = vand.u32 4294901760, %v9520_v15  ;;  %v9009_v38 = vand.u32 4294901760, %v9521_v59  ;;  %v6912_v13 = vpack.c.bf16 %v1829_v58, %v1817_v55  ;;  %v1834_v35 = vsub.f32 %v9518_v7, %v9006_v42 }
 0x122   :  { %9515 = vst [vmem:[#allocation33_spill] sm:$0xff] %v6899_v37  ;;  %v980_v49 = vand.u32 4294901760, %v979_v31  ;;  %9519 = vst [vmem:[#allocation92_spill] sm:$0xff] %v6905_v5  ;;  %v9011_v6 = vand.u32 4294901760, %v9523_v0  ;;  %v9524_v31 = vld [vmem:[#allocation40_spill] sm:$0xff]  ;;  %v992_v29 = vand.u32 4294901760, %v991_v43 }
 0x123   :  { %9522 = vst [vmem:[#allocation93_spill] sm:$0xff] %v6912_v13  ;;  %v9015_v34 = vand.u32 4294901760, %v9524_v31  ;;  %v1846_v52 = vsub.f32 %v9520_v15, %v9007_v56  ;;  %v985_v62 = vsub.f32 %v9521_v59, %v9009_v38  ;;  %v9525_v5 = vld [vmem:[#allocation41_spill] sm:$0xff]  ;;  %v1835_v55 = vand.u32 4294901760, %v1834_v35  ;;  %v9526_v43 = vld [vmem:[#allocation43_spill] sm:$0xff] }
 0x124   :  { %v9017_v58 = vand.u32 4294901760, %v9525_v5  ;;  %v997_v42 = vsub.f32 %v9523_v0, %v9011_v6  ;;  %v9019_v23 = vand.u32 4294901760, %v9526_v43  ;;  %v6933_v37 = vpack.c.bf16 %v992_v29, %v980_v49  ;;  %v9528_v0 = vld [vmem:[#allocation44_spill] sm:$0xff] }
 0x125   :  { %v1840_v13 = vsub.f32 %v9524_v31, %v9015_v34  ;;  %v1847_v56 = vand.u32 4294901760, %v1846_v52  ;;  %v986_v15 = vand.u32 4294901760, %v985_v62  ;;  %v9018_v7 = vand.u32 4294901760, %v9528_v0  ;;  %v9530_v31 = vld [vmem:[#allocation45_spill] sm:$0xff] }
 0x126   :  { %9527 = vst [vmem:[#allocation41_spill] sm:$0xff] %v6933_v37  ;;  %v1852_v38 = vsub.f32 %v9525_v5, %v9017_v58  ;;  %v998_v59 = vand.u32 4294901760, %v997_v42  ;;  %v1003_v6 = vsub.f32 %v9526_v43, %v9019_v23  ;;  %v9020_v49 = vand.u32 4294901760, %v9530_v31 }
 0x127   :  { %v1841_v35 = vand.u32 4294901760, %v1840_v13  ;;  %v6942_v10 = vpack.c.bf16 %v1847_v56, %v1835_v55  ;;  %v9021_v29 = vand.u32 4294901760, %v6544_v11  ;;  %v1015_v42 = vsub.f32 %v9528_v0, %v9018_v7  ;;  %v9532_v13 = vld [vmem:[#allocation48_spill] sm:$0xff]  ;;  %v9534_v7 = vld [vmem:[#allocation50_spill] sm:$0xff] }
 0x128   :  { %v1853_v34 = vand.u32 4294901760, %v1852_v38  ;;  %v6946_v62 = vpack.c.bf16 %v998_v59, %v986_v15  ;;  %v1004_v52 = vand.u32 4294901760, %v1003_v6  ;;  %v9022_v58 = vand.u32 4294901760, %v9532_v13 }
 0x129   :  { %9529 = vst [vmem:[#allocation43_spill] sm:$0xff] %v6942_v10  ;;  %v1858_v56 = vsub.f32 %v9530_v31, %v9020_v49  ;;  %v1870_v38 = vsub.f32 %v6544_v11, %v9021_v29  ;;  %v9023_v15 = vand.u32 4294901760, %v6554_v1  ;;  %v1016_v59 = vand.u32 4294901760, %v1015_v42 }
 0x12a   :  { %9531 = vst [vmem:[#allocation44_spill] sm:$0xff] %v6946_v62  ;;  %v6952_v37 = vpack.c.bf16 %v1853_v34, %v1841_v35  ;;  %v1009_v6 = vsub.f32 %v9532_v13, %v9022_v58  ;;  %v9024_v55 = vand.u32 4294901760, %v6559_v21  ;;  %v9030_v34 = vand.u32 4294901760, %v9534_v7 }
 0x12b   :  { %v1859_v35 = vand.u32 4294901760, %v1858_v56  ;;  %v1871_v23 = vand.u32 4294901760, %v1870_v38  ;;  %v1021_v49 = vsub.f32 %v6554_v1, %v9023_v15  ;;  %v6970_v29 = vpack.c.bf16 %v1016_v59, %v1004_v52 }
 0x12c   :  { %9533 = vst [vmem:[#allocation45_spill] sm:$0xff] %v6952_v37  ;;  %v9028_v37 = vand.u32 4294901760, %v6574_v63  ;;  %v1010_v62 = vand.u32 4294901760, %v1009_v6  ;;  %v1864_v42 = vsub.f32 %v6559_v21, %v9024_v55  ;;  %v1876_v58 = vsub.f32 %v9534_v7, %v9030_v34 }
 0x12d   :  { %9535 = vst [vmem:[#allocation48_spill] sm:$0xff] %v6970_v29  ;;  %v6978_v10 = vpack.c.bf16 %v1871_v23, %v1859_v35  ;;  %v1022_v56 = vand.u32 4294901760, %v1021_v49  ;;  %v9027_v15 = vand.u32 4294901760, %v6576_v61  ;;  %v9029_v6 = vand.u32 4294901760, %v6584_v40 }
 0x12e   :  { %v1027_v38 = vsub.f32 %v6574_v63, %v9028_v37  ;;  %v1865_v52 = vand.u32 4294901760, %v1864_v42  ;;  %v1877_v59 = vand.u32 4294901760, %v1876_v58  ;;  %v9031_v29 = vand.u32 4294901760, %v6593_v50 }
 0x12f   :  { %9536 = vst [vmem:[#allocation50_spill] sm:$0xff] %v6978_v10  ;;  %v6986_v55 = vpack.c.bf16 %v1022_v56, %v1010_v62  ;;  %v1039_v23 = vsub.f32 %v6576_v61, %v9027_v15  ;;  %v9032_v49 = vand.u32 4294901760, %v6597_v60  ;;  %v1882_v42 = vsub.f32 %v6584_v40, %v9029_v6 }
 0x130   :  { %v1028_v21 = vand.u32 4294901760, %v1027_v38  ;;  %v6992_v35 = vpack.c.bf16 %v1877_v59, %v1865_v52  ;;  %v1894_v58 = vsub.f32 %v6593_v50, %v9031_v29  ;;  %v9033_v62 = vand.u32 4294901760, %v6600_v25 }
 0x131   :  { %9537 = vst [vmem:[#allocation94_spill] sm:$0xff] %v6986_v55  ;;  %v1040_v56 = vand.u32 4294901760, %v1039_v23  ;;  %v1033_v38 = vsub.f32 %v6597_v60, %v9032_v49  ;;  %v9034_v15 = vand.u32 4294901760, %v6605_v27  ;;  %v9038_v52 = vand.u32 4294901760, %v6610_v3 }
 0x132   :  { %9538 = vst [vmem:[#allocation95_spill] sm:$0xff] %v6992_v35  ;;  %v1883_v59 = vand.u32 4294901760, %v1882_v42  ;;  %v1895_v37 = vand.u32 4294901760, %v1894_v58  ;;  %v1045_v6 = vsub.f32 %v6600_v25, %v9033_v62  ;;  %v9036_v34 = vand.u32 4294901760, %v6764_v36 }
 0x133   :  { %v7010_v29 = vpack.c.bf16 %v1040_v56, %v1028_v21  ;;  %v1034_v35 = vand.u32 4294901760, %v1033_v38  ;;  %v1888_v23 = vsub.f32 %v6605_v27, %v9034_v15  ;;  %v1900_v49 = vsub.f32 %v6610_v3, %v9038_v52 }
 0x134   :  { %v7018_v55 = vpack.c.bf16 %v1895_v37, %v1883_v59  ;;  %v1046_v42 = vand.u32 4294901760, %v1045_v6  ;;  %v1051_v58 = vsub.f32 %v6764_v36, %v9036_v34  ;;  %v9035_v62 = vand.u32 4294901760, %v6766_v26 }
 0x135   :  { %9539 = vst [vmem:[#allocation96_spill] sm:$0xff] %v7010_v29  ;;  %v1889_v21 = vand.u32 4294901760, %v1888_v23  ;;  %v1901_v56 = vand.u32 4294901760, %v1900_v49  ;;  %v9037_v38 = vand.u32 4294901760, %v6768_v32  ;;  %v9039_v29 = vand.u32 4294901760, %v6770_v28 }
 0x136   :  { %9540 = vst [vmem:[#allocation97_spill] sm:$0xff] %v7018_v55  ;;  %v7026_v15 = vpack.c.bf16 %v1046_v42, %v1034_v35  ;;  %v1052_v10 = vand.u32 4294901760, %v1051_v58  ;;  %v1063_v37 = vsub.f32 %v6766_v26, %v9035_v62  ;;  %v9040_v6 = vand.u32 4294901760, %v6773_v45 }
 0x137   :  { %v7032_v59 = vpack.c.bf16 %v1901_v56, %v1889_v21  ;;  %v1906_v23 = vsub.f32 %v6768_v32, %v9037_v38  ;;  %v1918_v49 = vsub.f32 %v6770_v28, %v9039_v29  ;;  %v9041_v35 = vand.u32 4294901760, %v6775_v18 }
 0x138   :  { %9541 = vst [vmem:[#allocation98_spill] sm:$0xff] %v7026_v15  ;;  %v1064_v42 = vand.u32 4294901760, %v1063_v37  ;;  %v1057_v58 = vsub.f32 %v6773_v45, %v9040_v6  ;;  %v9042_v62 = vand.u32 4294901760, %v6777_v33  ;;  %v9046_v21 = vand.u32 4294901760, %v6779_v4 }
 0x139   :  { %9542 = vst [vmem:[#allocation99_spill] sm:$0xff] %v7032_v59  ;;  %v1907_v56 = vand.u32 4294901760, %v1906_v23  ;;  %v1919_v34 = vand.u32 4294901760, %v1918_v49  ;;  %v1069_v38 = vsub.f32 %v6775_v18, %v9041_v35  ;;  %v9044_v52 = vand.u32 4294901760, %v6782_v8 }
 0x13a   :  { %v7050_v29 = vpack.c.bf16 %v1064_v42, %v1052_v10  ;;  %v1058_v59 = vand.u32 4294901760, %v1057_v58  ;;  %v1912_v37 = vsub.f32 %v6777_v33, %v9042_v62  ;;  %v1924_v6 = vsub.f32 %v6779_v4, %v9046_v21  ;;  %v9576_v33 = vld [vmem:[#allocation89_spill] sm:$0xff] }
 0x13b   :  { %v7058_v15 = vpack.c.bf16 %v1919_v34, %v1907_v56  ;;  %v1070_v23 = vand.u32 4294901760, %v1069_v38  ;;  %v1075_v49 = vsub.f32 %v6782_v8, %v9044_v52  ;;  %v9043_v35 = vand.u32 4294901760, %v6784_v51 }
 0x13c   :  { %9543 = vst [vmem:[#allocation100_spill] sm:$0xff] %v7050_v29  ;;  %v1913_v10 = vand.u32 4294901760, %v1912_v37  ;;  %v1925_v42 = vand.u32 4294901760, %v1924_v6  ;;  %v9045_v58 = vand.u32 4294901760, %v6786_v17  ;;  %v9047_v29 = vand.u32 4294901760, %v6788_v44 }
 0x13d   :  { %9544 = vst [vmem:[#allocation101_spill] sm:$0xff] %v7058_v15  ;;  %v7066_v62 = vpack.c.bf16 %v1070_v23, %v1058_v59  ;;  %v1076_v55 = vand.u32 4294901760, %v1075_v49  ;;  %v1087_v34 = vsub.f32 %v6784_v51, %v9043_v35  ;;  %v9048_v38 = vand.u32 4294901760, %v6791_v30 }
 0x13e   :  { %v7072_v56 = vpack.c.bf16 %v1925_v42, %v1913_v10  ;;  %v1930_v37 = vsub.f32 %v6786_v17, %v9045_v58  ;;  %v1942_v6 = vsub.f32 %v6788_v44, %v9047_v29  ;;  %v9049_v59 = vand.u32 4294901760, %v6793_v54 }
 0x13f   :  { %9545 = vst [vmem:[#allocation102_spill] sm:$0xff] %v7066_v62  ;;  %v1088_v23 = vand.u32 4294901760, %v1087_v34  ;;  %v1081_v49 = vsub.f32 %v6791_v30, %v9048_v38  ;;  %v9050_v35 = vand.u32 4294901760, %v6795_v16  ;;  %v9055_v10 = vand.u32 4294901760, %v6797_v20 }
 0x140   :  { %9546 = vst [vmem:[#allocation103_spill] sm:$0xff] %v7072_v56  ;;  %v1931_v42 = vand.u32 4294901760, %v1930_v37  ;;  %v1943_v52 = vand.u32 4294901760, %v1942_v6  ;;  %v1093_v58 = vsub.f32 %v6793_v54, %v9049_v59  ;;  %v9052_v21 = vand.u32 4294901760, %v6801_v24 }
 0x141   :  { %v7090_v29 = vpack.c.bf16 %v1088_v23, %v1076_v55  ;;  %v1082_v56 = vand.u32 4294901760, %v1081_v49  ;;  %v1936_v34 = vsub.f32 %v6795_v16, %v9050_v35  ;;  %v1948_v38 = vsub.f32 %v6797_v20, %v9055_v10 }
 0x142   :  { %v7098_v62 = vpack.c.bf16 %v1943_v52, %v1931_v42  ;;  %v1094_v37 = vand.u32 4294901760, %v1093_v58  ;;  %v1099_v6 = vsub.f32 %v6801_v24, %v9052_v21  ;;  %v9051_v59 = vand.u32 4294901760, %v6803_v9 }
 0x143   :  { %9547 = vst [vmem:[#allocation104_spill] sm:$0xff] %v7090_v29  ;;  %v1937_v55 = vand.u32 4294901760, %v1936_v34  ;;  %v1949_v23 = vand.u32 4294901760, %v1948_v38  ;;  %v9053_v49 = vand.u32 4294901760, %v6805_v12  ;;  %v9054_v29 = vand.u32 4294901760, %v6810_v2 }
 0x144   :  { %9548 = vst [vmem:[#allocation105_spill] sm:$0xff] %v7098_v62  ;;  %v7106_v35 = vpack.c.bf16 %v1094_v37, %v1082_v56  ;;  %v1100_v15 = vand.u32 4294901760, %v1099_v6  ;;  %v1111_v52 = vsub.f32 %v6803_v9, %v9051_v59  ;;  %v9056_v58 = vand.u32 4294901760, %v6815_v57  ;;  %v9554_v62 = vld [vmem:[#allocation19_spill] sm:$0xff] }
 0x145   :  { %v7112_v42 = vpack.c.bf16 %v1949_v23, %v1937_v55  ;;  %v1954_v34 = vsub.f32 %v6805_v12, %v9053_v49  ;;  %v1966_v38 = vsub.f32 %v6810_v2, %v9054_v29  ;;  %v9057_v56 = vand.u32 4294901760, %v6817_v41 }
 0x146   :  { %9549 = vst [vmem:[#allocation106_spill] sm:$0xff] %v7106_v35  ;;  %v1112_v37 = vand.u32 4294901760, %v1111_v52  ;;  %v1105_v6 = vsub.f32 %v6815_v57, %v9056_v58  ;;  %v9062_v59 = vand.u32 4294901760, %v6819_v53  ;;  %v9065_v55 = vand.u32 4294901760, %v6824_v22  ;;  %v9553_v35 = vld [vmem:[#allocation18_spill] sm:$0xff]  ;;  %v9591_v57 = vld [vmem:[#allocation96_spill] sm:$0xff] }
 0x147   :  { %9550 = vst [vmem:[#allocation107_spill] sm:$0xff] %v7112_v42  ;;  %v1955_v23 = vand.u32 4294901760, %v1954_v34  ;;  %v1967_v21 = vand.u32 4294901760, %v1966_v38  ;;  %v1117_v49 = vsub.f32 %v6817_v41, %v9057_v56  ;;  %v9562_v56 = vld [vmem:[#allocation30_spill] sm:$0xff] }
 0x148   :  { %v7131_v10 = vpack.c.bf16 %v1112_v37, %v1100_v15  ;;  %v1106_v52 = vand.u32 4294901760, %v1105_v6  ;;  %v1960_v58 = vsub.f32 %v6819_v53, %v9062_v59  ;;  %v1972_v42 = vsub.f32 %v6824_v22, %v9065_v55  ;;  %v9557_v59 = vld [vmem:[#allocation24_spill] sm:$0xff]  ;;  %v9558_v55 = vld [vmem:[#allocation25_spill] sm:$0xff] }
 0x149   :  { %v7139_v34 = vpack.c.bf16 %v1967_v21, %v1955_v23  ;;  %v1118_v38 = vand.u32 4294901760, %v1117_v49  ;;  %v9559_v21 = vld [vmem:[#allocation26_spill] sm:$0xff]  ;;  %v9560_v49 = vld [vmem:[#allocation27_spill] sm:$0xff]  ;;  %v9566_v6 = vld [vmem:[#allocation36_spill] sm:$0xff] }
 0x14a   :  { %9551 = vst [vmem:[#allocation108_spill] sm:$0xff] %v7131_v10  ;;  %v1961_v15 = vand.u32 4294901760, %v1960_v58  ;;  %v1973_v37 = vand.u32 4294901760, %v1972_v42  ;;  %v9564_v58 = vld [vmem:[#allocation34_spill] sm:$0xff]  ;;  %v9567_v10 = vld [vmem:[#allocation37_spill] sm:$0xff] }
 0x14b   :  { %9552 = vst [vmem:[#allocation109_spill] sm:$0xff] %v7139_v34  ;;  %v7149_v53 = vpack.c.bf16 %v1118_v38, %v1106_v52  ;;  %v9561_v34 = vld [vmem:[#allocation29_spill] sm:$0xff]  ;;  %v9568_v52 = vld [vmem:[#allocation39_spill] sm:$0xff]  ;;  %v9577_v38 = vld [vmem:[#allocation90_spill] sm:$0xff] }
 0x14c   :  { %v7157_v29 = vpack.c.bf16 %v1973_v37, %v1961_v15  ;;  %v9570_v37 = vld [vmem:[#allocation49_spill] sm:$0xff]  ;;  %v4346_v23 = vld [vmem:[%s8863_s2] ss:$0 sm:$0xff] }
 0x1cf   :  { %v729_v22 = vpop.f32.mrb[0].mxu0 }
 0x1d0   :  { %v5992_v30 = vadd.f32 %v4346_v23, %v729_v22  ;;  %v5079_v54 = vpop.f32.mrb[1].mxu0  ;;  %v9580_v22 = vmov 0.0   ;;  %v9582_v23 = vld [vmem:[#allocation93_spill] sm:$0xff] }
 0x1d1   :  { %v9578_v54 = vld [vmem:[#allocation33_spill] sm:$0xff] }
 0x1d2   :  { %v733_v19 = vmax.f32 %v5992_v30, 0.0  ;;  %v9579_v30 = vld [vmem:[#allocation91_spill] sm:$0xff] }
 0x1d4   :  { %v7210_v16 = vand.u32 4294901760, %v733_v19 }
 0x1d6   :  { %9573 = vst [vmem:[#allocation18_spill] sm:$0xff] %v7210_v16  ;;  %v7213_v15 = vsub.f32 %v733_v19, %v7210_v16  ;;  %v9581_v19 = vld [vmem:[#allocation92_spill] sm:$0xff] }
 0x1d8   :  { %9574 = vst [vmem:[#allocation27_spill] sm:$0xff] %v7213_v15  ;;  %v7216_v42 = vand.u32 4294901760, %v7213_v15 }
 0x1da   :  { %9575 = vst [vmem:[#allocation29_spill] sm:$0xff] %v7216_v42  ;;  %v920_v46 = vsub.f32 %v7213_v15, %v7216_v42  ;;  %v9583_v42 = vld [vmem:[#allocation41_spill] sm:$0xff]  ;;  %v9590_v15 = vld [vmem:[#allocation95_spill] sm:$0xff] }
 0x1dc   :  { %v921_v8 = vand.u32 4294901760, %v920_v46  ;;  %v9584_v46 = vld [vmem:[#allocation43_spill] sm:$0xff] }
 0x1de   :  { %922 = vmatmul.mubr.f32.vlgmr.msra.gmra.mrb[0].mxu1 %v921_v8  ;;  %1777 = vmatmul.mubr.f32.vlgmr.msra.gmra.mrb[2].mxu0 %v921_v8  ;;  %v9585_v8 = vld [vmem:[#allocation44_spill] sm:$0xff] }
 0x1df   :  { %5259 = vmatpush1.bf16.msra.mxu1 %v9576_v33  ;;  %5451 = vmatpush1.bf16.msra.mxu0 %v9577_v38  ;;  %v9586_v33 = vld [vmem:[#allocation45_spill] sm:$0xff]  ;;  %v9587_v38 = vld [vmem:[#allocation48_spill] sm:$0xff] }
 0x1e0   :  { %5261 = vmatprep.subr.bf16.mxu1 %v9578_v54  ;;  %5453 = vmatprep.subr.bf16.mxu0 %v9579_v30  ;;  %v9588_v54 = vld [vmem:[#allocation50_spill] sm:$0xff] }
 0x1e1   :  { %1152 = vmatprep.mubr.f32.mxu1 %v9580_v22  ;;  %2007 = vmatprep.mubr.f32.mxu0 %v9580_v22  ;;  %v9589_v30 = vld [vmem:[#allocation94_spill] sm:$0xff] }
 0x1e3   :  { %5263 = vmatpush1.bf16.msra.mxu1 %v9581_v19  ;;  %5455 = vmatpush1.bf16.msra.mxu0 %v9582_v23  ;;  %v9592_v19 = vld [vmem:[#allocation97_spill] sm:$0xff]  ;;  %v9593_v23 = vld [vmem:[#allocation98_spill] sm:$0xff] }
 0x1e4   :  { %5265 = vmatprep.subr.bf16.mxu1 %v9583_v42  ;;  %5457 = vmatprep.subr.bf16.mxu0 %v9584_v46  ;;  %v9594_v42 = vld [vmem:[#allocation99_spill] sm:$0xff]  ;;  %v9595_v46 = vld [vmem:[#allocation100_spill] sm:$0xff] }
 0x1e7   :  { %5267 = vmatpush1.bf16.msra.mxu1 %v9585_v8  ;;  %5459 = vmatpush1.bf16.msra.mxu0 %v9586_v33  ;;  %v9596_v8 = vld [vmem:[#allocation101_spill] sm:$0xff]  ;;  %v9597_v33 = vld [vmem:[#allocation102_spill] sm:$0xff] }
 0x1e8   :  { %5269 = vmatprep.subr.bf16.mxu1 %v9587_v38  ;;  %5461 = vmatprep.subr.bf16.mxu0 %v9588_v54  ;;  %v9598_v38 = vld [vmem:[#allocation103_spill] sm:$0xff]  ;;  %v9599_v54 = vld [vmem:[#allocation104_spill] sm:$0xff] }
 0x1eb   :  { %5271 = vmatpush1.bf16.msra.mxu1 %v9589_v30  ;;  %5463 = vmatpush1.bf16.msra.mxu0 %v9590_v15  ;;  %v9600_v30 = vld [vmem:[#allocation105_spill] sm:$0xff]  ;;  %v9601_v15 = vld [vmem:[#allocation106_spill] sm:$0xff] }
 0x1ec   :  { %5273 = vmatprep.subr.bf16.mxu1 %v9591_v57  ;;  %5465 = vmatprep.subr.bf16.mxu0 %v9592_v19  ;;  %v9602_v57 = vld [vmem:[#allocation107_spill] sm:$0xff]  ;;  %v9603_v19 = vld [vmem:[#allocation108_spill] sm:$0xff] }
 0x1ef   :  { %5275 = vmatpush1.bf16.msra.mxu1 %v9593_v23  ;;  %5467 = vmatpush1.bf16.msra.mxu0 %v9594_v42  ;;  %v9604_v23 = vld [vmem:[#allocation109_spill] sm:$0xff]  ;;  %v9605_v42 = vld [vmem:[#allocation14_spill] sm:$0xff] }
 0x1f0   :  { %5277 = vmatprep.subr.bf16.mxu1 %v9595_v46  ;;  %5469 = vmatprep.subr.bf16.mxu0 %v9596_v8  ;;  %v9606_v46 = vld [vmem:[#allocation13_spill] sm:$0xff] }
 0x1f1   :  { %v9607_v8 = vpack.c.bf16 %v9605_v42, %v9606_v46  ;;  %v9621_v42 = vld [vmem:[#allocation22_spill] sm:$0xff] }
 0x1f2   :  { %v9622_v46 = vpack.c.bf16 %v9557_v59, %v9621_v42 }
 0x1f3   :  { %5279 = vmatpush1.bf16.msra.mxu1 %v9597_v33  ;;  %5471 = vmatpush1.bf16.msra.mxu0 %v9598_v38  ;;  %v9608_v33 = vld [vmem:[#allocation16_spill] sm:$0xff]  ;;  %v9609_v38 = vld [vmem:[#allocation15_spill] sm:$0xff] }
 0x1f4   :  { %5281 = vmatprep.subr.bf16.mxu1 %v9599_v54  ;;  %5473 = vmatprep.subr.bf16.mxu0 %v9600_v30  ;;  %v9610_v54 = vpack.c.bf16 %v9608_v33, %v9609_v38  ;;  %v7260_v30 = vld [vmem:[#allocation7 + $0x80] sm:$0xff]  ;;  %v7274_v33 = vld [vmem:[#allocation7 + $0x188] sm:$0xff] }
 0x1f5   :  { %9611 = vst [vmem:[#allocation30_spill] sm:$0xff] %v7260_v30  ;;  %9618 = vst [vmem:[#allocation35_spill] sm:$0xff] %v7274_v33  ;;  %v7278_v38 = vld [vmem:[#allocation7 + $0x8] sm:$0xff] }
 0x1f6   :  { %9620 = vst [vmem:[#allocation37_spill] sm:$0xff] %v7278_v38 }
 0x1f7   :  { %5283 = vmatpush1.bf16.msra.mxu1 %v9601_v15  ;;  %5475 = vmatpush1.bf16.msra.mxu0 %v9602_v57  ;;  %v7262_v15 = vld [vmem:[#allocation7 + $0x88] sm:$0xff]  ;;  %v7264_v57 = vld [vmem:[#allocation7 + $0x180] sm:$0xff] }
 0x1f8   :  { %5285 = vmatprep.subr.bf16.mxu1 %v9603_v19  ;;  %5477 = vmatprep.subr.bf16.mxu0 %v9604_v23  ;;  %9612 = vst [vmem:[#allocation31_spill] sm:$0xff] %v7262_v15  ;;  %9613 = vst [vmem:[#allocation34_spill] sm:$0xff] %v7264_v57  ;;  %v9616_v19 = vld [vmem:[#allocation20_spill] sm:$0xff]  ;;  %v9632_v42 = vand.u32 4294901760, %v7264_v57 }
 0x1fb   :  { %5287 = vmatpush1.bf16.msra.mxu1 %v7149_v53  ;;  %5479 = vmatpush1.bf16.msra.mxu0 %v7157_v29  ;;  %v9614_v53 = vpack.c.bf16 %v9554_v62, %v9553_v35  ;;  %v9615_v29 = vld [vmem:[#allocation21_spill] sm:$0xff]  ;;  %v7314_v62 = vsub.f32 %v7264_v57, %v9632_v42 }
 0x1fc   :  { %5289 = vmatprep.subr.bf16.mxu1 %v9607_v8  ;;  %5481 = vmatprep.subr.bf16.mxu0 %v9610_v54  ;;  %v9617_v23 = vpack.c.bf16 %v9615_v29, %v9616_v19  ;;  %v7289_v29 = vld [vmem:[#allocation7 + $0x100] sm:$0xff]  ;;  %v7291_v19 = vld [vmem:[#allocation7 + $0x108] sm:$0xff]  ;;  %v9638_v8 = vpack.c.bf16 %v9561_v34, %v9560_v49  ;;  %v9639_v54 = vpack.c.bf16 %v9563_v48, %v9562_v56 }
 0x1fd   :  { %9624 = vst [vmem:[#allocation39_spill] sm:$0xff] %v7289_v29  ;;  %9625 = vst [vmem:[#allocation40_spill] sm:$0xff] %v7291_v19  ;;  %v9644_v57 = vand.u32 4294901760, %v7289_v29 }
 0x1fe   :  { %1154 = vmatmul.mubr.f32.vlgmr.msra.gmra.mrb[0].mxu1 %v7210_v16  ;;  %2009 = vmatmul.mubr.f32.vlgmr.msra.gmra.mrb[2].mxu0 %v7210_v16  ;;  %v7276_v16 = vld [vmem:[#allocation7] sm:$0xff]  ;;  %9633 = vst [vmem:[#allocation91_spill] sm:$0xff] %v7314_v62 }
 0x1ff   :  { %5291 = vmatpush1.bf16.msra.mxu1 %v9614_v53  ;;  %5483 = vmatpush1.bf16.msra.mxu0 %v9617_v23  ;;  %9619 = vst [vmem:[#allocation36_spill] sm:$0xff] %v7276_v16  ;;  %v9623_v53 = vpack.c.bf16 %v9559_v21, %v9558_v55  ;;  %v7307_v21 = vld [vmem:[#allocation7 + $0x90] sm:$0xff]  ;;  %v7309_v55 = vld [vmem:[#allocation7 + $0x98] sm:$0xff]  ;;  %v9640_v42 = vand.u32 4294901760, %v7276_v16 }
 0x200   :  { %5293 = vmatprep.subr.bf16.mxu1 %v9622_v46  ;;  %1288 = vmatprep.mubr.f32.mxu1 %v9580_v22  ;;  %v9626_v46 = vand.u32 4294901760, %v7260_v30  ;;  %9630 = vst [vmem:[#allocation90_spill] sm:$0xff] %v7307_v21  ;;  %9631 = vst [vmem:[#allocation33_spill] sm:$0xff] %v7309_v55 }
 0x201   :  { %5485 = vmatprep.subr.bf16.mxu0 %v9623_v53  ;;  %2143 = vmatprep.mubr.f32.mxu0 %v9580_v22  ;;  %v9628_v53 = vand.u32 4294901760, %v7262_v15  ;;  %v7334_v62 = vsub.f32 %v7276_v16, %v9640_v42  ;;  %v9648_v42 = vpack.c.bf16 %v9564_v58, %v9514_v39  ;;  %v7370_v16 = vld [vmem:[#allocation7 + $0xa0] sm:$0xff] }
 0x202   :  { %v7298_v59 = vsub.f32 %v7260_v30, %v9626_v46  ;;  %v9634_v46 = vand.u32 4294901760, %v7274_v33  ;;  %9654 = vst [vmem:[#allocation97_spill] sm:$0xff] %v7370_v16 }
 0x203   :  { %v7303_v23 = vsub.f32 %v7262_v15, %v9628_v53  ;;  %v7321_v53 = vld [vmem:[#allocation7 + $0x190] sm:$0xff]  ;;  %5295 = vmatpush1.bf16.msra.mxu1 %v9638_v8  ;;  %5487 = vmatpush1.bf16.msra.mxu0 %v9639_v54  ;;  %9641 = vst [vmem:[#allocation43_spill] sm:$0xff] %v7334_v62  ;;  %v7345_v8 = vsub.f32 %v7289_v29, %v9644_v57  ;;  %v7349_v54 = vld [vmem:[#allocation7 + $0x18] sm:$0xff]  ;;  %v9651_v57 = vand.u32 4294901760, %v7291_v19 }
 0x204   :  { %9627 = vst [vmem:[#allocation49_spill] sm:$0xff] %v7298_v59  ;;  %v7319_v59 = vsub.f32 %v7274_v33, %v9634_v46  ;;  %9636 = vst [vmem:[#allocation93_spill] sm:$0xff] %v7321_v53  ;;  %v9642_v46 = vand.u32 4294901760, %v7278_v38  ;;  %v7347_v15 = vld [vmem:[#allocation7 + $0x10] sm:$0xff]  ;;  %5297 = vmatprep.subr.bf16.mxu1 %v9648_v42  ;;  %v9649_v62 = vpack.c.bf16 %v9566_v6, %v9565_v47  ;;  %v9113_v33 = vand.u32 4294901760, %v7309_v55  ;;  %v7368_v42 = vld [vmem:[#allocation7 + $0x118] sm:$0xff] }
 0x205   :  { %9629 = vst [vmem:[#allocation89_spill] sm:$0xff] %v7303_v23  ;;  %v7323_v23 = vld [vmem:[#allocation7 + $0x198] sm:$0xff]  ;;  %9645 = vst [vmem:[#allocation45_spill] sm:$0xff] %v7345_v8  ;;  %v7364_v8 = vsub.f32 %v7291_v19, %v9651_v57  ;;  %v9659_v19 = vpack.c.bf16 %v9568_v52, %v9567_v10 }
 0x206   :  { %9635 = vst [vmem:[#allocation92_spill] sm:$0xff] %v7319_v59  ;;  %9637 = vst [vmem:[#allocation41_spill] sm:$0xff] %v7323_v23  ;;  %v7339_v59 = vsub.f32 %v7278_v38, %v9642_v46  ;;  %5489 = vmatprep.subr.bf16.mxu0 %v9649_v62  ;;  %v9111_v46 = vand.u32 4294901760, %v7307_v21  ;;  %v7380_v30 = vsub.f32 %v7309_v55, %v9113_v33  ;;  %v7386_v38 = vld [vmem:[#allocation7 + $0x1a0] sm:$0xff]  ;;  %v9663_v57 = vand.u32 4294901760, %v7323_v23  ;;  %v7405_v55 = vld [vmem:[#allocation7 + $0x1a8] sm:$0xff] }
 0x207   :  { %9646 = vst [vmem:[#allocation48_spill] sm:$0xff] %v7347_v15  ;;  %9647 = vst [vmem:[#allocation50_spill] sm:$0xff] %v7349_v54  ;;  %5299 = vmatpush1.bf16.msra.mxu1 %v9659_v19  ;;  %v9667_v19 = vpack.c.bf16 %v9528_v0, %v9526_v43 }
 0x208   :  { %9643 = vst [vmem:[#allocation44_spill] sm:$0xff] %v7339_v59  ;;  %v7359_v59 = vld [vmem:[#allocation7 + $0x110] sm:$0xff]  ;;  %9652 = vst [vmem:[#allocation95_spill] sm:$0xff] %v7364_v8  ;;  %v7375_v62 = vsub.f32 %v7307_v21, %v9111_v46  ;;  %v7384_v8 = vld [vmem:[#allocation7 + $0xa8] sm:$0xff]  ;;  %v9660_v46 = vpack.c.bf16 %v9525_v5, %v9569_v14  ;;  %v7402_v29 = vsub.f32 %v7323_v23, %v9663_v57  ;;  %v9671_v57 = vand.u32 4294901760, %v7349_v54 }
 0x209   :  { %9650 = vst [vmem:[#allocation94_spill] sm:$0xff] %v7359_v59  ;;  %9653 = vst [vmem:[#allocation96_spill] sm:$0xff] %v7368_v42  ;;  %v7407_v21 = vld [vmem:[#allocation7 + $0x20] sm:$0xff]  ;;  %5301 = vmatprep.subr.bf16.mxu1 %v9667_v19  ;;  %v9128_v23 = vand.u32 4294901760, %v7370_v16  ;;  %v9674_v19 = vand.u32 4294901760, %v7359_v59 }
 0x20a   :  { %9655 = vst [vmem:[#allocation98_spill] sm:$0xff] %v7375_v62  ;;  %9656 = vst [vmem:[#allocation99_spill] sm:$0xff] %v7380_v30  ;;  %5491 = vmatpush1.bf16.msra.mxu0 %v9660_v46  ;;  %v9661_v62 = vand.u32 4294901760, %v7321_v53  ;;  %v9668_v46 = vpack.c.bf16 %v6544_v11, %v9530_v31  ;;  %v7423_v30 = vsub.f32 %v7349_v54, %v9671_v57  ;;  %v7452_v11 = vld [vmem:[#allocation7 + $0xb0] sm:$0xff] }
 0x20b   :  { %9657 = vst [vmem:[#allocation100_spill] sm:$0xff] %v7384_v8  ;;  %9658 = vst [vmem:[#allocation101_spill] sm:$0xff] %v7386_v38 }
 0x20c   :  { %v7397_v33 = vsub.f32 %v7321_v53, %v9661_v62  ;;  %9664 = vst [vmem:[#allocation103_spill] sm:$0xff] %v7402_v29  ;;  %9665 = vst [vmem:[#allocation104_spill] sm:$0xff] %v7405_v55  ;;  %5493 = vmatprep.subr.bf16.mxu0 %v9668_v46  ;;  %v9669_v62 = vand.u32 4294901760, %v7347_v15  ;;  %v9126_v29 = vand.u32 4294901760, %v7368_v42  ;;  %v7427_v53 = vld [vmem:[#allocation7 + $0x28] sm:$0xff]  ;;  %v7432_v46 = vsub.f32 %v7359_v59, %v9674_v19  ;;  %v7466_v19 = vld [vmem:[#allocation7 + $0xb8] sm:$0xff] }
 0x20d   :  { %9666 = vst [vmem:[#allocation105_spill] sm:$0xff] %v7407_v21  ;;  %9672 = vst [vmem:[#allocation107_spill] sm:$0xff] %v7423_v30  ;;  %v7446_v30 = vsub.f32 %v7370_v16, %v9128_v23  ;;  %v9687_v16 = vpack.c.bf16 %v6576_v61, %v6574_v63  ;;  %v7492_v59 = vld [vmem:[#allocation7 + $0x1b8] sm:$0xff] }
 0x20e   :  { %9662 = vst [vmem:[#allocation102_spill] sm:$0xff] %v7397_v33  ;;  %v7418_v33 = vsub.f32 %v7347_v15, %v9669_v62  ;;  %9673 = vst [vmem:[#allocation108_spill] sm:$0xff] %v7427_v53  ;;  %v7441_v57 = vsub.f32 %v7368_v42, %v9126_v29  ;;  %v9681_v62 = vpack.c.bf16 %v6554_v1, %v9532_v13  ;;  %v9697_v15 = vand.u32 4294901760, %v7427_v53 }
 0x20f   :  { %9675 = vst [vmem:[#allocation109_spill] sm:$0xff] %v7432_v46  ;;  %9678 = vst [vmem:[#allocation112_spill] sm:$0xff] %v7446_v30  ;;  %v7450_v46 = vld [vmem:[#allocation7 + $0x128] sm:$0xff]  ;;  %v9682_v29 = vpack.c.bf16 %v9534_v7, %v9570_v37  ;;  %v7468_v30 = vld [vmem:[#allocation7 + $0x1b0] sm:$0xff] }
 0x210   :  { %9670 = vst [vmem:[#allocation106_spill] sm:$0xff] %v7418_v33  ;;  %v7436_v33 = vld [vmem:[#allocation7 + $0x120] sm:$0xff]  ;;  %9677 = vst [vmem:[#allocation111_spill] sm:$0xff] %v7441_v57  ;;  %5303 = vmatpush1.bf16.msra.mxu1 %v9681_v62  ;;  %v9683_v57 = vand.u32 4294901760, %v7384_v8  ;;  %v9688_v62 = vpack.c.bf16 %v6593_v50, %v6584_v40 }
 0x211   :  { %9676 = vst [vmem:[#allocation110_spill] sm:$0xff] %v7436_v33  ;;  %9679 = vst [vmem:[#allocation113_spill] sm:$0xff] %v7450_v46  ;;  %5495 = vmatpush1.bf16.msra.mxu0 %v9682_v29  ;;  %5305 = vmatprep.subr.bf16.mxu1 %v9687_v16  ;;  %v9689_v29 = vand.u32 4294901760, %v7386_v38  ;;  %v9142_v16 = vand.u32 4294901760, %v7436_v33 }
 0x212   :  { %9680 = vst [vmem:[#allocation114_spill] sm:$0xff] %v7452_v11  ;;  %v7463_v23 = vsub.f32 %v7384_v8, %v9683_v57  ;;  %9685 = vst [vmem:[#allocation116_spill] sm:$0xff] %v7466_v19  ;;  %5497 = vmatprep.subr.bf16.mxu0 %v9688_v62  ;;  %v9691_v57 = vand.u32 4294901760, %v7405_v55  ;;  %v7494_v62 = vld [vmem:[#allocation7 + $0x30] sm:$0xff] }
 0x213   :  { %9686 = vst [vmem:[#allocation117_spill] sm:$0xff] %v7468_v30  ;;  %v7479_v42 = vsub.f32 %v7386_v38, %v9689_v29  ;;  %9695 = vst [vmem:[#allocation121_spill] sm:$0xff] %v7492_v59  ;;  %v7499_v29 = vsub.f32 %v7427_v53, %v9697_v15  ;;  %v9702_v15 = vpack.c.bf16 %v6600_v25, %v6597_v60  ;;  %v9748_v53 = vld [vmem:[#allocation32_spill] sm:$0xff]  ;;  %v9749_v38 = vld [vmem:[#allocation57_spill] sm:$0xff] }
 0x214   :  { %9684 = vst [vmem:[#allocation115_spill] sm:$0xff] %v7463_v23  ;;  %v7484_v54 = vsub.f32 %v7405_v55, %v9691_v57  ;;  %v9693_v23 = vand.u32 4294901760, %v7407_v21  ;;  %9696 = vst [vmem:[#allocation122_spill] sm:$0xff] %v7494_v62  ;;  %v7512_v55 = vld [vmem:[#allocation7 + $0x130] sm:$0xff]  ;;  %v9703_v57 = vpack.c.bf16 %v6610_v3, %v6605_v27 }
 0x215   :  { %9690 = vst [vmem:[#allocation118_spill] sm:$0xff] %v7479_v42  ;;  %9698 = vst [vmem:[#allocation123_spill] sm:$0xff] %v7499_v29  ;;  %v9145_v42 = vand.u32 4294901760, %v7450_v46  ;;  %5307 = vmatpush1.bf16.msra.mxu1 %v9702_v15  ;;  %v9708_v15 = vpack.c.bf16 %v6766_v26, %v6764_v36 }
 0x216   :  { %9692 = vst [vmem:[#allocation119_spill] sm:$0xff] %v7484_v54  ;;  %v7489_v8 = vsub.f32 %v7407_v21, %v9693_v23  ;;  %v7503_v54 = vld [vmem:[#allocation7 + $0x38] sm:$0xff]  ;;  %v7508_v23 = vsub.f32 %v7436_v33, %v9142_v16  ;;  %9701 = vst [vmem:[#allocation126_spill] sm:$0xff] %v7512_v55  ;;  %5499 = vmatpush1.bf16.msra.mxu0 %v9703_v57  ;;  %v9705_v16 = vand.u32 4294901760, %v7452_v11  ;;  %v9712_v21 = vand.u32 4294901760, %v7468_v30 }
 0x217   :  { %9699 = vst [vmem:[#allocation124_spill] sm:$0xff] %v7503_v54  ;;  %v7523_v29 = vsub.f32 %v7450_v46, %v9145_v42  ;;  %v7532_v33 = vld [vmem:[#allocation7 + $0x138] sm:$0xff]  ;;  %5309 = vmatprep.subr.bf16.mxu1 %v9708_v15  ;;  %v9709_v57 = vpack.c.bf16 %v6770_v28, %v6768_v32  ;;  %v9710_v42 = vand.u32 4294901760, %v7466_v19  ;;  %v9745_v46 = vld [vmem:[#allocation55_spill] sm:$0xff] }
 0x218   :  { %9694 = vst [vmem:[#allocation120_spill] sm:$0xff] %v7489_v8  ;;  %9700 = vst [vmem:[#allocation125_spill] sm:$0xff] %v7508_v23  ;;  %v7528_v8 = vsub.f32 %v7452_v11, %v9705_v16  ;;  %v9154_v16 = vand.u32 4294901760, %v7503_v54  ;;  %v7549_v23 = vsub.f32 %v7468_v30, %v9712_v21  ;;  %v9716_v11 = vand.u32 4294901760, %v7494_v62  ;;  %v9740_v30 = vld [vmem:[#allocation53_spill] sm:$0xff] }
 0x219   :  { %9704 = vst [vmem:[#allocation127_spill] sm:$0xff] %v7523_v29  ;;  %9707 = vst [vmem:[#allocation129_spill] sm:$0xff] %v7532_v33  ;;  %5501 = vmatprep.subr.bf16.mxu0 %v9709_v57  ;;  %v7543_v29 = vsub.f32 %v7466_v19, %v9710_v42  ;;  %v9157_v42 = vand.u32 4294901760, %v7512_v55  ;;  %v9160_v21 = vand.u32 4294901760, %v7532_v33  ;;  %v9743_v19 = vld [vmem:[#allocation54_spill] sm:$0xff] }
 0x21a   :  { %9706 = vst [vmem:[#allocation128_spill] sm:$0xff] %v7528_v8  ;;  %9713 = vst [vmem:[#allocation131_spill] sm:$0xff] %v7549_v23  ;;  %v9714_v8 = vand.u32 4294901760, %v7492_v59  ;;  %v7559_v57 = vsub.f32 %v7494_v62, %v9716_v11  ;;  %v9719_v23 = vpack.c.bf16 %v6775_v18, %v6773_v45 }
 0x21b   :  { %9711 = vst [vmem:[#allocation130_spill] sm:$0xff] %v7543_v29  ;;  %v7565_v29 = vsub.f32 %v7503_v54, %v9154_v16  ;;  %v7577_v11 = vsub.f32 %v7512_v55, %v9157_v42  ;;  %v9725_v16 = vpack.c.bf16 %v6788_v44, %v6786_v17  ;;  %v9730_v42 = vld [vmem:[#allocation75_spill] sm:$0xff]  ;;  %v9734_v55 = vld [vmem:[#allocation84_spill] sm:$0xff] }
 0x21c   :  { %v7554_v15 = vsub.f32 %v7492_v59, %v9714_v8  ;;  %9717 = vst [vmem:[#allocation133_spill] sm:$0xff] %v7559_v57  ;;  %5311 = vmatpush1.bf16.msra.mxu1 %v9719_v23  ;;  %v9720_v8 = vld [vmem:[#allocation71_spill] sm:$0xff]  ;;  %v9723_v57 = vld [vmem:[#allocation72_spill] sm:$0xff]  ;;  %v7588_v23 = vsub.f32 %v7532_v33, %v9160_v21  ;;  %v9735_v21 = vpack.c.bf16 %v6817_v41, %v9734_v55  ;;  %v9737_v33 = vld [vmem:[#allocation86_spill] sm:$0xff] }
 0x21d   :  { %9718 = vst [vmem:[#allocation134_spill] sm:$0xff] %v7565_v29  ;;  %9722 = vst [vmem:[#allocation71_spill] sm:$0xff] %v7577_v11  ;;  %v9724_v62 = vpack.c.bf16 %v6784_v51, %v9723_v57  ;;  %v9727_v29 = vld [vmem:[#allocation74_spill] sm:$0xff]  ;;  %v9731_v11 = vpack.c.bf16 %v6797_v20, %v9730_v42  ;;  %v9795_v42 = vld [vmem:[#allocation29_spill] sm:$0xff] }
 0x21e   :  { %9715 = vst [vmem:[#allocation132_spill] sm:$0xff] %v7554_v15  ;;  %v9721_v15 = vpack.c.bf16 %v6779_v4, %v9720_v8  ;;  %9726 = vst [vmem:[#allocation72_spill] sm:$0xff] %v7588_v23  ;;  %v9736_v23 = vld [vmem:[#allocation88_spill] sm:$0xff] }
 0x21f   :  { %5313 = vmatprep.subr.bf16.mxu1 %v9724_v62  ;;  %v9732_v62 = vpack.c.bf16 %v6803_v9, %v6801_v24  ;;  %v9738_v59 = vpack.c.bf16 %v9736_v23, %v9737_v33  ;;  %v9772_v23 = vld [vmem:[#allocation14_spill] sm:$0xff] }
 0x220   :  { %5503 = vmatpush1.bf16.msra.mxu0 %v9721_v15  ;;  %v9728_v15 = vld [vmem:[#allocation73_spill] sm:$0xff] }
 0x221   :  { %5505 = vmatprep.subr.bf16.mxu0 %v9725_v16  ;;  %v9729_v54 = vpack.c.bf16 %v9727_v29, %v9728_v15  ;;  %v9733_v16 = vpack.c.bf16 %v6810_v2, %v6805_v12  ;;  %v9778_v2 = vld [vmem:[#allocation83_spill] sm:$0xff] }
 0x223   :  { %5315 = vmatpush1.bf16.msra.mxu1 %v9729_v54  ;;  %v9739_v54 = vld [vmem:[#allocation12_spill] sm:$0xff] }
 0x224   :  { %5507 = vmatpush1.bf16.msra.mxu0 %v9731_v11  ;;  %5317 = vmatprep.subr.bf16.mxu1 %v9732_v62  ;;  %v9741_v11 = vld [vmem:[#allocation27_spill] sm:$0xff]  ;;  %v9742_v62 = vld [vmem:[#allocation17_spill] sm:$0xff] }
 0x225   :  { %5509 = vmatprep.subr.bf16.mxu0 %v9733_v16  ;;  %v9744_v16 = vld [vmem:[#allocation23_spill] sm:$0xff] }
 0x227   :  { %5319 = vmatpush1.bf16.msra.mxu1 %v9735_v21  ;;  %v9747_v21 = vld [vmem:[#allocation56_spill] sm:$0xff] }
 0x228   :  { %5511 = vmatpush1.bf16.msra.mxu0 %v9738_v59  ;;  %5321 = vmatprep.subr.bf16.mxu1 %v9739_v54  ;;  %v9746_v59 = vld [vmem:[#allocation28_spill] sm:$0xff]  ;;  %v9756_v54 = vld [vmem:[#allocation51_spill] sm:$0xff] }
 0x229   :  { %5513 = vmatprep.subr.bf16.mxu0 %v9740_v30  ;;  %v9755_v30 = vld [vmem:[#allocation60_spill] sm:$0xff] }
 0x22a   :  { %1291 = vmatmul.mubr.f32.vlgmr.msra.gmra.mrb[0].mxu1 %v9741_v11 }
 0x22b   :  { %2146 = vmatmul.mubr.f32.vlgmr.msra.gmra.mrb[2].mxu0 %v9741_v11  ;;  %5323 = vmatpush1.bf16.msra.mxu1 %v9742_v62  ;;  %v9750_v11 = vld [vmem:[#allocation38_spill] sm:$0xff] }
 0x22c   :  { %5515 = vmatpush1.bf16.msra.mxu0 %v9743_v19  ;;  %5325 = vmatprep.subr.bf16.mxu1 %v9744_v16  ;;  %v9751_v62 = vld [vmem:[#allocation58_spill] sm:$0xff]  ;;  %v9753_v16 = vld [vmem:[#allocation59_spill] sm:$0xff] }
 0x22d   :  { %5517 = vmatprep.subr.bf16.mxu0 %v9745_v46  ;;  %1393 = vmatprep.mubr.f32.mxu1 %v9580_v22  ;;  %v9752_v19 = vld [vmem:[#allocation42_spill] sm:$0xff]  ;;  %v9754_v46 = vld [vmem:[#allocation47_spill] sm:$0xff] }
 0x22e   :  { %2248 = vmatprep.mubr.f32.mxu0 %v9580_v22 }
 0x22f   :  { %5327 = vmatpush1.bf16.msra.mxu1 %v9746_v59  ;;  %v9757_v59 = vld [vmem:[#allocation61_spill] sm:$0xff] }
 0x230   :  { %5519 = vmatpush1.bf16.msra.mxu0 %v9747_v21  ;;  %5329 = vmatprep.subr.bf16.mxu1 %v9748_v53  ;;  %v9758_v21 = vld [vmem:[#allocation52_spill] sm:$0xff]  ;;  %v9759_v53 = vld [vmem:[#allocation62_spill] sm:$0xff] }
 0x231   :  { %5521 = vmatprep.subr.bf16.mxu0 %v9749_v38  ;;  %v9760_v38 = vld [vmem:[#allocation63_spill] sm:$0xff] }
 0x233   :  { %5331 = vmatpush1.bf16.msra.mxu1 %v9750_v11  ;;  %v9761_v11 = vld [vmem:[#allocation64_spill] sm:$0xff] }
 0x234   :  { %5523 = vmatpush1.bf16.msra.mxu0 %v9751_v62  ;;  %5333 = vmatprep.subr.bf16.mxu1 %v9752_v19  ;;  %v9762_v62 = vld [vmem:[#allocation65_spill] sm:$0xff]  ;;  %v9763_v19 = vld [vmem:[#allocation66_spill] sm:$0xff] }
 0x235   :  { %5525 = vmatprep.subr.bf16.mxu0 %v9753_v16  ;;  %v9764_v16 = vld [vmem:[#allocation67_spill] sm:$0xff] }
 0x237   :  { %5335 = vmatpush1.bf16.msra.mxu1 %v9754_v46  ;;  %v9765_v46 = vld [vmem:[#allocation68_spill] sm:$0xff] }
 0x238   :  { %5527 = vmatpush1.bf16.msra.mxu0 %v9755_v30  ;;  %5337 = vmatprep.subr.bf16.mxu1 %v9756_v54  ;;  %v9766_v30 = vld [vmem:[#allocation69_spill] sm:$0xff]  ;;  %v9767_v54 = vld [vmem:[#allocation70_spill] sm:$0xff] }
 0x239   :  { %5529 = vmatprep.subr.bf16.mxu0 %v9757_v59  ;;  %v9768_v59 = vld [vmem:[#allocation77_spill] sm:$0xff] }
 0x23b   :  { %5339 = vmatpush1.bf16.msra.mxu1 %v9758_v21  ;;  %v9769_v21 = vld [vmem:[#allocation81_spill] sm:$0xff] }
 0x23c   :  { %5531 = vmatpush1.bf16.msra.mxu0 %v9759_v53  ;;  %5341 = vmatprep.subr.bf16.mxu1 %v9760_v38  ;;  %v9770_v53 = vld [vmem:[#allocation13_spill] sm:$0xff] }
 0x23d   :  { %5533 = vmatprep.subr.bf16.mxu0 %v9761_v11  ;;  %v9771_v38 = vand.u32 4294901760, %v9770_v53  ;;  %v9773_v11 = vand.u32 4294901760, %v9772_v23  ;;  %v9785_v53 = vld [vmem:[#allocation21_spill] sm:$0xff] }
 0x23e   :  { %v9786_v24 = vand.u32 4294901760, %v9785_v53  ;;  %v9810_v53 = vand.u32 4294901760, %v9530_v31  ;;  %v9818_v31 = vand.u32 4294901760, %v6576_v61  ;;  %v9825_v61 = vand.u32 4294901760, %v6764_v36 }
 0x23f   :  { %5343 = vmatpush1.bf16.msra.mxu1 %v9762_v62  ;;  %v5352_v33 = vpack.c.bf16 %v9773_v11, %v9771_v38  ;;  %v9774_v62 = vld [vmem:[#allocation15_spill] sm:$0xff]  ;;  %v9787_v38 = vld [vmem:[#allocation22_spill] sm:$0xff]  ;;  %v9791_v11 = vld [vmem:[#allocation25_spill] sm:$0xff] }
 0x240   :  { %5535 = vmatpush1.bf16.msra.mxu0 %v9763_v19  ;;  %5345 = vmatprep.subr.bf16.mxu1 %v9764_v16  ;;  %v9775_v41 = vand.u32 4294901760, %v9774_v62  ;;  %v9776_v19 = vld [vmem:[#allocation16_spill] sm:$0xff]  ;;  %v9788_v62 = vand.u32 4294901760, %v9787_v38 }
 0x241   :  { %5537 = vmatprep.subr.bf16.mxu0 %v9765_v46  ;;  %v9777_v55 = vand.u32 4294901760, %v9776_v19  ;;  %v9779_v46 = vld [vmem:[#allocation87_spill] sm:$0xff]  ;;  %v9789_v19 = vld [vmem:[#allocation24_spill] sm:$0xff] }
 0x243   :  { %5347 = vmatpush1.bf16.msra.mxu1 %v9766_v30  ;;  %v5544_v16 = vpack.c.bf16 %v9777_v55, %v9775_v41  ;;  %v9781_v30 = vld [vmem:[#allocation19_spill] sm:$0xff]  ;;  %v9790_v41 = vand.u32 4294901760, %v9789_v19  ;;  %v9816_v19 = vand.u32 4294901760, %v9534_v7 }
 0x244   :  { %5539 = vmatpush1.bf16.msra.mxu0 %v9767_v54  ;;  %5349 = vmatprep.subr.bf16.mxu1 %v9768_v59  ;;  %v9780_v54 = vand.u32 4294901760, %v9553_v35  ;;  %v9782_v59 = vand.u32 4294901760, %v9781_v30  ;;  %v9798_v30 = vand.u32 4294901760, %v9562_v56  ;;  %v9805_v56 = vand.u32 4294901760, %v9568_v52 }
 0x245   :  { %5541 = vmatprep.subr.bf16.mxu0 %v9769_v21  ;;  %v9783_v21 = vld [vmem:[#allocation20_spill] sm:$0xff]  ;;  %v5356_v55 = vpack.c.bf16 %v9790_v41, %v9788_v62  ;;  %v9813_v52 = vand.u32 4294901760, %v9532_v13  ;;  %v9815_v62 = vand.u32 4294901760, %v9570_v37  ;;  %v9822_v37 = vand.u32 4294901760, %v6600_v25 }
 0x246   :  { %v5354_v12 = vpack.c.bf16 %v9782_v59, %v9780_v54  ;;  %v9784_v9 = vand.u32 4294901760, %v9783_v21  ;;  %v9799_v54 = vand.u32 4294901760, %v9563_v48  ;;  %v9804_v48 = vand.u32 4294901760, %v9567_v10 }
 0x247   :  { %5351 = vmatpush1.bf16.msra.mxu1 %v9778_v2  ;;  %v9792_v2 = vand.u32 4294901760, %v9791_v11  ;;  %v9820_v11 = vand.u32 4294901760, %v6593_v50  ;;  %v9829_v25 = vand.u32 4294901760, %v6773_v45 }
 0x248   :  { %5543 = vmatpush1.bf16.msra.mxu0 %v9779_v46  ;;  %v5546_v23 = vpack.c.bf16 %v9786_v24, %v9784_v9  ;;  %5353 = vmatprep.subr.bf16.mxu1 %v5352_v33  ;;  %v9793_v46 = vld [vmem:[#allocation26_spill] sm:$0xff]  ;;  %v9796_v24 = vand.u32 4294901760, %v9560_v49  ;;  %v9797_v9 = vand.u32 4294901760, %v9561_v34  ;;  %v5362_v34 = vpack.c.bf16 %v9805_v56, %v9804_v48  ;;  %v9847_v56 = vld [vmem:[#allocation80_spill] sm:$0xff] }
 0x249   :  { %5545 = vmatprep.subr.bf16.mxu0 %v5544_v16  ;;  %v9794_v20 = vand.u32 4294901760, %v9793_v46  ;;  %v5550_v16 = vpack.c.bf16 %v9799_v54, %v9798_v30  ;;  %v9831_v30 = vand.u32 4294901760, %v9720_v8  ;;  %v9832_v54 = vand.u32 4294901760, %v6779_v4 }
 0x24a   :  { %1397 = vmatmul.mubr.f32.vlgmr.msra.gmra.mrb[0].mxu1 %v9795_v42  ;;  %v5358_v33 = vpack.c.bf16 %v9797_v9, %v9796_v24  ;;  %v9824_v24 = vand.u32 4294901760, %v6610_v3  ;;  %v9827_v9 = vand.u32 4294901760, %v6768_v32  ;;  %v9834_v32 = vand.u32 4294901760, %v6784_v51  ;;  %v9843_v51 = vld [vmem:[#allocation78_spill] sm:$0xff] }
 0x24b   :  { %v5548_v35 = vpack.c.bf16 %v9794_v20, %v9792_v2  ;;  %2252 = vmatmul.mubr.f32.vlgmr.msra.gmra.mrb[2].mxu0 %v9795_v42  ;;  %5355 = vmatpush1.bf16.msra.mxu1 %v5354_v12  ;;  %v9800_v20 = vand.u32 4294901760, %v9514_v39  ;;  %v9801_v2 = vand.u32 4294901760, %v9564_v58  ;;  %v9802_v12 = vand.u32 4294901760, %v9565_v47 }
 0x24c   :  { %5547 = vmatpush1.bf16.msra.mxu0 %v5546_v23  ;;  %5357 = vmatprep.subr.bf16.mxu1 %v5356_v55  ;;  %v9803_v42 = vand.u32 4294901760, %v9566_v6  ;;  %v9806_v39 = vand.u32 4294901760, %v9569_v14  ;;  %v9807_v58 = vand.u32 4294901760, %v9525_v5  ;;  %v9808_v47 = vand.u32 4294901760, %v9526_v43  ;;  %v9811_v23 = vld [vmem:[#allocation46_spill] sm:$0xff] }
 0x24d   :  { %5549 = vmatprep.subr.bf16.mxu0 %v5548_v35  ;;  %v5360_v46 = vpack.c.bf16 %v9801_v2, %v9800_v20  ;;  %1563 = vmatprep.mubr.f32.mxu1 %v9580_v22  ;;  %v9809_v6 = vand.u32 4294901760, %v9528_v0  ;;  %v9812_v38 = vand.u32 4294901760, %v9811_v23  ;;  %v9814_v14 = vand.u32 4294901760, %v6554_v1  ;;  %v9839_v2 = vld [vmem:[#allocation75_spill] sm:$0xff] }
 0x24e   :  { %v5552_v49 = vpack.c.bf16 %v9803_v42, %v9802_v12  ;;  %2418 = vmatprep.mubr.f32.mxu0 %v9580_v22  ;;  %v5554_v59 = vpack.c.bf16 %v9807_v58, %v9806_v39  ;;  %v5558_v43 = vpack.c.bf16 %v9816_v19, %v9815_v62  ;;  %v9817_v0 = vand.u32 4294901760, %v6574_v63  ;;  %v9841_v12 = vld [vmem:[#allocation76_spill] sm:$0xff]  ;;  %v9849_v39 = vld [vmem:[#allocation82_spill] sm:$0xff]  ;;  %v9862_v19 = vld [vmem:[#allocation17_spill] sm:$0xff] }
 0x24f   :  { %5359 = vmatpush1.bf16.msra.mxu1 %v5358_v33  ;;  %v5364_v21 = vpack.c.bf16 %v9809_v6, %v9808_v47  ;;  %v5556_v10 = vpack.c.bf16 %v9812_v38, %v9810_v53  ;;  %v5366_v5 = vpack.c.bf16 %v9814_v14, %v9813_v52  ;;  %v9819_v55 = vand.u32 4294901760, %v6584_v40  ;;  %v9853_v47 = vld [vmem:[#allocation85_spill] sm:$0xff]  ;;  %v9855_v53 = vld [vmem:[#allocation86_spill] sm:$0xff]  ;;  %v9857_v38 = vld [vmem:[#allocation88_spill] sm:$0xff] }
 0x250   :  { %5551 = vmatpush1.bf16.msra.mxu0 %v5550_v16  ;;  %5361 = vmatprep.subr.bf16.mxu1 %v5360_v46  ;;  %v5368_v41 = vpack.c.bf16 %v9818_v31, %v9817_v0  ;;  %v9821_v1 = vand.u32 4294901760, %v6597_v60  ;;  %v9823_v35 = vand.u32 4294901760, %v6605_v27  ;;  %v9826_v40 = vand.u32 4294901760, %v6766_v26  ;;  %v9859_v14 = vld [vmem:[#allocation12_spill] sm:$0xff]  ;;  %v9861_v62 = vld [vmem:[#allocation18_spill] sm:$0xff]  ;;  %v9864_v0 = vld [vmem:[#allocation23_spill] sm:$0xff] }
 0x251   :  { %5553 = vmatprep.subr.bf16.mxu0 %v5552_v49  ;;  %v5560_v13 = vpack.c.bf16 %v9820_v11, %v9819_v55  ;;  %v9828_v33 = vand.u32 4294901760, %v6770_v28  ;;  %v9830_v27 = vand.u32 4294901760, %v6775_v18  ;;  %v5566_v36 = vpack.c.bf16 %v9832_v54, %v9831_v30  ;;  %v9865_v31 = vld [vmem:[#allocation55_spill] sm:$0xff]  ;;  %v9867_v55 = vld [vmem:[#allocation56_spill] sm:$0xff]  ;;  %v9886_v30 = vld [vmem:[#allocation69_spill] sm:$0xff] }
 0x252   :  { %v5370_v7 = vpack.c.bf16 %v9822_v37, %v9821_v1  ;;  %v5562_v63 = vpack.c.bf16 %v9824_v24, %v9823_v35  ;;  %v5372_v50 = vpack.c.bf16 %v9826_v40, %v9825_v61  ;;  %v9833_v26 = vand.u32 4294901760, %v9723_v57  ;;  %v9868_v11 = vld [vmem:[#allocation32_spill] sm:$0xff]  ;;  %v9870_v1 = vld [vmem:[#allocation38_spill] sm:$0xff]  ;;  %v9873_v35 = vld [vmem:[#allocation59_spill] sm:$0xff] }
 0x253   :  { %5363 = vmatpush1.bf16.msra.mxu1 %v5362_v34  ;;  %v5564_v60 = vpack.c.bf16 %v9828_v33, %v9827_v9  ;;  %v5374_v3 = vpack.c.bf16 %v9830_v27, %v9829_v25  ;;  %v9835_v16 = vand.u32 4294901760, %v6786_v17  ;;  %v9836_v20 = vand.u32 4294901760, %v6788_v44  ;;  %v9845_v17 = vld [vmem:[#allocation79_spill] sm:$0xff]  ;;  %v9871_v37 = vld [vmem:[#allocation58_spill] sm:$0xff]  ;;  %v9877_v61 = vld [vmem:[#allocation61_spill] sm:$0xff] }
 0x254   :  { %5555 = vmatpush1.bf16.msra.mxu0 %v5554_v59  ;;  %5365 = vmatprep.subr.bf16.mxu1 %v5364_v21  ;;  %v5376_v28 = vpack.c.bf16 %v9834_v32, %v9833_v26  ;;  %v9837_v18 = vand.u32 4294901760, %v9728_v15  ;;  %v9838_v8 = vand.u32 4294901760, %v9727_v29  ;;  %v9840_v46 = vand.u32 4294901760, %v9839_v2  ;;  %v9851_v29 = vld [vmem:[#allocation84_spill] sm:$0xff]  ;;  %v9874_v24 = vld [vmem:[#allocation47_spill] sm:$0xff]  ;;  %v9883_v25 = vld [vmem:[#allocation66_spill] sm:$0xff] }
 0x255   :  { %5557 = vmatprep.subr.bf16.mxu0 %v5556_v10  ;;  %v5568_v45 = vpack.c.bf16 %v9836_v20, %v9835_v16  ;;  %v9842_v42 = vand.u32 4294901760, %v9841_v12  ;;  %v9844_v49 = vand.u32 4294901760, %v9843_v51  ;;  %v9846_v48 = vand.u32 4294901760, %v9845_v17  ;;  %v9878_v40 = vld [vmem:[#allocation52_spill] sm:$0xff]  ;;  %v9880_v9 = vld [vmem:[#allocation63_spill] sm:$0xff]  ;;  %v9887_v54 = vld [vmem:[#allocation70_spill] sm:$0xff] }
 0x256   :  { %v5378_v4 = vpack.c.bf16 %v9838_v8, %v9837_v18  ;;  %v9848_v34 = vand.u32 4294901760, %v9847_v56  ;;  %v9850_v58 = vand.u32 4294901760, %v9849_v39  ;;  %v9852_v59 = vand.u32 4294901760, %v9851_v29  ;;  %v9881_v33 = vld [vmem:[#allocation64_spill] sm:$0xff]  ;;  %v9884_v27 = vld [vmem:[#allocation67_spill] sm:$0xff]  ;;  %v9889_v26 = vld [vmem:[#allocation81_spill] sm:$0xff] }
 0x257   :  { %5367 = vmatpush1.bf16.msra.mxu1 %v5366_v5  ;;  %v5570_v57 = vpack.c.bf16 %v9842_v42, %v9840_v46  ;;  %v5380_v44 = vpack.c.bf16 %v9846_v48, %v9844_v49  ;;  %v9854_v6 = vand.u32 4294901760, %v9853_v47  ;;  %v9856_v23 = vand.u32 4294901760, %v9855_v53  ;;  %v9860_v5 = vld [vmem:[#allocation53_spill] sm:$0xff]  ;;  %v9890_v32 = vld [vmem:[#allocation30_spill] sm:$0xff]  ;;  %v9892_v16 = vld [vmem:[#allocation31_spill] sm:$0xff] }
 0x258   :  { %5559 = vmatpush1.bf16.msra.mxu0 %v5558_v43  ;;  %5369 = vmatprep.subr.bf16.mxu1 %v5368_v41  ;;  %v5572_v15 = vpack.c.bf16 %v9850_v58, %v9848_v34  ;;  %v9858_v10 = vand.u32 4294901760, %v9857_v38  ;;  %v9863_v43 = vld [vmem:[#allocation54_spill] sm:$0xff]  ;;  %v9866_v41 = vld [vmem:[#allocation28_spill] sm:$0xff]  ;;  %v9893_v20 = vand.u32 4294901760, %v9892_v16  ;;  %v9900_v12 = vld [vmem:[#allocation83_spill] sm:$0xff] }
 0x259   :  { %5561 = vmatprep.subr.bf16.mxu0 %v5560_v13  ;;  %v5382_v21 = vpack.c.bf16 %v9854_v6, %v9852_v59  ;;  %v9869_v13 = vld [vmem:[#allocation57_spill] sm:$0xff]  ;;  %v9895_v18 = vld [vmem:[#allocation34_spill] sm:$0xff]  ;;  %v9901_v42 = vld [vmem:[#allocation87_spill] sm:$0xff] }
 0x25a   :  { %v5574_v52 = vpack.c.bf16 %v9858_v10, %v9856_v23  ;;  %v9896_v8 = vand.u32 4294901760, %v9895_v18  ;;  %v9904_v49 = vld [vmem:[#allocation37_spill] sm:$0xff]  ;;  %v9909_v34 = vld [vmem:[#allocation40_spill] sm:$0xff] }
 0x25b   :  { %5371 = vmatpush1.bf16.msra.mxu1 %v5370_v7  ;;  %v9872_v7 = vld [vmem:[#allocation42_spill] sm:$0xff]  ;;  %v9905_v17 = vand.u32 4294901760, %v9904_v49  ;;  %v9910_v39 = vand.u32 4294901760, %v9909_v34  ;;  %v9914_v59 = vld [vmem:[#allocation33_spill] sm:$0xff] }
 0x25c   :  { %5563 = vmatpush1.bf16.msra.mxu0 %v5562_v63  ;;  %5373 = vmatprep.subr.bf16.mxu1 %v5372_v50  ;;  %v9875_v63 = vld [vmem:[#allocation60_spill] sm:$0xff]  ;;  %v9879_v50 = vld [vmem:[#allocation62_spill] sm:$0xff]  ;;  %v9915_v47 = vand.u32 4294901760, %v9914_v59  ;;  %v9919_v23 = vld [vmem:[#allocation41_spill] sm:$0xff] }
 0x25d   :  { %5565 = vmatprep.subr.bf16.mxu0 %v5564_v60  ;;  %v9882_v60 = vld [vmem:[#allocation65_spill] sm:$0xff]  ;;  %v9920_v38 = vand.u32 4294901760, %v9919_v23  ;;  %v7930_v59 = vld [vmem:[#allocation7 + $0x1c0] sm:$0xff] }
 0x25e   :  { %v9188_v23 = vand.u32 4294901760, %v7930_v59 }
 0x25f   :  { %5375 = vmatpush1.bf16.msra.mxu1 %v5374_v3  ;;  %v9885_v3 = vld [vmem:[#allocation68_spill] sm:$0xff] }
 0x260   :  { %5567 = vmatpush1.bf16.msra.mxu0 %v5566_v36  ;;  %5377 = vmatprep.subr.bf16.mxu1 %v5376_v28  ;;  %v9888_v36 = vld [vmem:[#allocation77_spill] sm:$0xff]  ;;  %v9891_v28 = vand.u32 4294901760, %v9890_v32  ;;  %v9954_v32 = vld [vmem:[#allocation116_spill] sm:$0xff] }
 0x261   :  { %5569 = vmatprep.subr.bf16.mxu0 %v5568_v45 }
 0x262   :  { %v7814_v45 = vpack.c.bf16 %v9893_v20, %v9891_v28  ;;  %v9955_v28 = vand.u32 4294901760, %v9954_v32  ;;  %v9957_v20 = vld [vmem:[#allocation117_spill] sm:$0xff] }
 0x263   :  { %5379 = vmatpush1.bf16.msra.mxu1 %v5378_v4  ;;  %v9897_v4 = vld [vmem:[#allocation35_spill] sm:$0xff]  ;;  %v9958_v18 = vand.u32 4294901760, %v9957_v20 }
 0x264   :  { %5571 = vmatpush1.bf16.msra.mxu0 %v5570_v57  ;;  %5381 = vmatprep.subr.bf16.mxu1 %v5380_v44  ;;  %9894 = vst [vmem:[#allocation74_spill] sm:$0xff] %v7814_v45  ;;  %v9898_v2 = vand.u32 4294901760, %v9897_v4  ;;  %v9902_v57 = vld [vmem:[#allocation36_spill] sm:$0xff]  ;;  %v9907_v44 = vld [vmem:[#allocation39_spill] sm:$0xff] }
 0x265   :  { %5573 = vmatprep.subr.bf16.mxu0 %v5572_v15  ;;  %v9903_v51 = vand.u32 4294901760, %v9902_v57  ;;  %v9908_v56 = vand.u32 4294901760, %v9907_v44  ;;  %v9912_v15 = vld [vmem:[#allocation90_spill] sm:$0xff]  ;;  %v9964_v57 = vld [vmem:[#allocation124_spill] sm:$0xff] }
 0x266   :  { %v7820_v46 = vpack.c.bf16 %v9898_v2, %v9896_v8  ;;  %v9913_v29 = vand.u32 4294901760, %v9912_v15  ;;  %v9959_v8 = vld [vmem:[#allocation121_spill] sm:$0xff]  ;;  %v7926_v15 = vld [vmem:[#allocation7 + $0xc0] sm:$0xff] }
 0x267   :  { %5383 = vmatpush1.bf16.msra.mxu1 %v5382_v21  ;;  %v7828_v48 = vpack.c.bf16 %v9905_v17, %v9903_v51  ;;  %v7834_v58 = vpack.c.bf16 %v9910_v39, %v9908_v56  ;;  %v9917_v21 = vld [vmem:[#allocation93_spill] sm:$0xff]  ;;  %v9960_v4 = vand.u32 4294901760, %v9959_v8  ;;  %v9965_v51 = vand.u32 4294901760, %v9964_v57  ;;  %v9967_v17 = vld [vmem:[#allocation126_spill] sm:$0xff]  ;;  %v8014_v8 = vld [vmem:[#allocation7 + $0xe0] sm:$0xff] }
 0x268   :  { %5575 = vmatpush1.bf16.msra.mxu0 %v5574_v52  ;;  %5385 = vmatprep.subr.bf16.mxu1 %v9859_v14  ;;  %9899 = vst [vmem:[#allocation73_spill] sm:$0xff] %v7820_v46  ;;  %v7842_v6 = vpack.c.bf16 %v9915_v47, %v9913_v29  ;;  %v9918_v53 = vand.u32 4294901760, %v9917_v21  ;;  %v9922_v52 = vld [vmem:[#allocation48_spill] sm:$0xff]  ;;  %v9968_v44 = vand.u32 4294901760, %v9967_v17  ;;  %v9969_v56 = vld [vmem:[#allocation129_spill] sm:$0xff]  ;;  %v9190_v47 = vand.u32 4294901760, %v7926_v15 }
 0x269   :  { %5577 = vmatprep.subr.bf16.mxu0 %v9860_v5  ;;  %9906 = vst [vmem:[#allocation27_spill] sm:$0xff] %v7828_v48  ;;  %9911 = vst [vmem:[#allocation13_spill] sm:$0xff] %v7834_v58  ;;  %v9923_v14 = vand.u32 4294901760, %v9922_v52  ;;  %v9924_v5 = vld [vmem:[#allocation50_spill] sm:$0xff]  ;;  %v7906_v2 = vpack.c.bf16 %v9960_v4, %v9958_v18  ;;  %v9970_v34 = vand.u32 4294901760, %v9969_v56  ;;  %v7928_v29 = vld [vmem:[#allocation7 + $0xc8] sm:$0xff] }
 0x26a   :  { %1565 = vmatmul.mubr.f32.vlgmr.msra.gmra.mrb[0].mxu1 %v9861_v62  ;;  %9916 = vst [vmem:[#allocation14_spill] sm:$0xff] %v7842_v6  ;;  %v7848_v10 = vpack.c.bf16 %v9920_v38, %v9918_v53  ;;  %v9189_v21 = vand.u32 4294901760, %v7928_v29  ;;  %v7934_v53 = vld [vmem:[#allocation7 + $0x1c8] sm:$0xff]  ;;  %v7937_v38 = vld [vmem:[#allocation7 + $0x40] sm:$0xff] }
 0x26b   :  { %2420 = vmatmul.mubr.f32.vlgmr.msra.gmra.mrb[2].mxu0 %v9861_v62  ;;  %5387 = vmatpush1.bf16.msra.mxu1 %v9862_v19  ;;  %v9925_v19 = vand.u32 4294901760, %v9924_v5  ;;  %9961 = vst [vmem:[#allocation26_spill] sm:$0xff] %v7906_v2  ;;  %v7920_v39 = vpack.c.bf16 %v9970_v34, %v9968_v44  ;;  %v7939_v52 = vld [vmem:[#allocation7 + $0x48] sm:$0xff]  ;;  %v9186_v5 = vand.u32 4294901760, %v7937_v38  ;;  %v2546_v56 = vld [vmem:[#allocation7 + $0x60] sm:$0xff] }
 0x26c   :  { %5579 = vmatpush1.bf16.msra.mxu0 %v9863_v43  ;;  %5389 = vmatprep.subr.bf16.mxu1 %v9864_v0  ;;  %9921 = vst [vmem:[#allocation15_spill] sm:$0xff] %v7848_v10  ;;  %v9927_v0 = vld [vmem:[#allocation94_spill] sm:$0xff]  ;;  %v8016_v4 = vld [vmem:[#allocation7 + $0xe8] sm:$0xff] }
 0x26d   :  { %5581 = vmatprep.subr.bf16.mxu0 %v9865_v31  ;;  %1667 = vmatprep.mubr.f32.mxu1 %v9580_v22  ;;  %v7858_v43 = vpack.c.bf16 %v9925_v19, %v9923_v14  ;;  %v9928_v31 = vand.u32 4294901760, %v9927_v0  ;;  %9971 = vst [vmem:[#allocation46_spill] sm:$0xff] %v7920_v39  ;;  %v9187_v14 = vand.u32 4294901760, %v7934_v53  ;;  %v9185_v19 = vand.u32 4294901760, %v7939_v52  ;;  %v7944_v0 = vld [vmem:[#allocation7 + $0x140] sm:$0xff]  ;;  %v2595_v44 = vld [vmem:[#allocation7 + $0x1e8] sm:$0xff] }
 0x26e   :  { %2522 = vmatprep.mubr.f32.mxu0 %v9580_v22  ;;  %v9876_v22 = vld [vmem:[#allocation51_spill] sm:$0xff]  ;;  %v2693_v17 = vand.u32 4294901760, %v8016_v4  ;;  %v2547_v34 = vld [vmem:[#allocation7 + $0x68] sm:$0xff] }
 0x26f   :  { %5391 = vmatpush1.bf16.msra.mxu1 %v9866_v41  ;;  %9926 = vst [vmem:[#allocation16_spill] sm:$0xff] %v7858_v43  ;;  %v9929_v41 = vld [vmem:[#allocation96_spill] sm:$0xff] }
 0x270   :  { %5583 = vmatpush1.bf16.msra.mxu0 %v9867_v55  ;;  %5393 = vmatprep.subr.bf16.mxu1 %v9868_v11  ;;  %v9930_v55 = vand.u32 4294901760, %v9929_v41  ;;  %v7952_v41 = vpack.c.bf16 %v9189_v21, %v9190_v47 }
 0x271   :  { %5585 = vmatprep.subr.bf16.mxu0 %v9869_v13 }
 0x272   :  { %v7864_v11 = vpack.c.bf16 %v9930_v55, %v9928_v31  ;;  %v7946_v31 = vld [vmem:[#allocation7 + $0x148] sm:$0xff]  ;;  %9972 = vst [vmem:[#allocation75_spill] sm:$0xff] %v7952_v41  ;;  %v9184_v55 = vand.u32 4294901760, %v7944_v0 }
 0x273   :  { %5395 = vmatpush1.bf16.msra.mxu1 %v9870_v1  ;;  %v9934_v1 = vld [vmem:[#allocation100_spill] sm:$0xff] }
 0x274   :  { %5587 = vmatpush1.bf16.msra.mxu0 %v9871_v37  ;;  %5397 = vmatprep.subr.bf16.mxu1 %v9872_v7  ;;  %9931 = vst [vmem:[#allocation19_spill] sm:$0xff] %v7864_v11  ;;  %v9935_v37 = vand.u32 4294901760, %v9934_v1  ;;  %v9183_v1 = vand.u32 4294901760, %v7946_v31 }
 0x275   :  { %5589 = vmatprep.subr.bf16.mxu0 %v9873_v35  ;;  %v9937_v35 = vld [vmem:[#allocation101_spill] sm:$0xff] }
 0x277   :  { %5399 = vmatpush1.bf16.msra.mxu1 %v9874_v24  ;;  %v9938_v24 = vand.u32 4294901760, %v9937_v35  ;;  %v7970_v35 = vld [vmem:[#allocation7 + $0xd8] sm:$0xff] }
 0x278   :  { %5591 = vmatpush1.bf16.msra.mxu0 %v9875_v63  ;;  %5401 = vmatprep.subr.bf16.mxu1 %v9876_v22  ;;  %v9939_v63 = vld [vmem:[#allocation104_spill] sm:$0xff] }
 0x279   :  { %5593 = vmatprep.subr.bf16.mxu0 %v9877_v61  ;;  %v9940_v22 = vand.u32 4294901760, %v9939_v63 }
 0x27b   :  { %5403 = vmatpush1.bf16.msra.mxu1 %v9878_v40  ;;  %v7878_v61 = vpack.c.bf16 %v9940_v22, %v9938_v24  ;;  %v9942_v40 = vld [vmem:[#allocation105_spill] sm:$0xff]  ;;  %v9179_v22 = vand.u32 4294901760, %v7970_v35 }
 0x27c   :  { %5595 = vmatpush1.bf16.msra.mxu0 %v9879_v50  ;;  %5405 = vmatprep.subr.bf16.mxu1 %v9880_v9  ;;  %v9943_v50 = vand.u32 4294901760, %v9942_v40  ;;  %v9944_v9 = vld [vmem:[#allocation108_spill] sm:$0xff]  ;;  %v7972_v24 = vld [vmem:[#allocation7 + $0x1d0] sm:$0xff]  ;;  %v7977_v40 = vld [vmem:[#allocation7 + $0x1d8] sm:$0xff] }
 0x27d   :  { %5597 = vmatprep.subr.bf16.mxu0 %v9881_v33  ;;  %9941 = vst [vmem:[#allocation21_spill] sm:$0xff] %v7878_v61  ;;  %v9945_v33 = vand.u32 4294901760, %v9944_v9  ;;  %v7981_v9 = vld [vmem:[#allocation7 + $0x58] sm:$0xff] }
 0x27e   :  { %v9177_v32 = vand.u32 4294901760, %v7981_v9 }
 0x27f   :  { %5407 = vmatpush1.bf16.msra.mxu1 %v9882_v60  ;;  %v7886_v60 = vpack.c.bf16 %v9945_v33, %v9943_v50  ;;  %v7979_v50 = vld [vmem:[#allocation7 + $0x50] sm:$0xff]  ;;  %v7989_v33 = vpack.c.bf16 %v9183_v1, %v9184_v55 }
 0x280   :  { %5599 = vmatpush1.bf16.msra.mxu0 %v9883_v25  ;;  %5409 = vmatprep.subr.bf16.mxu1 %v9884_v27  ;;  %v9947_v25 = vld [vmem:[#allocation110_spill] sm:$0xff] }
 0x281   :  { %5601 = vmatprep.subr.bf16.mxu0 %v9885_v3  ;;  %9946 = vst [vmem:[#allocation22_spill] sm:$0xff] %v7886_v60  ;;  %v9948_v27 = vand.u32 4294901760, %v9947_v25  ;;  %v9949_v3 = vld [vmem:[#allocation113_spill] sm:$0xff]  ;;  %9975 = vst [vmem:[#allocation79_spill] sm:$0xff] %v7989_v33  ;;  %v9176_v25 = vand.u32 4294901760, %v7972_v24 }
 0x283   :  { %5411 = vmatpush1.bf16.msra.mxu1 %v9886_v30  ;;  %v9950_v30 = vand.u32 4294901760, %v9949_v3  ;;  %v9178_v3 = vand.u32 4294901760, %v7979_v50 }
 0x284   :  { %5603 = vmatpush1.bf16.msra.mxu0 %v9887_v54  ;;  %5413 = vmatprep.subr.bf16.mxu1 %v9888_v36  ;;  %v9952_v36 = vld [vmem:[#allocation114_spill] sm:$0xff] }
 0x285   :  { %5605 = vmatprep.subr.bf16.mxu0 %v9889_v26  ;;  %v7892_v54 = vpack.c.bf16 %v9950_v30, %v9948_v27  ;;  %v9953_v26 = vand.u32 4294901760, %v9952_v36  ;;  %v9175_v27 = vand.u32 4294901760, %v7977_v40  ;;  %v7994_v30 = vld [vmem:[#allocation7 + $0x150] sm:$0xff]  ;;  %v7996_v36 = vld [vmem:[#allocation7 + $0x158] sm:$0xff] }
 0x286   :  { %v9181_v20 = vand.u32 4294901760, %v7996_v36 }
 0x287   :  { %5415 = vmatpush1.bf16.msra.mxu1 %v9900_v12  ;;  %9951 = vst [vmem:[#allocation24_spill] sm:$0xff] %v7892_v54  ;;  %v7900_v16 = vpack.c.bf16 %v9955_v28, %v9953_v26  ;;  %v9962_v12 = vld [vmem:[#allocation122_spill] sm:$0xff]  ;;  %v9182_v28 = vand.u32 4294901760, %v7994_v30  ;;  %v8012_v18 = vpack.c.bf16 %v9175_v27, %v9176_v25  ;;  %v3555_v25 = vand.u32 4294901760, %v2595_v44 }
 0x288   :  { %5607 = vmatpush1.bf16.msra.mxu0 %v9901_v42  ;;  %5609 = vmatprep.subr.bf16.mxu1 %v7814_v45  ;;  %v9963_v42 = vand.u32 4294901760, %v9962_v12  ;;  %v8018_v12 = vld [vmem:[#allocation7 + $0x1e0] sm:$0xff] }
 0x289   :  { %5801 = vmatprep.subr.bf16.mxu0 %v7820_v46  ;;  %9956 = vst [vmem:[#allocation25_spill] sm:$0xff] %v7900_v16  ;;  %9977 = vst [vmem:[#allocation82_spill] sm:$0xff] %v8012_v18  ;;  %v8031_v57 = vpack.c.bf16 %v9181_v20, %v9182_v28  ;;  %v3552_v27 = vand.u32 4294901760, %v8018_v12  ;;  %v9989_v46 = vand.u32 4294901760, %v7930_v59 }
 0x28a   :  { %1669 = vmatmul.mubr.f32.vlgmr.msra.gmra.mrb[0].mxu1 %v9861_v62  ;;  %v7914_v49 = vpack.c.bf16 %v9965_v51, %v9963_v42  ;;  %v8025_v42 = vpack.c.bf16 %v9177_v32, %v9178_v3  ;;  %v2690_v51 = vand.u32 4294901760, %v8014_v8  ;;  %v2642_v32 = vand.u32 4294901760, %v2546_v56 }
 0x28b   :  { %2524 = vmatmul.mubr.f32.vlgmr.msra.gmra.mrb[2].mxu0 %v9861_v62  ;;  %5611 = vmatpush3.bf16.msra.mxu1 %v7828_v48  ;;  %v9932_v62 = vld [vmem:[#allocation97_spill] sm:$0xff]  ;;  %9979 = vst [vmem:[#allocation85_spill] sm:$0xff] %v8031_v57  ;;  %v2645_v3 = vand.u32 4294901760, %v2547_v34  ;;  %v8041_v55 = vpack.c.bf16 %v3555_v25, %v3552_v27 }
 0x28c   :  { %5803 = vmatpush3.bf16.msra.mxu0 %v7834_v58  ;;  %5613 = vmatprep.subr.bf16.mxu1 %v7842_v6  ;;  %v9933_v13 = vand.u32 4294901760, %v9932_v62  ;;  %9966 = vst [vmem:[#allocation29_spill] sm:$0xff] %v7914_v49  ;;  %v7959_v62 = vpack.c.bf16 %v9187_v14, %v9188_v23  ;;  %9978 = vst [vmem:[#allocation84_spill] sm:$0xff] %v8025_v42  ;;  %v8038_v20 = vpack.c.bf16 %v2693_v17, %v2690_v51  ;;  %v2565_v14 = vld [vmem:[#allocation7 + $0xf8] sm:$0xff]  ;;  %v2596_v23 = vld [vmem:[#allocation7 + $0x1f0] sm:$0xff] }
 0x28d   :  { %5805 = vmatprep.subr.bf16.mxu0 %v7848_v10  ;;  %9981 = vst [vmem:[#allocation88_spill] sm:$0xff] %v8041_v55  ;;  %v2581_v10 = vld [vmem:[#allocation7 + $0x178] sm:$0xff]  ;;  %v9984_v58 = vld [vmem:[#allocation49_spill] sm:$0xff] }
 0x28e   :  { %v7872_v7 = vpack.c.bf16 %v9935_v37, %v9933_v13  ;;  %9973 = vst [vmem:[#allocation76_spill] sm:$0xff] %v7959_v62  ;;  %v7965_v13 = vpack.c.bf16 %v9185_v19, %v9186_v5  ;;  %v7968_v37 = vld [vmem:[#allocation7 + $0xd0] sm:$0xff]  ;;  %9980 = vst [vmem:[#allocation86_spill] sm:$0xff] %v8038_v20  ;;  %v8043_v19 = vpack.c.bf16 %v2645_v3, %v2642_v32 }
 0x28f   :  { %5615 = vmatpush3.bf16.msra.mxu1 %v7858_v43  ;;  %v9180_v63 = vand.u32 4294901760, %v7968_v37  ;;  %v2564_v5 = vld [vmem:[#allocation7 + $0xf0] sm:$0xff] }
 0x290   :  { %9936 = vst [vmem:[#allocation20_spill] sm:$0xff] %v7872_v7  ;;  %5807 = vmatpush3.bf16.msra.mxu0 %v7864_v11  ;;  %5617 = vmatprep.subr.bf16.mxu1 %v7872_v7  ;;  %9974 = vst [vmem:[#allocation78_spill] sm:$0xff] %v7965_v13  ;;  %v2696_v47 = vand.u32 4294901760, %v2564_v5  ;;  %v2580_v11 = vld [vmem:[#allocation7 + $0x170] sm:$0xff]  ;;  %v9991_v7 = vand.u32 4294901760, %v7934_v53 }
 0x291   :  { %5809 = vmatprep.subr.bf16.mxu0 %v7878_v61  ;;  %v8002_v26 = vpack.c.bf16 %v9179_v22, %v9180_v63  ;;  %v2578_v22 = vld [vmem:[#allocation7 + $0x160] sm:$0xff]  ;;  %v2579_v63 = vld [vmem:[#allocation7 + $0x168] sm:$0xff]  ;;  %9982 = vst [vmem:[#allocation12_spill] sm:$0xff] %v8043_v19 }
 0x292   :  { %v3504_v28 = vand.u32 4294901760, %v2578_v22  ;;  %v3507_v1 = vand.u32 4294901760, %v2579_v63  ;;  %v8072_v43 = vsub.f32 %v7934_v53, %v9991_v7  ;;  %v9999_v7 = vand.u32 4294901760, %v7946_v31 }
 0x293   :  { %5619 = vmatpush3.bf16.msra.mxu1 %v7886_v60  ;;  %9976 = vst [vmem:[#allocation80_spill] sm:$0xff] %v8002_v26 }
 0x294   :  { %5811 = vmatpush3.bf16.msra.mxu0 %v7892_v54  ;;  %5621 = vmatprep.subr.bf16.mxu1 %v7900_v16  ;;  %v8046_v21 = vpack.c.bf16 %v3507_v1, %v3504_v28  ;;  %9992 = vst [vmem:[#allocation54_spill] sm:$0xff] %v8072_v43  ;;  %v8093_v53 = vsub.f32 %v7946_v31, %v9999_v7  ;;  %v10007_v31 = vand.u32 4294901760, %v7977_v40 }
 0x295   :  { %5813 = vmatprep.subr.bf16.mxu0 %v7906_v2  ;;  %v2549_v2 = vld [vmem:[#allocation7 + $0x78] sm:$0xff] }
 0x296   :  { %9983 = vst [vmem:[#allocation53_spill] sm:$0xff] %v8046_v21  ;;  %v2651_v61 = vand.u32 4294901760, %v2549_v2  ;;  %10000 = vst [vmem:[#allocation56_spill] sm:$0xff] %v8093_v53  ;;  %v8114_v7 = vsub.f32 %v7977_v40, %v10007_v31  ;;  %v8137_v31 = vsub.f32 %v8014_v8, %v2690_v51 }
 0x297   :  { %5623 = vmatpush3.bf16.msra.mxu1 %v7914_v49  ;;  %v9987_v49 = vand.u32 4294901760, %v7926_v15 }
 0x298   :  { %5815 = vmatpush3.bf16.msra.mxu0 %v7920_v39  ;;  %5625 = vmatprep.subr.bf16.mxu1 %v7952_v41  ;;  %v2548_v39 = vld [vmem:[#allocation7 + $0x70] sm:$0xff]  ;;  %10008 = vst [vmem:[#allocation58_spill] sm:$0xff] %v8114_v7  ;;  %v10009_v41 = vand.u32 4294901760, %v7979_v50  ;;  %10017 = vst [vmem:[#allocation51_spill] sm:$0xff] %v8137_v31 }
 0x299   :  { %5817 = vmatprep.subr.bf16.mxu0 %v7959_v62  ;;  %v3558_v62 = vand.u32 4294901760, %v2596_v23  ;;  %v2648_v54 = vand.u32 4294901760, %v2548_v39  ;;  %v8057_v16 = vsub.f32 %v7926_v15, %v9987_v49  ;;  %v9993_v49 = vand.u32 4294901760, %v7937_v38 }
 0x29b   :  { %5627 = vmatpush3.bf16.msra.mxu1 %v7965_v13  ;;  %v9986_v13 = vld [vmem:[#allocation89_spill] sm:$0xff]  ;;  %v8078_v15 = vsub.f32 %v7937_v38, %v9993_v49  ;;  %v10001_v38 = vand.u32 4294901760, %v7968_v37 }
 0x29c   :  { %5819 = vmatpush3.bf16.msra.mxu0 %v7989_v33  ;;  %5629 = vmatprep.subr.bf16.mxu1 %v8002_v26  ;;  %v2597_v33 = vld [vmem:[#allocation7 + $0x1f8] sm:$0xff]  ;;  %v3513_v26 = vand.u32 4294901760, %v2581_v10 }
 0x29d   :  { %5821 = vmatprep.subr.bf16.mxu0 %v8012_v18  ;;  %v2699_v18 = vand.u32 4294901760, %v2565_v14  ;;  %9994 = vst [vmem:[#allocation23_spill] sm:$0xff] %v8078_v15  ;;  %v8099_v49 = vsub.f32 %v7968_v37, %v10001_v38  ;;  %v8119_v37 = vsub.f32 %v7979_v50, %v10009_v41  ;;  %v10011_v38 = vand.u32 4294901760, %v7981_v9 }
 0x29e   :  { %v8140_v41 = vsub.f32 %v8016_v4, %v2693_v17  ;;  %v8143_v50 = vsub.f32 %v8018_v12, %v3552_v27  ;;  %v8161_v4 = vsub.f32 %v2596_v23, %v3558_v62 }
 0x29f   :  { %5631 = vmatpush3.bf16.msra.mxu1 %v8025_v42  ;;  %v3510_v42 = vand.u32 4294901760, %v2580_v11  ;;  %10002 = vst [vmem:[#allocation32_spill] sm:$0xff] %v8099_v49  ;;  %10010 = vst [vmem:[#allocation42_spill] sm:$0xff] %v8119_v37  ;;  %v8157_v8 = vsub.f32 %v2565_v14, %v2699_v18  ;;  %v8176_v14 = vsub.f32 %v2581_v10, %v3513_v26 }
 0x2a0   :  { %5823 = vmatpush3.bf16.msra.mxu0 %v8031_v57  ;;  %5633 = vmatprep.subr.bf16.mxu1 %v8038_v20  ;;  %v3561_v57 = vand.u32 4294901760, %v2597_v33  ;;  %v8051_v20 = vpack.c.bf16 %v2699_v18, %v2696_v47  ;;  %10018 = vst [vmem:[#allocation61_spill] sm:$0xff] %v8140_v41  ;;  %10019 = vst [vmem:[#allocation52_spill] sm:$0xff] %v8143_v50  ;;  %v10043_v18 = vld [vmem:[#allocation99_spill] sm:$0xff] }
 0x2a1   :  { %5825 = vmatprep.subr.bf16.mxu0 %v8041_v55  ;;  %v9988_v55 = vand.u32 4294901760, %v7928_v29  ;;  %10026 = vst [vmem:[#allocation68_spill] sm:$0xff] %v8157_v8  ;;  %10028 = vst [vmem:[#allocation70_spill] sm:$0xff] %v8161_v4  ;;  %v9248_v12 = vand.u32 4294901760, %v10043_v18 }
 0x2a2   :  { %9985 = vst [vmem:[#allocation18_spill] sm:$0xff] %v8051_v20  ;;  %v8159_v51 = vpack.c.bf16 %v3561_v57, %v3558_v62  ;;  %v8163_v27 = vsub.f32 %v2597_v33, %v3561_v57  ;;  %10035 = vst [vmem:[#allocation83_spill] sm:$0xff] %v8176_v14  ;;  %v10037_v62 = vand.u32 4294901760, %v9986_v13  ;;  %v10041_v33 = vld [vmem:[#allocation44_spill] sm:$0xff] }
 0x2a3   :  { %5635 = vmatpush3.bf16.msra.mxu1 %v8043_v19  ;;  %v8062_v60 = vsub.f32 %v7928_v29, %v9988_v55  ;;  %v8067_v19 = vsub.f32 %v7930_v59, %v9989_v46  ;;  %v9995_v29 = vand.u32 4294901760, %v7939_v52  ;;  %v9997_v46 = vand.u32 4294901760, %v7944_v0 }
 0x2a4   :  { %5827 = vmatpush3.bf16.msra.mxu0 %v8046_v21  ;;  %5637 = vmatprep.subr.bf16.mxu1 %v8051_v20  ;;  %v8153_v21 = vsub.f32 %v2579_v63, %v3507_v1  ;;  %10027 = vst [vmem:[#allocation69_spill] sm:$0xff] %v8159_v51  ;;  %10029 = vst [vmem:[#allocation77_spill] sm:$0xff] %v8163_v27  ;;  %v8172_v1 = vpack.c.bf16 %v3513_v26, %v3510_v42  ;;  %v10040_v63 = vld [vmem:[#allocation43_spill] sm:$0xff]  ;;  %v10042_v26 = vld [vmem:[#allocation98_spill] sm:$0xff] }
 0x2a5   :  { %9990 = vst [vmem:[#allocation17_spill] sm:$0xff] %v8067_v19  ;;  %v8083_v55 = vsub.f32 %v7939_v52, %v9995_v29  ;;  %v8088_v59 = vsub.f32 %v7944_v0, %v9997_v46  ;;  %v10003_v52 = vand.u32 4294901760, %v7970_v35  ;;  %v10005_v0 = vand.u32 4294901760, %v7972_v24  ;;  %5829 = vmatprep.subr.bf16.mxu0 %v8159_v51  ;;  %v10047_v20 = vld [vmem:[#allocation115_spill] sm:$0xff] }
 0x2a6   :  { %10024 = vst [vmem:[#allocation66_spill] sm:$0xff] %v8153_v21  ;;  %10033 = vst [vmem:[#allocation34_spill] sm:$0xff] %v8172_v1  ;;  %v9264_v6 = vand.u32 4294901760, %v10047_v20 }
 0x2a7   :  { %9996 = vst [vmem:[#allocation55_spill] sm:$0xff] %v8083_v55  ;;  %9998 = vst [vmem:[#allocation28_spill] sm:$0xff] %v8088_v59  ;;  %v8104_v29 = vsub.f32 %v7970_v35, %v10003_v52  ;;  %v8109_v46 = vsub.f32 %v7972_v24, %v10005_v0  ;;  %v8124_v35 = vsub.f32 %v7981_v9, %v10011_v38  ;;  %v10013_v52 = vand.u32 4294901760, %v7994_v30 }
 0x2a8   :  { %v10015_v0 = vand.u32 4294901760, %v7996_v36  ;;  %v8145_v9 = vsub.f32 %v2595_v44, %v3555_v25  ;;  %v8147_v38 = vsub.f32 %v2546_v56, %v2642_v32  ;;  %v8165_v25 = vpack.c.bf16 %v2651_v61, %v2648_v54  ;;  %5831 = vmatpush3.bf16.msra.mxu0 %v8172_v1 }
 0x2a9   :  { %10004 = vst [vmem:[#allocation57_spill] sm:$0xff] %v8104_v29  ;;  %10006 = vst [vmem:[#allocation38_spill] sm:$0xff] %v8109_v46  ;;  %v8129_v24 = vsub.f32 %v7994_v30, %v10013_v52  ;;  %v8149_v30 = vsub.f32 %v2547_v34, %v2645_v3  ;;  %v8151_v52 = vsub.f32 %v2578_v22, %v3504_v28  ;;  %v9241_v22 = vand.u32 4294901760, %v10040_v63  ;;  %v10044_v34 = vld [vmem:[#allocation106_spill] sm:$0xff] }
 0x2aa   :  { %10012 = vst [vmem:[#allocation59_spill] sm:$0xff] %v8124_v35  ;;  %v8134_v40 = vsub.f32 %v7996_v36, %v10015_v0  ;;  %10020 = vst [vmem:[#allocation62_spill] sm:$0xff] %v8145_v9  ;;  %v8155_v36 = vsub.f32 %v2564_v5, %v2696_v47  ;;  %v8167_v32 = vsub.f32 %v2548_v39, %v2648_v54  ;;  %v10036_v5 = vand.u32 4294901760, %v9984_v58 }
 0x2ab   :  { %10014 = vst [vmem:[#allocation47_spill] sm:$0xff] %v8129_v24  ;;  %10021 = vst [vmem:[#allocation63_spill] sm:$0xff] %v8147_v38  ;;  %v8169_v3 = vsub.f32 %v2549_v2, %v2651_v61  ;;  %v8174_v47 = vsub.f32 %v2580_v11, %v3510_v42  ;;  %5639 = vmatpush3.bf16.msra.mxu1 %v8165_v25  ;;  %v2840_v54 = vsub.f32 %v9986_v13, %v10037_v62  ;;  %v10038_v61 = vld [vmem:[#allocation91_spill] sm:$0xff]  ;;  %v10039_v2 = vld [vmem:[#allocation92_spill] sm:$0xff] }
 0x2ac   :  { %10016 = vst [vmem:[#allocation60_spill] sm:$0xff] %v8134_v40  ;;  %10022 = vst [vmem:[#allocation64_spill] sm:$0xff] %v8149_v30  ;;  %v2833_v23 = vsub.f32 %v9984_v58, %v10036_v5  ;;  %v5864_v39 = vpack.c.bf16 %v10039_v2, %v10038_v61  ;;  %v9244_v11 = vand.u32 4294901760, %v10041_v33  ;;  %v9245_v28 = vand.u32 4294901760, %v10042_v26  ;;  %v10045_v5 = vld [vmem:[#allocation107_spill] sm:$0xff] }
 0x2ad   :  { %10023 = vst [vmem:[#allocation65_spill] sm:$0xff] %v8151_v52  ;;  %10025 = vst [vmem:[#allocation67_spill] sm:$0xff] %v8155_v36  ;;  %v2841_v42 = vand.u32 4294901760, %v2840_v54  ;;  %v2721_v57 = vsub.f32 %v10040_v63, %v9241_v22  ;;  %v2854_v56 = vsub.f32 %v10043_v18, %v9248_v12  ;;  %v9256_v0 = vand.u32 4294901760, %v10044_v34  ;;  %v10046_v12 = vld [vmem:[#allocation112_spill] sm:$0xff] }
 0x2ae   :  { %10030 = vst [vmem:[#allocation81_spill] sm:$0xff] %v8165_v25  ;;  %10031 = vst [vmem:[#allocation30_spill] sm:$0xff] %v8167_v32  ;;  %v2834_v10 = vand.u32 4294901760, %v2833_v23  ;;  %5865 = vmatprep.subr.bf16.mxu0 %v5864_v39  ;;  %v2728_v17 = vsub.f32 %v10041_v33, %v9244_v11  ;;  %v2847_v44 = vsub.f32 %v10042_v26, %v9245_v28  ;;  %v9255_v23 = vand.u32 4294901760, %v10045_v5 }
 0x2af   :  { %10032 = vst [vmem:[#allocation31_spill] sm:$0xff] %v8169_v3  ;;  %10034 = vst [vmem:[#allocation35_spill] sm:$0xff] %v8174_v47  ;;  %v2722_v54 = vand.u32 4294901760, %v2721_v57  ;;  %v2855_v1 = vand.u32 4294901760, %v2854_v56  ;;  %v2735_v11 = vsub.f32 %v10044_v34, %v9256_v0  ;;  %v9261_v25 = vand.u32 4294901760, %v10046_v12 }
 0x2b0   :  { %v5640_v62 = vpack.c.bf16 %v2841_v42, %v2834_v10  ;;  %v2729_v39 = vand.u32 4294901760, %v2728_v17  ;;  %v2848_v22 = vand.u32 4294901760, %v2847_v44  ;;  %v2742_v28 = vsub.f32 %v10045_v5, %v9255_v23  ;;  %v10048_v17 = vld [vmem:[#allocation120_spill] sm:$0xff] }
 0x2b1   :  { %v2736_v42 = vand.u32 4294901760, %v2735_v11  ;;  %v9263_v44 = vand.u32 4294901760, %v10048_v17  ;;  %v2861_v56 = vsub.f32 %v10046_v12, %v9261_v25 }
 0x2b2   :  { %5641 = vmatprep.subr.bf16.mxu1 %v5640_v62  ;;  %v8212_v51 = vpack.c.bf16 %v2729_v39, %v2722_v54  ;;  %v8216_v10 = vpack.c.bf16 %v2855_v1, %v2848_v22  ;;  %v2743_v57 = vand.u32 4294901760, %v2742_v28  ;;  %v2868_v62 = vsub.f32 %v10047_v20, %v9264_v6  ;;  %v10049_v54 = vld [vmem:[#allocation123_spill] sm:$0xff]  ;;  %v10050_v22 = vld [vmem:[#allocation128_spill] sm:$0xff]  ;;  %v10051_v28 = vld [vmem:[#allocation130_spill] sm:$0xff] }
 0x2b3   :  { %v9267_v39 = vand.u32 4294901760, %v10049_v54  ;;  %v2749_v1 = vsub.f32 %v10048_v17, %v9263_v44  ;;  %v9268_v11 = vand.u32 4294901760, %v10050_v22  ;;  %v9269_v0 = vand.u32 4294901760, %v10051_v28  ;;  %v10052_v44 = vld [vmem:[#allocation133_spill] sm:$0xff] }
 0x2b4   :  { %v8226_v23 = vpack.c.bf16 %v2743_v57, %v2736_v42  ;;  %v2862_v48 = vand.u32 4294901760, %v2861_v56  ;;  %v2869_v45 = vand.u32 4294901760, %v2868_v62  ;;  %v9270_v6 = vand.u32 4294901760, %v10052_v44  ;;  %v10053_v56 = vld [vmem:[#allocation134_spill] sm:$0xff] }
 0x2b5   :  { %v2756_v25 = vsub.f32 %v10049_v54, %v9267_v39  ;;  %v2750_v14 = vand.u32 4294901760, %v2749_v1  ;;  %v2875_v42 = vsub.f32 %v10050_v22, %v9268_v11  ;;  %v2882_v57 = vsub.f32 %v10051_v28, %v9269_v0 }
 0x2b6   :  { %v8243_v47 = vpack.c.bf16 %v2869_v45, %v2862_v48  ;;  %v9272_v62 = vand.u32 4294901760, %v10053_v56  ;;  %v2763_v1 = vsub.f32 %v10052_v44, %v9270_v6  ;;  %v9273_v39 = vand.u32 4294901760, %v8057_v16 }
 0x2b7   :  { %v2757_v2 = vand.u32 4294901760, %v2756_v25  ;;  %v2876_v61 = vand.u32 4294901760, %v2875_v42  ;;  %v2883_v27 = vand.u32 4294901760, %v2882_v57  ;;  %v9276_v45 = vand.u32 4294901760, %v8062_v60 }
 0x2b8   :  { %v2770_v0 = vsub.f32 %v10053_v56, %v9272_v62  ;;  %v2764_v25 = vand.u32 4294901760, %v2763_v1  ;;  %v2889_v42 = vsub.f32 %v8057_v16, %v9273_v39  ;;  %v9275_v57 = vand.u32 4294901760, %v8078_v15 }
 0x2b9   :  { %v8250_v11 = vpack.c.bf16 %v2757_v2, %v2750_v14  ;;  %v8256_v48 = vpack.c.bf16 %v2883_v27, %v2876_v61  ;;  %v2896_v14 = vsub.f32 %v8062_v60, %v9276_v45  ;;  %v9279_v2 = vand.u32 4294901760, %v8083_v55 }
 0x2ba   :  { %v2771_v6 = vand.u32 4294901760, %v2770_v0  ;;  %v2890_v4 = vand.u32 4294901760, %v2889_v42  ;;  %v2777_v27 = vsub.f32 %v8078_v15, %v9275_v57  ;;  %v9280_v61 = vand.u32 4294901760, %v8099_v49 }
 0x2bb   :  { %v9281_v1 = vand.u32 4294901760, %v8104_v29  ;;  %v2897_v39 = vand.u32 4294901760, %v2896_v14  ;;  %v2784_v0 = vsub.f32 %v8083_v55, %v9279_v2  ;;  %v9282_v45 = vand.u32 4294901760, %v8119_v37  ;;  %v10086_v55 = vld [vmem:[#allocation92_spill] sm:$0xff] }
 0x2bc   :  { %v8271_v62 = vpack.c.bf16 %v2771_v6, %v2764_v25  ;;  %v2778_v21 = vand.u32 4294901760, %v2777_v27  ;;  %v2903_v42 = vsub.f32 %v8099_v49, %v9280_v61  ;;  %v9284_v25 = vand.u32 4294901760, %v8124_v35 }
 0x2bd   :  { %v2910_v57 = vsub.f32 %v8104_v29, %v9281_v1  ;;  %v8283_v52 = vpack.c.bf16 %v2897_v39, %v2890_v4  ;;  %v2785_v6 = vand.u32 4294901760, %v2784_v0  ;;  %v2791_v27 = vsub.f32 %v8119_v37, %v9282_v45 }
 0x2be   :  { %v2904_v14 = vand.u32 4294901760, %v2903_v42  ;;  %v9285_v2 = vand.u32 4294901760, %v8137_v31  ;;  %v2798_v1 = vsub.f32 %v8124_v35, %v9284_v25  ;;  %v9287_v4 = vand.u32 4294901760, %v8140_v41 }
 0x2bf   :  { %v2911_v9 = vand.u32 4294901760, %v2910_v57  ;;  %v8290_v61 = vpack.c.bf16 %v2785_v6, %v2778_v21  ;;  %v2792_v0 = vand.u32 4294901760, %v2791_v27  ;;  %v9286_v42 = vand.u32 4294901760, %v8147_v38 }
 0x2c0   :  { %v2917_v57 = vsub.f32 %v8137_v31, %v9285_v2  ;;  %v2799_v45 = vand.u32 4294901760, %v2798_v1  ;;  %v2924_v21 = vsub.f32 %v8140_v41, %v9287_v4  ;;  %v9290_v6 = vand.u32 4294901760, %v8149_v30 }
 0x2c1   :  { %v8296_v39 = vpack.c.bf16 %v2911_v9, %v2904_v14  ;;  %v2805_v9 = vsub.f32 %v8147_v38, %v9286_v42  ;;  %v9289_v14 = vand.u32 4294901760, %v8155_v36  ;;  %v9291_v27 = vand.u32 4294901760, %v8157_v8 }
 0x2c2   :  { %v2918_v50 = vand.u32 4294901760, %v2917_v57  ;;  %v8311_v25 = vpack.c.bf16 %v2799_v45, %v2792_v0  ;;  %v2925_v2 = vand.u32 4294901760, %v2924_v21  ;;  %v2812_v1 = vsub.f32 %v8149_v30, %v9290_v6 }
 0x2c3   :  { %10054 = vst [vmem:[#allocation87_spill] sm:$0xff] %v8296_v39  ;;  %v2806_v39 = vand.u32 4294901760, %v2805_v9  ;;  %v2931_v57 = vsub.f32 %v8155_v36, %v9289_v14  ;;  %v2938_v42 = vsub.f32 %v8157_v8, %v9291_v27  ;;  %v9292_v4 = vand.u32 4294901760, %v8167_v32 }
 0x2c4   :  { %10055 = vst [vmem:[#allocation36_spill] sm:$0xff] %v8311_v25  ;;  %v8323_v40 = vpack.c.bf16 %v2925_v2, %v2918_v50  ;;  %v2813_v45 = vand.u32 4294901760, %v2812_v1  ;;  %v9293_v0 = vand.u32 4294901760, %v8169_v3 }
 0x2c5   :  { %v2932_v21 = vand.u32 4294901760, %v2931_v57  ;;  %v2939_v25 = vand.u32 4294901760, %v2938_v42  ;;  %v2819_v9 = vsub.f32 %v8167_v32, %v9292_v4 }
 0x2c6   :  { %v8331_v6 = vpack.c.bf16 %v2813_v45, %v2806_v39  ;;  %v2826_v27 = vsub.f32 %v8169_v3, %v9293_v0 }
 0x2c7   :  { %v8336_v50 = vpack.c.bf16 %v2939_v25, %v2932_v21  ;;  %v2820_v2 = vand.u32 4294901760, %v2819_v9  ;;  %v800_v25 = vlaneseq }
 0x2c8   :  { %v2827_v42 = vand.u32 4294901760, %v2826_v27 }
 0x2c9   :  { %v801_v9 = vshrl.u32 %v800_v25, 7 }
 0x2ca   :  { %v8344_v14 = vpack.c.bf16 %v2827_v42, %v2820_v2  ;;  %v798_v42 = vld [vmem:[%s8865_s4] sm:$0xf] }
 0x2cb   :  { %v802_v39 = vsub.s32 0, %v801_v9  ;;  %v810_v4 = vsub.s32 2, %v801_v9  ;;  %v806_v2 = vsub.s32 1, %v801_v9  ;;  %v814_v57 = vsub.s32 3, %v801_v9 }
 0x2cd   :  { %v803_v0 = vrot.slane %v798_v42, %v802_v39  ;;  %v811_v1 = vrot.slane %v798_v42, %v810_v4  ;;  %v807_v31 = vrot.slane %v798_v42, %v806_v2  ;;  %v815_v45 = vrot.slane %v798_v42, %v814_v57 }
 0x35d   :  { %v1670_v38 = vpop.f32.mrb[0].mxu1 }
 0x35e   :  { %v2525_v30 = vpop.f32.mrb[2].mxu0  ;;  %v5993_v27 = vadd.f32 %v1670_v38, %v803_v0  ;;  %v1672_v8 = vpop.f32.mrb[1].mxu1 }
 0x35f   :  { %v5995_v36 = vadd.f32 %v2525_v30, %v811_v1  ;;  %v2527_v21 = vpop.f32.mrb[3].mxu0  ;;  %v5994_v32 = vadd.f32 %v1672_v8, %v807_v31 }
 0x360   :  { %v5996_v25 = vadd.f32 %v2527_v21, %v815_v45  ;;  %v2530_v3 = vmax.f32 %v5993_v27, 0.0  ;;  %v10062_v27 = vld [vmem:[#allocation45_spill] sm:$0xff]  ;;  %v10063_v21 = vld [vmem:[#allocation95_spill] sm:$0xff] }
 0x361   :  { %v2532_v41 = vmax.f32 %v5995_v36, 0.0  ;;  %v2531_v37 = vmax.f32 %v5994_v32, 0.0  ;;  %v5866_v9 = vpack.c.bf16 %v10063_v21, %v10062_v27 }
 0x362   :  { %v2533_v35 = vmax.f32 %v5996_v25, 0.0  ;;  %v8373_v49 = vand.u32 4294901760, %v2530_v3  ;;  %v10064_v25 = vld [vmem:[#allocation102_spill] sm:$0xff] }
 0x363   :  { %v8375_v29 = vand.u32 4294901760, %v2532_v41  ;;  %v8377_v39 = vand.u32 4294901760, %v2531_v37 }
 0x364   :  { %v8379_v4 = vand.u32 4294901760, %v2533_v35  ;;  %v8382_v57 = vsub.f32 %v2530_v3, %v8373_v49 }
 0x365   :  { %10056 = vst [vmem:[#allocation37_spill] sm:$0xff] %v8375_v29  ;;  %10057 = vst [vmem:[#allocation39_spill] sm:$0xff] %v8377_v39  ;;  %v8385_v38 = vsub.f32 %v2532_v41, %v8375_v29  ;;  %v8388_v31 = vsub.f32 %v2531_v37, %v8377_v39  ;;  %v10067_v29 = vld [vmem:[#allocation111_spill] sm:$0xff] }
 0x366   :  { %10058 = vst [vmem:[#allocation40_spill] sm:$0xff] %v8379_v4  ;;  %10059 = vst [vmem:[#allocation90_spill] sm:$0xff] %v8382_v57  ;;  %v8391_v30 = vsub.f32 %v2533_v35, %v8379_v4  ;;  %v9318_v36 = vand.u32 4294901760, %v8382_v57 }
 0x367   :  { %10060 = vst [vmem:[#allocation33_spill] sm:$0xff] %v8385_v38  ;;  %v9319_v8 = vand.u32 4294901760, %v8385_v38  ;;  %v9320_v32 = vand.u32 4294901760, %v8388_v31 }
 0x368   :  { %10061 = vst [vmem:[#allocation93_spill] sm:$0xff] %v8391_v30  ;;  %v9323_v0 = vand.u32 4294901760, %v8391_v30  ;;  %v2710_v3 = vsub.f32 %v8382_v57, %v9318_v36  ;;  %v10065_v36 = vld [vmem:[#allocation103_spill] sm:$0xff] }
 0x369   :  { %v3572_v37 = vsub.f32 %v8385_v38, %v9319_v8  ;;  %v2704_v35 = vsub.f32 %v8388_v31, %v9320_v32  ;;  %v5868_v8 = vpack.c.bf16 %v10065_v36, %v10064_v25  ;;  %v10066_v32 = vld [vmem:[#allocation109_spill] sm:$0xff]  ;;  %v10085_v57 = vld [vmem:[#allocation91_spill] sm:$0xff] }
 0x36a   :  { %v3566_v41 = vsub.f32 %v8391_v30, %v9323_v0  ;;  %v2711_v2 = vand.u32 4294901760, %v2710_v3  ;;  %v5870_v0 = vpack.c.bf16 %v10067_v29, %v10066_v32  ;;  %v10069_v3 = vld [vmem:[#allocation119_spill] sm:$0xff]  ;;  %v9334_v15 = vand.u32 4294901760, %v10085_v57 }
 0x36b   :  { %v2705_v1 = vand.u32 4294901760, %v2704_v35  ;;  %v3573_v42 = vand.u32 4294901760, %v3572_v37  ;;  %v10068_v35 = vld [vmem:[#allocation118_spill] sm:$0xff] }
 0x36c   :  { %v3567_v45 = vand.u32 4294901760, %v3566_v41  ;;  %v5872_v37 = vpack.c.bf16 %v10069_v3, %v10068_v35  ;;  %v10070_v41 = vld [vmem:[#allocation125_spill] sm:$0xff] }
 0x36d   :  { %2706 = vmatprep.mubr.f32.mxu1 %v2705_v1  ;;  %v10071_v1 = vld [vmem:[#allocation127_spill] sm:$0xff] }
 0x36e   :  { %3568 = vmatprep.mubr.f32.mxu0 %v3567_v45  ;;  %2712 = vmatmul.mubr.f32.vlgmr.msra.gmra.mrb[2].mxu1 %v2711_v2  ;;  %v10072_v45 = vld [vmem:[#allocation131_spill] sm:$0xff] }
 0x36f   :  { %3574 = vmatmul.mubr.f32.vlgmr.msra.gmra.mrb[4].mxu0 %v3573_v42  ;;  %5643 = vmatpush3.bf16.msra.mxu1 %v8212_v51  ;;  %v5874_v51 = vpack.c.bf16 %v10071_v1, %v10070_v41  ;;  %v10074_v42 = vld [vmem:[#allocation71_spill] sm:$0xff] }
 0x370   :  { %5867 = vmatpush3.bf16.msra.mxu0 %v5866_v9  ;;  %2942 = vmatprep.mubr.f32.mxu1 %v8377_v39  ;;  %v10073_v9 = vld [vmem:[#allocation132_spill] sm:$0xff] }
 0x371   :  { %3941 = vmatprep.mubr.f32.mxu0 %v8391_v30  ;;  %5645 = vmatprep.subr.bf16.mxu1 %v8216_v10  ;;  %v5876_v2 = vpack.c.bf16 %v10073_v9, %v10072_v45  ;;  %v10075_v30 = vld [vmem:[#allocation72_spill] sm:$0xff]  ;;  %v5884_v10 = vpack.c.bf16 %v8114_v7, %v8109_v46 }
 0x372   :  { %5869 = vmatprep.subr.bf16.mxu0 %v5868_v8  ;;  %v5878_v39 = vpack.c.bf16 %v10075_v30, %v10074_v42  ;;  %v10077_v8 = vld [vmem:[#allocation87_spill] sm:$0xff] }
 0x373   :  { %5647 = vmatpush3.bf16.msra.mxu1 %v8226_v23  ;;  %v5880_v23 = vpack.c.bf16 %v8072_v43, %v8067_v19 }
 0x374   :  { %5871 = vmatpush3.bf16.msra.mxu0 %v5870_v0  ;;  %5649 = vmatprep.subr.bf16.mxu1 %v8243_v47  ;;  %v5882_v47 = vpack.c.bf16 %v8093_v53, %v8088_v59 }
 0x375   :  { %5873 = vmatprep.subr.bf16.mxu0 %v5872_v37  ;;  %v10080_v37 = vld [vmem:[#allocation36_spill] sm:$0xff] }
 0x377   :  { %5651 = vmatpush3.bf16.msra.mxu1 %v8250_v11  ;;  %v10076_v11 = vld [vmem:[#allocation60_spill] sm:$0xff] }
 0x378   :  { %5875 = vmatpush3.bf16.msra.mxu0 %v5874_v51  ;;  %5653 = vmatprep.subr.bf16.mxu1 %v8256_v48  ;;  %v5886_v48 = vpack.c.bf16 %v10076_v11, %v8129_v24  ;;  %v10082_v51 = vld [vmem:[#allocation66_spill] sm:$0xff] }
 0x379   :  { %5877 = vmatprep.subr.bf16.mxu0 %v5876_v2 }
 0x37b   :  { %5655 = vmatpush3.bf16.msra.mxu1 %v8271_v62  ;;  %v10078_v62 = vld [vmem:[#allocation52_spill] sm:$0xff] }
 0x37c   :  { %5879 = vmatpush3.bf16.msra.mxu0 %v5878_v39  ;;  %5657 = vmatprep.subr.bf16.mxu1 %v8283_v52  ;;  %v10079_v39 = vld [vmem:[#allocation62_spill] sm:$0xff]  ;;  %v10081_v52 = vld [vmem:[#allocation65_spill] sm:$0xff] }
 0x37d   :  { %5881 = vmatprep.subr.bf16.mxu0 %v5880_v23  ;;  %v5888_v0 = vpack.c.bf16 %v10079_v39, %v10078_v62  ;;  %v5890_v2 = vpack.c.bf16 %v10082_v51, %v10081_v52  ;;  %v10084_v23 = vld [vmem:[#allocation77_spill] sm:$0xff]  ;;  %v10088_v39 = vld [vmem:[#allocation83_spill] sm:$0xff] }
 0x37f   :  { %5659 = vmatpush3.bf16.msra.mxu1 %v8290_v61  ;;  %v10083_v61 = vld [vmem:[#allocation70_spill] sm:$0xff] }
 0x380   :  { %5883 = vmatpush3.bf16.msra.mxu0 %v5882_v47  ;;  %5661 = vmatprep.subr.bf16.mxu1 %v10077_v8  ;;  %v5892_v47 = vpack.c.bf16 %v10084_v23, %v10083_v61  ;;  %v9333_v8 = vand.u32 4294901760, %v10086_v55  ;;  %v9336_v23 = vand.u32 4294901760, %v10064_v25 }
 0x381   :  { %5885 = vmatprep.subr.bf16.mxu0 %v5884_v10  ;;  %v10087_v10 = vld [vmem:[#allocation35_spill] sm:$0xff] }
 0x383   :  { %5663 = vmatpush3.bf16.msra.mxu1 %v10080_v37  ;;  %v5894_v37 = vpack.c.bf16 %v10088_v39, %v10087_v10 }
 0x384   :  { %5887 = vmatpush3.bf16.msra.mxu0 %v5886_v48  ;;  %5665 = vmatprep.subr.bf16.mxu1 %v8323_v40  ;;  %v5928_v40 = vpack.c.bf16 %v9333_v8, %v9334_v15  ;;  %v9338_v48 = vand.u32 4294901760, %v10062_v27  ;;  %v9339_v8 = vand.u32 4294901760, %v10067_v29  ;;  %v9341_v15 = vand.u32 4294901760, %v10069_v3 }
 0x385   :  { %5889 = vmatprep.subr.bf16.mxu0 %v5888_v0  ;;  %v9337_v0 = vand.u32 4294901760, %v10063_v21  ;;  %v10145_v3 = vand.u32 4294901760, %v10041_v33  ;;  %v10146_v29 = vand.u32 4294901760, %v10042_v26 }
 0x387   :  { %5667 = vmatpush3.bf16.msra.mxu1 %v8331_v6  ;;  %v9335_v6 = vand.u32 4294901760, %v10065_v36 }
 0x388   :  { %5891 = vmatpush3.bf16.msra.mxu0 %v5890_v2  ;;  %5669 = vmatprep.subr.bf16.mxu1 %v8336_v50  ;;  %v10089_v50 = vpack.c.bf16 %v9986_v13, %v9984_v58  ;;  %v5930_v2 = vpack.c.bf16 %v9337_v0, %v9338_v48  ;;  %v10091_v0 = vpack.c.bf16 %v10043_v18, %v10042_v26  ;;  %v9344_v48 = vand.u32 4294901760, %v10073_v9 }
 0x389   :  { %5893 = vmatprep.subr.bf16.mxu0 %v5892_v47  ;;  %v9340_v47 = vand.u32 4294901760, %v10066_v32  ;;  %v10142_v9 = vand.u32 4294901760, %v9986_v13  ;;  %v10147_v32 = vand.u32 4294901760, %v10043_v18  ;;  %v10150_v13 = vand.u32 4294901760, %v10044_v34 }
 0x38a   :  { %v10155_v18 = vand.u32 4294901760, %v10049_v54 }
 0x38b   :  { %5671 = vmatpush3.bf16.msra.mxu1 %v8344_v14  ;;  %v5932_v14 = vpack.c.bf16 %v9335_v6, %v9336_v23  ;;  %v9346_v6 = vand.u32 4294901760, %v10070_v41  ;;  %v9343_v23 = vand.u32 4294901760, %v10071_v1  ;;  %v10143_v1 = vld [vmem:[#allocation81_spill] sm:$0xff]  ;;  %v10144_v41 = vand.u32 4294901760, %v10040_v63 }
 0x38c   :  { %5895 = vmatpush3.bf16.msra.mxu0 %v5894_v37  ;;  %5673 = vmatprep.subr.bf16.mxu1 %v10089_v50  ;;  %v9342_v37 = vand.u32 4294901760, %v10068_v35  ;;  %v5934_v50 = vpack.c.bf16 %v9339_v8, %v9340_v47  ;;  %v10092_v8 = vpack.c.bf16 %v10045_v5, %v10044_v34  ;;  %v10093_v47 = vpack.c.bf16 %v10047_v20, %v10046_v12 }
 0x38d   :  { %5929 = vmatprep.subr.bf16.mxu0 %v5928_v40  ;;  %v10090_v40 = vpack.c.bf16 %v10041_v33, %v10040_v63  ;;  %v5738_v35 = vpack.c.bf16 %v10145_v3, %v10144_v41  ;;  %v10152_v33 = vand.u32 4294901760, %v10046_v12  ;;  %v10153_v3 = vand.u32 4294901760, %v10047_v20 }
 0x38e   :  { %2944 = vmatmul.mubr.f32.vlgmr.msra.gmra.mrb[4].mxu1 %v8373_v49  ;;  %v10157_v34 = vand.u32 4294901760, %v10051_v28  ;;  %v10159_v12 = vand.u32 4294901760, %v10053_v56  ;;  %v10160_v20 = vand.u32 4294901760, %v8057_v16 }
 0x38f   :  { %3944 = vmatmul.mubr.f32.vlgmr.msra.gmra.mrb[6].mxu0 %v8385_v38  ;;  %5675 = vmatpush3.bf16.msra.mxu1 %v10090_v40  ;;  %v9345_v40 = vand.u32 4294901760, %v10072_v45  ;;  %v5744_v26 = vpack.c.bf16 %v10153_v3, %v10152_v33  ;;  %v10189_v3 = vld [vmem:[#allocation119_spill] sm:$0xff] }
 0x390   :  { %3079 = vmatprep.mubr.f32.mxu1 %v8388_v31  ;;  %5931 = vmatpush3.bf16.msra.mxu0 %v5930_v2  ;;  %v5936_v2 = vpack.c.bf16 %v9341_v15, %v9342_v37  ;;  %v9347_v15 = vand.u32 4294901760, %v10075_v30  ;;  %v9348_v37 = vand.u32 4294901760, %v8072_v43  ;;  %v10100_v43 = vld [vmem:[#allocation23_spill] sm:$0xff]  ;;  %v10140_v30 = vld [vmem:[#allocation18_spill] sm:$0xff] }
 0x391   :  { %4218 = vmatprep.mubr.f32.mxu0 %v8379_v4  ;;  %5677 = vmatprep.subr.bf16.mxu1 %v10091_v0  ;;  %v5938_v0 = vpack.c.bf16 %v9343_v23, %v9346_v6  ;;  %v10095_v23 = vpack.c.bf16 %v10051_v28, %v10050_v22  ;;  %v9360_v6 = vand.u32 4294901760, %v8114_v7  ;;  %v10106_v7 = vld [vmem:[#allocation77_spill] sm:$0xff] }
 0x392   :  { %5933 = vmatprep.subr.bf16.mxu0 %v5932_v14  ;;  %v9350_v14 = vand.u32 4294901760, %v10074_v42  ;;  %v10141_v42 = vand.u32 4294901760, %v9984_v58  ;;  %v10149_v58 = vld [vmem:[#allocation39_spill] sm:$0xff] }
 0x393   :  { %5679 = vmatpush3.bf16.msra.mxu1 %v10092_v8  ;;  %v5940_v8 = vpack.c.bf16 %v9344_v48, %v9345_v40  ;;  %v9357_v48 = vand.u32 4294901760, %v8088_v59  ;;  %v9356_v40 = vand.u32 4294901760, %v8093_v53  ;;  %v9381_v53 = vand.u32 4294901760, %v10106_v7  ;;  %v10136_v7 = vld [vmem:[#allocation80_spill] sm:$0xff] }
 0x394   :  { %5935 = vmatpush3.bf16.msra.mxu0 %v5934_v50  ;;  %5681 = vmatprep.subr.bf16.mxu1 %v10093_v47  ;;  %v9349_v50 = vand.u32 4294901760, %v8067_v19  ;;  %v10094_v47 = vpack.c.bf16 %v10049_v54, %v10048_v17  ;;  %v10108_v19 = vld [vmem:[#allocation42_spill] sm:$0xff]  ;;  %v5736_v45 = vpack.c.bf16 %v10142_v9, %v10141_v42  ;;  %v10151_v9 = vand.u32 4294901760, %v10045_v5 }
 0x395   :  { %5937 = vmatprep.subr.bf16.mxu0 %v5936_v2  ;;  %v5942_v2 = vpack.c.bf16 %v9347_v15, %v9350_v14  ;;  %v10097_v15 = vpack.c.bf16 %v8062_v60, %v8057_v16  ;;  %v10098_v14 = vld [vmem:[#allocation62_spill] sm:$0xff]  ;;  %v10158_v5 = vand.u32 4294901760, %v10052_v44  ;;  %v10162_v54 = vand.u32 4294901760, %v10100_v43 }
 0x396   :  { %v9372_v38 = vand.u32 4294901760, %v10098_v14  ;;  %v10115_v14 = vld [vmem:[#allocation63_spill] sm:$0xff]  ;;  %v5742_v63 = vpack.c.bf16 %v10151_v9, %v10150_v13 }
 0x397   :  { %5683 = vmatpush3.bf16.msra.mxu1 %v10094_v47  ;;  %v5944_v47 = vpack.c.bf16 %v9348_v37, %v9349_v50  ;;  %v9370_v50 = vand.u32 4294901760, %v10076_v11  ;;  %v5750_v41 = vpack.c.bf16 %v10159_v12, %v10158_v5 }
 0x398   :  { %5939 = vmatpush3.bf16.msra.mxu0 %v5938_v0  ;;  %5685 = vmatprep.subr.bf16.mxu1 %v10095_v23  ;;  %v9361_v0 = vand.u32 4294901760, %v8109_v46  ;;  %v10096_v23 = vpack.c.bf16 %v10053_v56, %v10052_v44  ;;  %v10166_v56 = vand.u32 4294901760, %v10108_v19 }
 0x399   :  { %5941 = vmatprep.subr.bf16.mxu0 %v5940_v8  ;;  %v5946_v8 = vpack.c.bf16 %v9356_v40, %v9357_v48  ;;  %v10102_v40 = vld [vmem:[#allocation57_spill] sm:$0xff]  ;;  %v10103_v48 = vld [vmem:[#allocation32_spill] sm:$0xff] }
 0x39a   :  { %v10104_v37 = vpack.c.bf16 %v10102_v40, %v10103_v48  ;;  %v10164_v28 = vand.u32 4294901760, %v10103_v48  ;;  %v10165_v44 = vand.u32 4294901760, %v10102_v40 }
 0x39b   :  { %5687 = vmatpush3.bf16.msra.mxu1 %v10096_v23  ;;  %v5948_v23 = vpack.c.bf16 %v9360_v6, %v9361_v0  ;;  %v9379_v0 = vand.u32 4294901760, %v10082_v51  ;;  %v10139_v51 = vld [vmem:[#allocation12_spill] sm:$0xff] }
 0x39c   :  { %5943 = vmatpush3.bf16.msra.mxu0 %v5942_v2  ;;  %5689 = vmatprep.subr.bf16.mxu1 %v10097_v15  ;;  %v9373_v2 = vand.u32 4294901760, %v10078_v62  ;;  %v10099_v15 = vld [vmem:[#allocation55_spill] sm:$0xff] }
 0x39d   :  { %5945 = vmatprep.subr.bf16.mxu0 %v5944_v47  ;;  %v10101_v59 = vpack.c.bf16 %v10099_v15, %v10100_v43  ;;  %v10105_v47 = vand.u32 4294901760, %v8129_v24 }
 0x39f   :  { %5691 = vmatpush3.bf16.msra.mxu1 %v10101_v59  ;;  %v5950_v46 = vpack.c.bf16 %v9370_v50, %v10105_v47  ;;  %v5952_v59 = vpack.c.bf16 %v9372_v38, %v9373_v2  ;;  %v10110_v47 = vld [vmem:[#allocation61_spill] sm:$0xff]  ;;  %v10111_v50 = vld [vmem:[#allocation51_spill] sm:$0xff]  ;;  %v9385_v38 = vand.u32 4294901760, %v10087_v10  ;;  %v9384_v2 = vand.u32 4294901760, %v10088_v39  ;;  %v10128_v10 = vld [vmem:[#allocation14_spill] sm:$0xff] }
 0x3a0   :  { %5947 = vmatpush3.bf16.msra.mxu0 %v5946_v8  ;;  %5693 = vmatprep.subr.bf16.mxu1 %v10104_v37  ;;  %v9382_v8 = vand.u32 4294901760, %v10083_v61  ;;  %v10107_v37 = vld [vmem:[#allocation59_spill] sm:$0xff]  ;;  %v10112_v6 = vpack.c.bf16 %v10110_v47, %v10111_v50  ;;  %v10169_v43 = vand.u32 4294901760, %v10110_v47 }
 0x3a1   :  { %5949 = vmatprep.subr.bf16.mxu0 %v5948_v23  ;;  %v10109_v24 = vpack.c.bf16 %v10107_v37, %v10108_v19  ;;  %v10113_v23 = vand.u32 4294901760, %v10081_v52  ;;  %v10118_v52 = vld [vmem:[#allocation67_spill] sm:$0xff]  ;;  %v10167_v16 = vand.u32 4294901760, %v10107_v37 }
 0x3a2   :  { %v10134_v39 = vld [vmem:[#allocation75_spill] sm:$0xff]  ;;  %v10172_v40 = vand.u32 4294901760, %v10118_v52 }
 0x3a3   :  { %5695 = vmatpush3.bf16.msra.mxu1 %v10109_v24  ;;  %v5954_v62 = vpack.c.bf16 %v9379_v0, %v10113_v23  ;;  %v5956_v24 = vpack.c.bf16 %v9381_v53, %v9382_v8  ;;  %v5958_v23 = vpack.c.bf16 %v9384_v2, %v9385_v38  ;;  %v10121_v0 = vld [vmem:[#allocation30_spill] sm:$0xff]  ;;  %v10129_v2 = vld [vmem:[#allocation16_spill] sm:$0xff] }
 0x3a4   :  { %5951 = vmatpush3.bf16.msra.mxu0 %v5950_v46  ;;  %5697 = vmatprep.subr.bf16.mxu1 %v10112_v6  ;;  %v10114_v46 = vld [vmem:[#allocation64_spill] sm:$0xff]  ;;  %v10123_v53 = vld [vmem:[#allocation74_spill] sm:$0xff]  ;;  %v10174_v37 = vand.u32 4294901760, %v10121_v0 }
 0x3a5   :  { %5953 = vmatprep.subr.bf16.mxu0 %v5952_v59  ;;  %v10116_v11 = vpack.c.bf16 %v10114_v46, %v10115_v14  ;;  %v10117_v6 = vld [vmem:[#allocation68_spill] sm:$0xff]  ;;  %v10120_v59 = vld [vmem:[#allocation31_spill] sm:$0xff]  ;;  %v10124_v8 = vld [vmem:[#allocation90_spill] sm:$0xff]  ;;  %v10171_v48 = vand.u32 4294901760, %v10114_v46 }
 0x3a6   :  { %v10119_v4 = vpack.c.bf16 %v10117_v6, %v10118_v52  ;;  %v10122_v61 = vpack.c.bf16 %v10120_v59, %v10121_v0  ;;  %v10131_v38 = vld [vmem:[#allocation22_spill] sm:$0xff]  ;;  %v10173_v19 = vand.u32 4294901760, %v10117_v6 }
 0x3a7   :  { %5699 = vmatpush3.bf16.msra.mxu1 %v10116_v11  ;;  %v10125_v11 = vld [vmem:[#allocation37_spill] sm:$0xff] }
 0x3a8   :  { %5955 = vmatpush3.bf16.msra.mxu0 %v5954_v62  ;;  %5701 = vmatprep.subr.bf16.mxu1 %v10119_v4  ;;  %v10126_v62 = vld [vmem:[#allocation27_spill] sm:$0xff]  ;;  %v10127_v4 = vand.u32 4294901760, %v8388_v31  ;;  %v10137_v31 = vld [vmem:[#allocation84_spill] sm:$0xff] }
 0x3a9   :  { %5957 = vmatprep.subr.bf16.mxu0 %v5956_v24  ;;  %v10130_v24 = vld [vmem:[#allocation20_spill] sm:$0xff] }
 0x3ab   :  { %5703 = vmatpush3.bf16.msra.mxu1 %v10122_v61  ;;  %v10132_v61 = vld [vmem:[#allocation25_spill] sm:$0xff] }
 0x3ac   :  { %5959 = vmatpush3.bf16.msra.mxu0 %v5958_v23  ;;  %5705 = vmatprep.subr.bf16.mxu1 %v10123_v53  ;;  %v10133_v23 = vld [vmem:[#allocation29_spill] sm:$0xff] }
 0x3ae   :  { %3082 = vmatmul.mubr.f32.vlgmr.msra.gmra.mrb[6].mxu1 %v10124_v8 }
 0x3af   :  { %4220 = vmatmul.mubr.f32.vlgmr.msra.gmra.mrb[8].mxu0 %v10125_v11  ;;  %5707 = vmatpush3.bf16.msra.mxu1 %v10126_v62  ;;  %v10135_v11 = vld [vmem:[#allocation78_spill] sm:$0xff] }
 0x3b0   :  { %3186 = vmatprep.mubr.f32.mxu1 %v10127_v4  ;;  %5709 = vmatprep.subr.bf16.mxu1 %v10128_v10  ;;  %v10138_v4 = vld [vmem:[#allocation86_spill] sm:$0xff] }
 0x3b3   :  { %5711 = vmatpush3.bf16.msra.mxu1 %v10129_v2 }
 0x3b4   :  { %5713 = vmatprep.subr.bf16.mxu1 %v10130_v24 }
 0x3b7   :  { %5715 = vmatpush3.bf16.msra.mxu1 %v10131_v38 }
 0x3b8   :  { %5717 = vmatprep.subr.bf16.mxu1 %v10132_v61 }
 0x3bb   :  { %5719 = vmatpush3.bf16.msra.mxu1 %v10133_v23 }
 0x3bc   :  { %5721 = vmatprep.subr.bf16.mxu1 %v10134_v39 }
 0x3bf   :  { %5723 = vmatpush3.bf16.msra.mxu1 %v10135_v11 }
 0x3c0   :  { %5725 = vmatprep.subr.bf16.mxu1 %v10136_v7 }
 0x3c3   :  { %5727 = vmatpush3.bf16.msra.mxu1 %v10137_v31 }
 0x3c4   :  { %5729 = vmatprep.subr.bf16.mxu1 %v10138_v4 }
 0x3c7   :  { %5731 = vmatpush3.bf16.msra.mxu1 %v10139_v51  ;;  %v5740_v51 = vpack.c.bf16 %v10147_v32, %v10146_v29  ;;  %v10154_v29 = vand.u32 4294901760, %v10048_v17  ;;  %v10156_v32 = vand.u32 4294901760, %v10050_v22  ;;  %v10161_v17 = vand.u32 4294901760, %v8062_v60 }
 0x3c8   :  { %5733 = vmatprep.subr.bf16.mxu1 %v10140_v30  ;;  %v10148_v30 = vand.u32 4294901760, %v10124_v8  ;;  %v10163_v22 = vand.u32 4294901760, %v10099_v15  ;;  %v5758_v8 = vpack.c.bf16 %v10167_v16, %v10166_v56  ;;  %v10168_v60 = vand.u32 4294901760, %v10111_v50  ;;  %v10198_v16 = vld [vmem:[#allocation132_spill] sm:$0xff] }
 0x3c9   :  { %v10170_v15 = vand.u32 4294901760, %v10115_v14  ;;  %v10175_v50 = vand.u32 4294901760, %v10120_v59 }
 0x3ca   :  { %v5754_v42 = vpack.c.bf16 %v10163_v22, %v10162_v54  ;;  %v5760_v13 = vpack.c.bf16 %v10169_v43, %v10168_v60 }
 0x3cb   :  { %5735 = vmatpush3.bf16.msra.mxu1 %v10143_v1  ;;  %v5762_v9 = vpack.c.bf16 %v10171_v48, %v10170_v15  ;;  %v5766_v33 = vpack.c.bf16 %v10175_v50, %v10174_v37  ;;  %v10200_v15 = vld [vmem:[#allocation71_spill] sm:$0xff] }
 0x3cc   :  { %5737 = vmatprep.subr.bf16.mxu1 %v5736_v45  ;;  %v5752_v45 = vpack.c.bf16 %v10161_v17, %v10160_v20 }
 0x3ce   :  { %3190 = vmatmul.mubr.f32.vlgmr.msra.gmra.mrb[8].mxu1 %v10148_v30  ;;  %v5746_v30 = vpack.c.bf16 %v10155_v18, %v10154_v29  ;;  %v10191_v29 = vld [vmem:[#allocation18_spill] sm:$0xff] }
 0x3cf   :  { %5739 = vmatpush3.bf16.msra.mxu1 %v5738_v35  ;;  %3356 = vmatprep.mubr.f32.mxu1 %v10149_v58  ;;  %v5748_v35 = vpack.c.bf16 %v10157_v34, %v10156_v32 }
 0x3d0   :  { %5741 = vmatprep.subr.bf16.mxu1 %v5740_v51  ;;  %v5756_v51 = vpack.c.bf16 %v10165_v44, %v10164_v28  ;;  %v10196_v44 = vld [vmem:[#allocation131_spill] sm:$0xff] }
 0x3d3   :  { %5743 = vmatpush3.bf16.msra.mxu1 %v5742_v63  ;;  %v5764_v63 = vpack.c.bf16 %v10173_v19, %v10172_v40 }
 0x3d4   :  { %5745 = vmatprep.subr.bf16.mxu1 %v5744_v26  ;;  %v10190_v26 = vand.u32 4294901760, %v10189_v3 }
 0x3d7   :  { %5747 = vmatpush3.bf16.msra.mxu1 %v5746_v30 }
 0x3d8   :  { %5749 = vmatprep.subr.bf16.mxu1 %v5748_v35  ;;  %v10192_v35 = vld [vmem:[#allocation125_spill] sm:$0xff] }
 0x3d9   :  { %v10193_v5 = vand.u32 4294901760, %v10192_v35 }
 0x3db   :  { %5751 = vmatpush3.bf16.msra.mxu1 %v5750_v41  ;;  %v3611_v12 = vsub.f32 %v10192_v35, %v10193_v5  ;;  %v10194_v41 = vld [vmem:[#allocation127_spill] sm:$0xff] }
 0x3dc   :  { %5753 = vmatprep.subr.bf16.mxu1 %v5752_v45  ;;  %v10195_v20 = vand.u32 4294901760, %v10194_v41 }
 0x3dd   :  { %v3612_v43 = vand.u32 4294901760, %v3611_v12  ;;  %v10221_v12 = vld [vmem:[#allocation52_spill] sm:$0xff] }
 0x3de   :  { %v3618_v17 = vsub.f32 %v10194_v41, %v10195_v20  ;;  %v10222_v41 = vand.u32 4294901760, %v10221_v12 }
 0x3df   :  { %5755 = vmatpush3.bf16.msra.mxu1 %v5754_v42 }
 0x3e0   :  { %5757 = vmatprep.subr.bf16.mxu1 %v5756_v51  ;;  %v10197_v51 = vand.u32 4294901760, %v10196_v44  ;;  %v3779_v20 = vsub.f32 %v10221_v12, %v10222_v41  ;;  %v10253_v12 = vld [vmem:[#allocation53_spill] sm:$0xff] }
 0x3e1   :  { %v10254_v41 = vld [vmem:[#allocation69_spill] sm:$0xff] }
 0x3e2   :  { %v3737_v56 = vsub.f32 %v10196_v44, %v10197_v51  ;;  %v10225_v51 = vld [vmem:[#allocation65_spill] sm:$0xff] }
 0x3e3   :  { %5759 = vmatpush3.bf16.msra.mxu1 %v5758_v8  ;;  %v10199_v8 = vand.u32 4294901760, %v10198_v16 }
 0x3e4   :  { %5761 = vmatprep.subr.bf16.mxu1 %v5760_v13  ;;  %v3619_v13 = vand.u32 4294901760, %v3618_v17  ;;  %v10223_v17 = vld [vmem:[#allocation62_spill] sm:$0xff] }
 0x3e5   :  { %v3744_v60 = vsub.f32 %v10198_v16, %v10199_v8  ;;  %v10227_v8 = vld [vmem:[#allocation66_spill] sm:$0xff] }
 0x3e7   :  { %5763 = vmatpush3.bf16.msra.mxu1 %v5762_v9  ;;  %v10202_v9 = vld [vmem:[#allocation72_spill] sm:$0xff] }
 0x3e8   :  { %5765 = vmatprep.subr.bf16.mxu1 %v5764_v63  ;;  %v10203_v40 = vand.u32 4294901760, %v10202_v9  ;;  %v10204_v63 = vld [vmem:[#allocation40_spill] sm:$0xff] }
 0x3ea   :  { %v3632_v19 = vsub.f32 %v10202_v9, %v10203_v40  ;;  %v10231_v40 = vld [vmem:[#allocation77_spill] sm:$0xff] }
 0x3eb   :  { %5767 = vmatpush3.bf16.msra.mxu1 %v5766_v33  ;;  %v3738_v33 = vand.u32 4294901760, %v3737_v56  ;;  %v10226_v56 = vand.u32 4294901760, %v10225_v51 }
 0x3ec   :  { %5769 = vmatprep.subr.bf16.mxu1 %v10123_v53  ;;  %v10176_v53 = vand.u32 4294901760, %v10085_v57 }
 0x3ed   :  { %v3667_v16 = vsub.f32 %v10225_v51, %v10226_v56 }
 0x3ee   :  { %3358 = vmatmul.mubr.f32.vlgmr.msra.gmra.mrb[10].mxu1 %v8373_v49  ;;  %v3695_v52 = vsub.f32 %v10085_v57, %v10176_v53  ;;  %v10180_v57 = vand.u32 4294901760, %v10064_v25  ;;  %v3745_v53 = vand.u32 4294901760, %v3744_v60  ;;  %v10228_v60 = vand.u32 4294901760, %v10227_v8 }
 0x3ef   :  { %5771 = vmatpush3.bf16.msra.mxu1 %v10126_v62  ;;  %3460 = vmatprep.mubr.f32.mxu1 %v10149_v58  ;;  %v10183_v62 = vld [vmem:[#allocation109_spill] sm:$0xff] }
 0x3f0   :  { %5773 = vmatprep.subr.bf16.mxu1 %v10128_v10  ;;  %v10177_v10 = vand.u32 4294901760, %v10086_v55  ;;  %v3709_v46 = vsub.f32 %v10064_v25, %v10180_v57 }
 0x3f2   :  { %v3702_v14 = vsub.f32 %v10086_v55, %v10177_v10  ;;  %v10181_v55 = vand.u32 4294901760, %v10065_v36  ;;  %v3710_v30 = vand.u32 4294901760, %v3709_v46 }
 0x3f3   :  { %5775 = vmatpush3.bf16.msra.mxu1 %v10129_v2  ;;  %v10179_v2 = vand.u32 4294901760, %v10063_v21 }
 0x3f4   :  { %5777 = vmatprep.subr.bf16.mxu1 %v10130_v24  ;;  %v3703_v47 = vand.u32 4294901760, %v3702_v14  ;;  %v3716_v6 = vsub.f32 %v10065_v36, %v10181_v55  ;;  %v3730_v36 = vsub.f32 %v10189_v3, %v10190_v26  ;;  %v10207_v14 = vld [vmem:[#allocation54_spill] sm:$0xff]  ;;  %v10211_v55 = vld [vmem:[#allocation56_spill] sm:$0xff] }
 0x3f6   :  { %v3717_v32 = vand.u32 4294901760, %v3716_v6  ;;  %v3731_v42 = vand.u32 4294901760, %v3730_v36  ;;  %v10212_v6 = vand.u32 4294901760, %v10211_v55  ;;  %v10219_v36 = vld [vmem:[#allocation60_spill] sm:$0xff] }
 0x3f7   :  { %5779 = vmatpush3.bf16.msra.mxu1 %v10131_v38  ;;  %v10178_v38 = vand.u32 4294901760, %v10062_v27 }
 0x3f8   :  { %5781 = vmatprep.subr.bf16.mxu1 %v10132_v61  ;;  %v10185_v61 = vld [vmem:[#allocation111_spill] sm:$0xff]  ;;  %v5836_v28 = vpack.c.bf16 %v3717_v32, %v3710_v30 }
 0x3f9   :  { %v3583_v0 = vsub.f32 %v10062_v27, %v10178_v38  ;;  %v10208_v38 = vand.u32 4294901760, %v10207_v14 }
 0x3fb   :  { %5783 = vmatpush3.bf16.msra.mxu1 %v10133_v23  ;;  %v3584_v59 = vand.u32 4294901760, %v3583_v0  ;;  %v10186_v23 = vand.u32 4294901760, %v10185_v61  ;;  %v3758_v0 = vsub.f32 %v10207_v14, %v10208_v38  ;;  %v10235_v14 = vld [vmem:[#allocation83_spill] sm:$0xff] }
 0x3fc   :  { %5785 = vmatprep.subr.bf16.mxu1 %v10134_v39  ;;  %v3590_v39 = vsub.f32 %v10063_v21, %v10179_v2  ;;  %v10184_v21 = vand.u32 4294901760, %v10183_v62  ;;  %v5842_v2 = vpack.c.bf16 %v3619_v13, %v3612_v43  ;;  %v3674_v43 = vsub.f32 %v10227_v8, %v10228_v60 }
 0x3fd   :  { %v3780_v13 = vand.u32 4294901760, %v3779_v20  ;;  %v10236_v38 = vand.u32 4294901760, %v10235_v14  ;;  %v10255_v20 = vld [vmem:[#allocation34_spill] sm:$0xff] }
 0x3fe   :  { %v3591_v27 = vand.u32 4294901760, %v3590_v39  ;;  %v3597_v24 = vsub.f32 %v10183_v62, %v10184_v21  ;;  %v10215_v21 = vld [vmem:[#allocation58_spill] sm:$0xff] }
 0x3ff   :  { %5787 = vmatpush3.bf16.msra.mxu1 %v10135_v11  ;;  %v10182_v11 = vld [vmem:[#allocation12_spill] sm:$0xff] }
 0x400   :  { %5789 = vmatprep.subr.bf16.mxu1 %v10136_v7  ;;  %v3696_v7 = vand.u32 4294901760, %v3695_v52  ;;  %v5834_v34 = vpack.c.bf16 %v3591_v27, %v3584_v59  ;;  %v3598_v45 = vand.u32 4294901760, %v3597_v24  ;;  %v10205_v52 = vld [vmem:[#allocation17_spill] sm:$0xff]  ;;  %v3646_v59 = vsub.f32 %v10211_v55, %v10212_v6  ;;  %v10213_v27 = vld [vmem:[#allocation38_spill] sm:$0xff] }
 0x401   :  { %v10216_v24 = vand.u32 4294901760, %v10215_v21 }
 0x402   :  { %v5832_v18 = vpack.c.bf16 %v3703_v47, %v3696_v7  ;;  %v3633_v7 = vand.u32 4294901760, %v3632_v19  ;;  %v10209_v47 = vld [vmem:[#allocation28_spill] sm:$0xff]  ;;  %v3647_v32 = vand.u32 4294901760, %v3646_v59  ;;  %v10232_v19 = vand.u32 4294901760, %v10231_v40  ;;  %v10237_v59 = vld [vmem:[#allocation73_spill] sm:$0xff] }
 0x403   :  { %5791 = vmatpush3.bf16.msra.mxu1 %v10137_v31  ;;  %v3604_v31 = vsub.f32 %v10185_v61, %v10186_v23  ;;  %v10210_v57 = vand.u32 4294901760, %v10209_v47  ;;  %v3772_v61 = vsub.f32 %v10215_v21, %v10216_v24  ;;  %v5844_v23 = vpack.c.bf16 %v3745_v53, %v3738_v33  ;;  %v10242_v24 = vld [vmem:[#allocation15_spill] sm:$0xff] }
 0x404   :  { %5793 = vmatprep.subr.bf16.mxu1 %v10138_v4  ;;  %v10187_v4 = vld [vmem:[#allocation118_spill] sm:$0xff]  ;;  %v3668_v33 = vand.u32 4294901760, %v3667_v16  ;;  %v3675_v53 = vand.u32 4294901760, %v3674_v43 }
 0x405   :  { %v10188_v58 = vand.u32 4294901760, %v10187_v4  ;;  %v3605_v54 = vand.u32 4294901760, %v3604_v31  ;;  %v3639_v46 = vsub.f32 %v10209_v47, %v10210_v57  ;;  %v3773_v35 = vand.u32 4294901760, %v3772_v61  ;;  %v10243_v61 = vld [vmem:[#allocation19_spill] sm:$0xff] }
 0x406   :  { %v5858_v47 = vpack.c.bf16 %v3675_v53, %v3668_v33 }
 0x407   :  { %5795 = vmatpush3.bf16.msra.mxu1 %v10182_v11  ;;  %v3723_v25 = vsub.f32 %v10187_v4, %v10188_v58  ;;  %v5838_v37 = vpack.c.bf16 %v3605_v54, %v3598_v45  ;;  %v10214_v11 = vand.u32 4294901760, %v10213_v27  ;;  %v3759_v4 = vand.u32 4294901760, %v3758_v0 }
 0x408   :  { %5797 = vmatprep.subr.bf16.mxu1 %v10191_v29  ;;  %v10220_v29 = vand.u32 4294901760, %v10219_v36  ;;  %v3640_v30 = vand.u32 4294901760, %v3639_v46  ;;  %v10224_v45 = vand.u32 4294901760, %v10223_v17  ;;  %v3688_v0 = vsub.f32 %v10235_v14, %v10236_v38 }
 0x409   :  { %v3724_v22 = vand.u32 4294901760, %v3723_v25  ;;  %v3765_v62 = vsub.f32 %v10213_v27, %v10214_v11  ;;  %v10217_v25 = vld [vmem:[#allocation47_spill] sm:$0xff]  ;;  %v10238_v27 = vld [vmem:[#allocation37_spill] sm:$0xff] }
 0x40a   :  { %v10218_v3 = vand.u32 4294901760, %v10217_v25  ;;  %v3786_v54 = vsub.f32 %v10223_v17, %v10224_v45  ;;  %v3689_v46 = vand.u32 4294901760, %v3688_v0  ;;  %v10239_v11 = vld [vmem:[#allocation13_spill] sm:$0xff] }
 0x40b   :  { %5799 = vmatpush3.bf16.msra.mxu1 %v10143_v1  ;;  %v10201_v1 = vand.u32 4294901760, %v10200_v15  ;;  %v5840_v50 = vpack.c.bf16 %v3731_v42, %v3724_v22  ;;  %v10256_v17 = vld [vmem:[#allocation33_spill] sm:$0xff] }
 0x40c   :  { %5833 = vmatprep.subr.bf16.mxu1 %v5832_v18  ;;  %v3653_v26 = vsub.f32 %v10217_v25, %v10218_v3  ;;  %v3660_v18 = vsub.f32 %v10219_v36, %v10220_v29  ;;  %v10248_v25 = vld [vmem:[#allocation76_spill] sm:$0xff]  ;;  %v10249_v3 = vld [vmem:[#allocation79_spill] sm:$0xff]  ;;  %v10257_v45 = vand.u32 4294901760, %v10256_v17 }
 0x40d   :  { %v3625_v48 = vsub.f32 %v10200_v15, %v10201_v1  ;;  %v3787_v15 = vand.u32 4294901760, %v3786_v54  ;;  %v10229_v1 = vld [vmem:[#allocation70_spill] sm:$0xff] }
 0x40e   :  { %3462 = vmatmul.mubr.f32.vlgmr.msra.gmra.mrb[12].mxu1 %v8373_v49  ;;  %v10206_v49 = vand.u32 4294901760, %v10205_v52  ;;  %v3654_v22 = vand.u32 4294901760, %v3653_v26  ;;  %v3661_v42 = vand.u32 4294901760, %v3660_v18  ;;  %v10250_v26 = vld [vmem:[#allocation82_spill] sm:$0xff] }
 0x40f   :  { %5835 = vmatpush3.bf16.msra.mxu1 %v5834_v34  ;;  %3804 = vmatprep.mubr.f32.mxu1 %v10204_v63  ;;  %v3626_v39 = vand.u32 4294901760, %v3625_v48  ;;  %v3766_v34 = vand.u32 4294901760, %v3765_v62  ;;  %v10230_v48 = vand.u32 4294901760, %v10229_v1  ;;  %v10240_v62 = vld [vmem:[#allocation93_spill] sm:$0xff] }
 0x410   :  { %5837 = vmatprep.subr.bf16.mxu1 %v5836_v28  ;;  %v3751_v10 = vsub.f32 %v10205_v52, %v10206_v49  ;;  %v5850_v28 = vpack.c.bf16 %v3647_v32, %v3640_v30  ;;  %v10233_v52 = vld [vmem:[#allocation35_spill] sm:$0xff]  ;;  %v10241_v21 = vand.u32 4294901760, %v10240_v62 }
 0x411   :  { %v5846_v58 = vpack.c.bf16 %v3633_v7, %v3626_v39  ;;  %v5852_v44 = vpack.c.bf16 %v3773_v35, %v3766_v34  ;;  %v3793_v9 = vsub.f32 %v10229_v1, %v10230_v48  ;;  %v10234_v49 = vand.u32 4294901760, %v10233_v52  ;;  %v10251_v35 = vld [vmem:[#allocation85_spill] sm:$0xff] }
 0x412   :  { %v3752_v31 = vand.u32 4294901760, %v3751_v10 }
 0x413   :  { %5839 = vmatpush3.bf16.msra.mxu1 %v5838_v37  ;;  %v3800_v37 = vsub.f32 %v10231_v40, %v10232_v19  ;;  %v3681_v10 = vsub.f32 %v10233_v52, %v10234_v49  ;;  %v3794_v39 = vand.u32 4294901760, %v3793_v9 }
 0x414   :  { %5841 = vmatprep.subr.bf16.mxu1 %v5840_v50  ;;  %v5848_v5 = vpack.c.bf16 %v3759_v4, %v3752_v31  ;;  %v5854_v50 = vpack.c.bf16 %v3661_v42, %v3654_v22  ;;  %v10245_v31 = vld [vmem:[#allocation24_spill] sm:$0xff]  ;;  %v10246_v4 = vld [vmem:[#allocation26_spill] sm:$0xff] }
 0x415   :  { %v3801_v7 = vand.u32 4294901760, %v3800_v37  ;;  %v3682_v57 = vand.u32 4294901760, %v3681_v10 }
 0x417   :  { %5843 = vmatpush3.bf16.msra.mxu1 %v5842_v2  ;;  %v5856_v2 = vpack.c.bf16 %v3787_v15, %v3780_v13  ;;  %v5860_v55 = vpack.c.bf16 %v3801_v7, %v3794_v39  ;;  %v5862_v6 = vpack.c.bf16 %v3689_v46, %v3682_v57 }
 0x418   :  { %5845 = vmatprep.subr.bf16.mxu1 %v5844_v23  ;;  %v10244_v23 = vld [vmem:[#allocation21_spill] sm:$0xff] }
 0x41b   :  { %5847 = vmatpush3.bf16.msra.mxu1 %v5846_v58  ;;  %v10247_v58 = vld [vmem:[#allocation46_spill] sm:$0xff] }
 0x41c   :  { %5849 = vmatprep.subr.bf16.mxu1 %v5848_v5  ;;  %v10252_v5 = vld [vmem:[#allocation88_spill] sm:$0xff] }
 0x41f   :  { %5851 = vmatpush3.bf16.msra.mxu1 %v5850_v28 }
 0x420   :  { %5853 = vmatprep.subr.bf16.mxu1 %v5852_v44 }
 0x423   :  { %5855 = vmatpush3.bf16.msra.mxu1 %v5854_v50 }
 0x424   :  { %5857 = vmatprep.subr.bf16.mxu1 %v5856_v2 }
 0x427   :  { %5859 = vmatpush3.bf16.msra.mxu1 %v5858_v47 }
 0x428   :  { %5861 = vmatprep.subr.bf16.mxu1 %v5860_v55 }
 0x42b   :  { %5863 = vmatpush3.bf16.msra.mxu1 %v5862_v6 }
 0x42c   :  { %5897 = vmatprep.subr.bf16.mxu1 %v10237_v59 }
 0x42e   :  { %3806 = vmatmul.mubr.f32.vlgmr.msra.gmra.mrb[14].mxu1 %v10238_v27 }
 0x42f   :  { %5899 = vmatpush3.bf16.msra.mxu1 %v10239_v11  ;;  %4048 = vmatprep.mubr.f32.mxu1 %v10241_v21 }
 0x430   :  { %5901 = vmatprep.subr.bf16.mxu1 %v10242_v24 }
 0x433   :  { %5903 = vmatpush3.bf16.msra.mxu1 %v10243_v61 }
 0x434   :  { %5905 = vmatprep.subr.bf16.mxu1 %v10244_v23 }
 0x437   :  { %5907 = vmatpush3.bf16.msra.mxu1 %v10245_v31 }
 0x438   :  { %5909 = vmatprep.subr.bf16.mxu1 %v10246_v4 }
 0x43b   :  { %5911 = vmatpush3.bf16.msra.mxu1 %v10247_v58 }
 0x43c   :  { %5913 = vmatprep.subr.bf16.mxu1 %v10248_v25 }
 0x43f   :  { %5915 = vmatpush3.bf16.msra.mxu1 %v10249_v3 }
 0x440   :  { %5917 = vmatprep.subr.bf16.mxu1 %v10250_v26 }
 0x441   :  { %v4482_v36 = vpop.f32.mrb[2].mxu1 }
 0x442   :  { %v4692_v29 = vpop.f32.mrb[4].mxu0  ;;  %v4483_v18 = vpop.f32.mrb[3].mxu1 }
 0x443   :  { %v4693_v30 = vpop.f32.mrb[5].mxu0  ;;  %v4484_v32 = vadd.f32 %v4483_v18, %v4482_v36  ;;  %5919 = vmatpush3.bf16.msra.mxu1 %v10251_v35 }
 0x444   :  { %v4694_v34 = vadd.f32 %v4693_v30, %v4692_v29  ;;  %5921 = vmatprep.subr.bf16.mxu1 %v10252_v5 }
 0x447   :  { %5923 = vmatpush3.bf16.msra.mxu1 %v10253_v12 }
 0x448   :  { %5925 = vmatprep.subr.bf16.mxu1 %v10254_v41 }
 0x44b   :  { %5927 = vmatpush3.bf16.msra.mxu1 %v10255_v20 }
 0x44c   :  { %5961 = vmatprep.subr.bf16.mxu1 %v10237_v59 }
 0x44e   :  { %4052 = vmatmul.mubr.f32.vlgmr.msra.gmra.mrb[16].mxu1 %v10257_v45 }
 0x44f   :  { %5963 = vmatpush3.bf16.msra.mxu1 %v10239_v11  ;;  %4322 = vmatprep.mubr.f32.mxu1 %v10204_v63  ;;  %v4347_v63 = vld [vmem:[%s8867_s6] ss:$0 sm:$0xff]  ;;  %s6142_s6 = smov [#allocation8]  }
 0x450   :  { %5965 = vmatprep.subr.bf16.mxu1 %v10242_v24  ;;  %v2714_v44 = vadd.f32 %v4484_v32, %v4347_v63  ;;  %s4336_s20 = sshll.u32 %s6142_s6, 4  ;;  %s4337_s20 = int_to_ptr.vmem [resolvable:$true] %s4336_s20 }
 0x451   :  { %s6104_s21 = scalar_lea.vmem %s4337_s20, 128  ;;  %p6109_p11 = scmp.lt.s32.totalorder %s4337_s20, %s4337_s20 }
 0x452   :  { %p6105_p10 = scmp.ne.s32.totalorder %s4337_s20, %s6104_s21  ;;  %p6110_p12 = scmp.lt.s32.totalorder %s6104_s21, %s6104_s21 }
 0x453   :  { %5967 = vmatpush3.bf16.msra.mxu1 %v10243_v61 }
 0x454   :  { %5969 = vmatprep.subr.bf16.mxu1 %v10244_v23  ;;  %p6111_p13 = por %p6110_p12, %p6109_p11 }
 0x456   :  { %p6112_p0 = pnand %p6111_p13, %p6105_p10 }
 0x457   :  { %5971 = vmatpush3.bf16.msra.mxu1 %v10245_v31 }
 0x458   :  { %5973 = vmatprep.subr.bf16.mxu1 %v10246_v4 }
 0x45b   :  { %5975 = vmatpush3.bf16.msra.mxu1 %v10247_v58 }
 0x45c   :  { %5977 = vmatprep.subr.bf16.mxu1 %v10248_v25 }
 0x45f   :  { %5979 = vmatpush3.bf16.msra.mxu1 %v10249_v3 }
 0x460   :  { %5981 = vmatprep.subr.bf16.mxu1 %v10250_v26 }
 0x461   :  { %v4517_v54 = vpop.f32.mrb[4].mxu1 }
 0x462   :  { %v4762_v22 = vpop.f32.mrb[6].mxu0  ;;  %v4518_v42 = vpop.f32.mrb[5].mxu1 }
 0x463   :  { %v4763_v28 = vpop.f32.mrb[7].mxu0  ;;  %v4519_v51 = vadd.f32 %v4518_v42, %v4517_v54  ;;  %5983 = vmatpush3.bf16.msra.mxu1 %v10251_v35 }
 0x464   :  { %v4764_v56 = vadd.f32 %v4763_v28, %v4762_v22  ;;  %5985 = vmatprep.subr.bf16.mxu1 %v10252_v5 }
 0x465   :  { %v2946_v16 = vadd.f32 %v4519_v51, %v2714_v44 }
 0x467   :  { %5987 = vmatpush3.bf16.msra.mxu1 %v10253_v12 }
 0x468   :  { %5989 = vmatprep.subr.bf16.mxu1 %v10254_v41 }
 0x46b   :  { %5991 = vmatpush3.bf16.msra.mxu1 %v10255_v20 }
 0x46e   :  { %4324 = vmatmul.mubr.f32.vlgmr.msra.gmra.mrb[18].mxu1 %v10238_v27 }
 0x481   :  { %v4552_v8 = vpop.f32.mrb[6].mxu1 }
 0x482   :  { %v4832_v60 = vpop.f32.mrb[8].mxu0  ;;  %v4553_v43 = vpop.f32.mrb[7].mxu1 }
 0x483   :  { %v4554_v13 = vadd.f32 %v4553_v43, %v4552_v8  ;;  %v4833_v15 = vpop.f32.mrb[9].mxu0 }
 0x484   :  { %v4834_v1 = vadd.f32 %v4833_v15, %v4832_v60 }
 0x485   :  { %v3084_v48 = vadd.f32 %v4554_v13, %v2946_v16 }
 0x4a1   :  { %v4587_v9 = vpop.f32.mrb[8].mxu1 }
 0x4a2   :  { %v4588_v40 = vpop.f32.mrb[9].mxu1 }
 0x4a3   :  { %v4589_v19 = vadd.f32 %v4588_v40, %v4587_v9 }
 0x4a5   :  { %v3192_v37 = vadd.f32 %v4589_v19, %v3084_v48 }
 0x4c1   :  { %v4622_v50 = vpop.f32.mrb[10].mxu1 }
 0x4c2   :  { %v4623_v33 = vpop.f32.mrb[11].mxu1 }
 0x4c3   :  { %v4624_v53 = vadd.f32 %v4623_v33, %v4622_v50 }
 0x4c5   :  { %v3360_v52 = vadd.f32 %v4624_v53, %v3192_v37 }
 0x4e1   :  { %v4657_v49 = vpop.f32.mrb[12].mxu1 }
 0x4e2   :  { %v4658_v10 = vpop.f32.mrb[13].mxu1 }
 0x4e3   :  { %v4659_v14 = vadd.f32 %v4658_v10, %v4657_v49 }
 0x4e5   :  { %v3464_v38 = vadd.f32 %v4659_v14, %v3360_v52 }
 0x4e7   :  { %v3576_v0 = vadd.f32 %v4694_v34, %v3464_v38 }
 0x501   :  { %v4727_v2 = vpop.f32.mrb[14].mxu1 }
 0x502   :  { %v4728_v39 = vpop.f32.mrb[15].mxu1 }
 0x503   :  { %v4729_v7 = vadd.f32 %v4728_v39, %v4727_v2 }
 0x505   :  { %v3808_v47 = vadd.f32 %v4729_v7, %v3576_v0 }
 0x507   :  { %v3946_v57 = vadd.f32 %v4764_v56, %v3808_v47 }
 0x521   :  { %v4797_v46 = vpop.f32.mrb[16].mxu1 }
 0x522   :  { %v4798_v55 = vpop.f32.mrb[17].mxu1 }
 0x523   :  { %v4799_v6 = vadd.f32 %v4798_v55, %v4797_v46 }
 0x525   :  { %v4054_v59 = vadd.f32 %v4799_v6, %v3946_v57 }
 0x527   :  { %v4222_v27 = vadd.f32 %v4834_v1, %v4054_v59 }
 0x541   :  { %v4867_v11 = vpop.f32.mrb[18].mxu1 }
 0x542   :  { %v4868_v62 = vpop.f32.mrb[19].mxu1 }
 0x543   :  { %v4869_v21 = vadd.f32 %v4868_v62, %v4867_v11 }
 0x545   :  { %v4326_v24 = vadd.f32 %v4869_v21, %v4222_v27 }
 0x547   :  { %4329 = vst [vmem:[#allocation8] sm:$0xff] %v4326_v24 }
 0x548   :  { %6115 = shalt.err (!%p6112_p0)
}
 0x549   :  { %s6116_s24 = scalar_lea.hbm %s8868_s7, 128 }
 0x54a   :  { %p6117_p1 = scmp.ne.s32.totalorder %s8868_s7, %s6116_s24  ;;  %p6120_p2 = scmp.lt.u32.totalorder %s6116_s24, %s8868_s7 }
 0x54c   :  { %p6122_p3 = pnand %p6120_p2, %p6117_p1 }
 0x54e   :  { %6125 = shalt.err (!%p6122_p3)
}
 0x54f   :  { %4339 = dma.vmem_to_hbm [thread:$0]  %s4337_s20, 128, %s8868_s7, [#allocation4]  }
 0x550   :  { %6130 = dma.done.wait [#allocation4], 128  }
 0x551   :  { %6131 = vsyncadd [#allocation4], 4294967168 }
 0x552   :  { %4343 = vsyncpa [#allocation3], 1 }
 0x553   :  { %4344 = vsyncpa [#allocation6], 1 }
 0x554   :  { %4345 = vsyncpa [#allocation4], 1 }

</bundles_post_ra>
